<compile_context>
chip_gen: v7x
topology: tpu7x:2x2x1
jax: 0.10.0
libtpu: 0.0.40
codegen_flags: <defaults>
</compile_context>

<pallas_src>
import functools

import jax
import jax.numpy as jnp
from jax.experimental import pallas as pl
from jax.experimental.pallas import tpu as pltpu


def _rnn_rollout_kernel(
    x_ref,      # (T, BB, IN)   bf16  full input sequence for this batch block
    h0_ref,     # (BB, H)       f32   initial hidden state for this batch block
    w1_ref,     # (IN, H)       bf16  fc1 weight (transposed)
    b1_ref,     # (1, H)        f32
    wg_ref,     # (2H, 4H)      bf16  packed GRU weight [[Wxr Wxz Wxn 0],[Whr Whz 0 Whn]]
    bg_ref,     # (1, 4H)       f32   packed GRU bias   [br | bz | bxn | bhn]
    w2_ref,     # (H, A_pad)    bf16  fc2 weight (transposed, lane-padded to 128)
    b2_ref,     # (1, A_pad)    f32
    q_ref,      # (T, BB, A_pad) bf16 out: q values for every step
    hout_ref,   # (BB, H)       f32   out: final hidden state for this batch block
):
    f32 = jnp.float32
    bf16 = jnp.bfloat16
    T = x_ref.shape[0]
    H = h0_ref.shape[-1]

    # Hoist all weights / biases out of the time loop: loaded once, live in
    # vregs across every step (only ~13 KB of bf16 weights total).
    w1 = w1_ref[...]
    b1 = b1_ref[...]
    wg = wg_ref[...]
    bg = bg_ref[...]
    w2 = w2_ref[...]
    b2 = b2_ref[...]

    h = h0_ref[...]  # f32 (BB, H) recurrent carry, stays in registers/VMEM.

    # T is small and static (from the ref shape) -> full static unroll
    # (equivalent to lax.fori_loop(..., unroll=True), but with static indices).
    for t in range(T):
        inp = x_ref[t]  # bf16 (BB, IN)

        # fc1 + ReLU (bf16 MXU operands, f32 accumulation).
        x = jnp.dot(inp, w1, preferred_element_type=f32) + b1
        x = jnp.maximum(x, 0.0)

        # GRUCell (PyTorch semantics), all six gate matmuls fused into one
        # 128-lane MXU op:  [x | h] @ [[Wxr Wxz Wxn 0],[Whr Whz 0 Whn]].
        xh = jnp.concatenate([x.astype(bf16), h.astype(bf16)], axis=-1)   # (BB, 2H)
        g = jnp.dot(xh, wg, preferred_element_type=f32) + bg              # (BB, 4H)
        r = jax.nn.sigmoid(g[:, :H])              # x@Wxr + h@Whr + (b_ih_r + b_hh_r)
        z = jax.nn.sigmoid(g[:, H:2 * H])         # x@Wxz + h@Whz + (b_ih_z + b_hh_z)
        gn_x = g[:, 2 * H:3 * H]                  # x@Wxn + b_ih_n
        gn_h = g[:, 3 * H:]                       # h@Whn + b_hh_n
        n = jnp.tanh(gn_x + r * gn_h)
        h = (1.0 - z) * n + z * h

        # fc2 -> lane-dense bf16 store (output padded to 128 lanes).
        q = jnp.dot(h.astype(bf16), w2, preferred_element_type=f32) + b2
        q_ref[t] = q.astype(q_ref.dtype)

    hout_ref[...] = h


def pack_params(params):
    """Convert PyTorch-layout params (see init_params) into the kernel layout:
    one fused (2H, 4H) GRU weight / (1, 4H) bias, bf16 matmul operands, and
    fc2 padded to 128 output lanes."""
    H = params["b1"].shape[-1]
    A = params["b2"].shape[-1]
    a_pad = ((A + 127) // 128) * 128
    bf = lambda a: a.astype(jnp.bfloat16)

    wih, whh = params["wih_t"], params["whh_t"]   # (H, 3H), gate order [r, z, n]
    bih, bhh = params["bih"], params["bhh"]       # (1, 3H)

    zeros = jnp.zeros((H, H), jnp.float32)
    wg_top = jnp.concatenate([wih[:, :H], wih[:, H:2 * H], wih[:, 2 * H:], zeros], axis=1)
    wg_bot = jnp.concatenate([whh[:, :H], whh[:, H:2 * H], zeros, whh[:, 2 * H:]], axis=1)
    wg = jnp.concatenate([wg_top, wg_bot], axis=0)                       # (2H, 4H)
    bg = jnp.concatenate([bih[:, :H] + bhh[:, :H],
                          bih[:, H:2 * H] + bhh[:, H:2 * H],
                          bih[:, 2 * H:], bhh[:, 2 * H:]], axis=1)       # (1, 4H)

    w2_pad = jnp.zeros((H, a_pad), jnp.float32).at[:, :A].set(params["w2_t"])
    b2_pad = jnp.zeros((1, a_pad), jnp.float32).at[:, :A].set(params["b2"])

    return dict(w1=bf(params["w1_t"]), b1=params["b1"],
                wg=bf(wg), bg=bg,
                w2=bf(w2_pad), b2=b2_pad)


@functools.partial(jax.jit, static_argnames=("n_actions", "batch_block"))
def rnn_agent_rollout(inputs_seq, hidden_state, kp, *, n_actions, batch_block=None):
    """Fused T-step rollout of RNNAgent.forward (use_rnn=True).

    inputs_seq: (T, B, IN), hidden_state: (..., H) reshaped to (B, H).
    Returns (q_seq (T, B, n_actions) f32, h_final (B, H) f32).
    batch_block: leave None (=B) on v5e/v6e; pass B//2 on v7x to use both TCs."""
    T, B, IN = inputs_seq.shape
    H = kp["b1"].shape[-1]
    a_pad = kp["b2"].shape[-1]

    if batch_block is None or B % batch_block != 0:
        batch_block = B
    bb = batch_block
    nb = B // bb

    x = inputs_seq.astype(jnp.bfloat16)
    h0 = hidden_state.reshape(-1, H).astype(jnp.float32)

    weights = (kp["w1"], kp["b1"], kp["wg"], kp["bg"], kp["w2"], kp["b2"])

    def const_spec(a):
        nd = a.ndim
        return pl.BlockSpec(a.shape, lambda b, _nd=nd: (0,) * _nd)

    nbytes = lambda a: a.size * a.dtype.itemsize
    flops = 2 * T * B * (IN * H + (2 * H) * (4 * H) + H * a_pad)
    bytes_accessed = (nbytes(x) + nbytes(h0) + sum(nbytes(w) for w in weights)
                      + T * B * a_pad * 2 + B * H * 4)

    q_pad, h_final = pl.pallas_call(
        _rnn_rollout_kernel,
        out_shape=(
            jax.ShapeDtypeStruct((T, B, a_pad), jnp.bfloat16),
            jax.ShapeDtypeStruct((B, H), jnp.float32),
        ),
        grid=(nb,),
        in_specs=[
            pl.BlockSpec((T, bb, IN), lambda b: (0, b, 0)),
            pl.BlockSpec((bb, H), lambda b: (b, 0)),
        ] + [const_spec(a) for a in weights],
        out_specs=(
            pl.BlockSpec((T, bb, a_pad), lambda b: (0, b, 0)),
            pl.BlockSpec((bb, H), lambda b: (b, 0)),
        ),
        compiler_params=pltpu.CompilerParams(
            dimension_semantics=("parallel",)),
        cost_estimate=pl.CostEstimate(
            flops=flops,
            transcendentals=3 * T * B * H,
            bytes_accessed=bytes_accessed),
    )(x, h0, *weights)

    return q_pad[..., :n_actions].astype(jnp.float32), h_final


def rnn_agent_forward(inputs, hidden_state, kp, *, n_actions):
    """Exact equivalent of RNNAgent.forward(inputs, hidden_state) (single step)."""
    q_seq, h = rnn_agent_rollout(inputs[None], hidden_state, kp, n_actions=n_actions)
    return q_seq[0], h
    # TODO(synk): the use_rnn=False branch (Linear+ReLU recurrence) is not implemented.


def init_params(key, input_dim, hidden_dim, n_actions):
    """Deterministic synthetic init mirroring PyTorch default Linear/GRUCell shapes."""
    ks = jax.random.split(key, 8)

    def uniform(k, shape, fan_in):
        bound = 1.0 / jnp.sqrt(jnp.float32(fan_in))
        return jax.random.uniform(k, shape, jnp.float32, -bound, bound)

    w1_t = uniform(ks[0], (input_dim, hidden_dim), input_dim)
    b1 = uniform(ks[1], (1, hidden_dim), input_dim)
    wih_t = uniform(ks[2], (hidden_dim, 3 * hidden_dim), hidden_dim)
    whh_t = uniform(ks[3], (hidden_dim, 3 * hidden_dim), hidden_dim)
    bih = uniform(ks[4], (1, 3 * hidden_dim), hidden_dim)
    bhh = uniform(ks[5], (1, 3 * hidden_dim), hidden_dim)
    w2_t = uniform(ks[6], (hidden_dim, n_actions), hidden_dim)
    b2 = uniform(ks[7], (1, n_actions), hidden_dim)

    return dict(w1_t=w1_t, b1=b1, wih_t=wih_t, whh_t=whh_t, bih=bih, bhh=bhh,
                w2_t=w2_t, b2=b2)


def reference_rollout(inputs_seq, hidden_state, params):
    """Pure-JAX reference (PyTorch GRUCell semantics), mirroring the kernel's
    bf16 matmul operands + f32 accumulation so results are directly comparable."""
    H = params["b1"].shape[-1]
    bf = jnp.bfloat16
    w1 = params["w1_t"].astype(bf)
    wih = params["wih_t"].astype(bf)
    whh = params["whh_t"].astype(bf)
    w2 = params["w2_t"].astype(bf)

    def step(h, inp):
        x = jnp.dot(inp.astype(bf), w1, preferred_element_type=jnp.float32) + params["b1"]
        x = jnp.maximum(x, 0.0)
        gi = jnp.dot(x.astype(bf), wih, preferred_element_type=jnp.float32) + params["bih"]
        gh = jnp.dot(h.astype(bf), whh, preferred_element_type=jnp.float32) + params["bhh"]
        r = jax.nn.sigmoid(gi[:, :H] + gh[:, :H])
        z = jax.nn.sigmoid(gi[:, H:2 * H] + gh[:, H:2 * H])
        n = jnp.tanh(gi[:, 2 * H:] + r * gh[:, 2 * H:])
        h_new = (1.0 - z) * n + z * h
        q = jnp.dot(h_new.astype(bf), w2, preferred_element_type=jnp.float32) + params["b2"]
        return h_new, q

    h0 = hidden_state.reshape(-1, H).astype(jnp.float32)
    h_final, q_seq = jax.lax.scan(step, h0, inputs_seq)
    return q_seq, h_final


def _round_bf16(a):
    """Mirror the kernel's bf16 output rounding for a fair comparison."""
    return a.astype(jnp.bfloat16).astype(jnp.float32)


if __name__ == "__main__":
    # batch = agents*envs = 64, obs dim = 24, hidden_dim = 32, n_actions = 8,
    # 8 RNN steps fused into one kernel launch (single grid step).
    T, B, IN, H, A = 8, 64, 24, 32, 8

    key = jax.random.PRNGKey(0)
    k_in, k_h, k_p = jax.random.split(key, 3)

    inputs_seq = jax.random.normal(k_in, (T, B, IN), jnp.float32)
    hidden0 = jax.random.normal(k_h, (B, H), jnp.float32)
    params = init_params(k_p, IN, H, A)
    kparams = pack_params(params)

    # Fused multi-step rollout.  Default batch_block=B (nb=1) is right for
    # v5e/v6e (single TensorCore); on v7x pass batch_block=B//2 for both TCs.
    q_seq, h_final = rnn_agent_rollout(inputs_seq, hidden0, kparams, n_actions=A)
    q_seq = jax.block_until_ready(q_seq)
    h_final = jax.block_until_ready(h_final)

    q_expect, h_expect = reference_rollout(inputs_seq, hidden0, params)
    q_expect_bf = _round_bf16(q_expect)
    assert jnp.allclose(q_seq, q_expect_bf, atol=5e-3, rtol=5e-3), "q mismatch vs reference"
    assert jnp.allclose(h_final, h_expect, atol=5e-3, rtol=5e-3), "h mismatch vs reference"

    # Single-step path == the original module's forward().
    q1, h1 = rnn_agent_forward(inputs_seq[0], hidden0, kparams, n_actions=A)
    q1 = jax.block_until_ready(q1)
    q1_expect, h1_expect = reference_rollout(inputs_seq[:1], hidden0, params)
    assert jnp.allclose(q1, _round_bf16(q1_expect[0]), atol=5e-3, rtol=5e-3), \
        "single-step q mismatch"
    assert jnp.allclose(h1, h1_expect, atol=5e-3, rtol=5e-3), "single-step h mismatch"

    print("KERNEL_OK")
</pallas_src>

<mosaic_0001>
module attributes {stable_mosaic.version = 11 : i64} {
  func.func @_rnn_rollout_kernel(%arg0: i32, %arg1: memref<8x64x24xbf16, #tpu.memory_space<vmem>>, %arg2: memref<64x32xf32, #tpu.memory_space<vmem>>, %arg3: memref<24x32xbf16, #tpu.memory_space<vmem>>, %arg4: memref<1x32xf32, #tpu.memory_space<vmem>>, %arg5: memref<64x128xbf16, #tpu.memory_space<vmem>>, %arg6: memref<1x128xf32, #tpu.memory_space<vmem>>, %arg7: memref<32x128xbf16, #tpu.memory_space<vmem>>, %arg8: memref<1x128xf32, #tpu.memory_space<vmem>>, %arg9: memref<8x64x128xbf16, #tpu.memory_space<vmem>>, %arg10: memref<64x32xf32, #tpu.memory_space<vmem>>) attributes {dimension_semantics = [#tpu.dimension_semantics<parallel>], iteration_bounds = array<i64: 1>, scalar_prefetch = 0 : i64, scratch_operands = 0 : i64, tpu.core_type = #tpu.core_type<tc>, window_params = [{transform_indices = @transform_0, window_bounds = array<i64: 8, 64, 24>}, {transform_indices = @transform_1, window_bounds = array<i64: 64, 32>}, {pipeline_mode = #tpu.pipeline_mode<synchronous>, transform_indices = @transform_2, window_bounds = array<i64: 24, 32>}, {pipeline_mode = #tpu.pipeline_mode<synchronous>, transform_indices = @transform_3, window_bounds = array<i64: 1, 32>}, {pipeline_mode = #tpu.pipeline_mode<synchronous>, transform_indices = @transform_4, window_bounds = array<i64: 64, 128>}, {pipeline_mode = #tpu.pipeline_mode<synchronous>, transform_indices = @transform_5, window_bounds = array<i64: 1, 128>}, {pipeline_mode = #tpu.pipeline_mode<synchronous>, transform_indices = @transform_6, window_bounds = array<i64: 32, 128>}, {pipeline_mode = #tpu.pipeline_mode<synchronous>, transform_indices = @transform_7, window_bounds = array<i64: 1, 128>}, {transform_indices = @transform_8, window_bounds = array<i64: 8, 64, 128>}, {transform_indices = @transform_9, window_bounds = array<i64: 64, 32>}]} {
    %c0 = arith.constant 0 : index
    %c0_0 = arith.constant 0 : index
    %0 = vector.load %arg3[%c0, %c0_0] : memref<24x32xbf16, #tpu.memory_space<vmem>>, vector<24x32xbf16>
    %c0_1 = arith.constant 0 : index
    %c0_2 = arith.constant 0 : index
    %1 = vector.load %arg4[%c0_1, %c0_2] : memref<1x32xf32, #tpu.memory_space<vmem>>, vector<1x32xf32>
    %c0_3 = arith.constant 0 : index
    %c0_4 = arith.constant 0 : index
    %2 = vector.load %arg5[%c0_3, %c0_4] : memref<64x128xbf16, #tpu.memory_space<vmem>>, vector<64x128xbf16>
    %c0_5 = arith.constant 0 : index
    %c0_6 = arith.constant 0 : index
    %3 = vector.load %arg6[%c0_5, %c0_6] : memref<1x128xf32, #tpu.memory_space<vmem>>, vector<1x128xf32>
    %c0_7 = arith.constant 0 : index
    %c0_8 = arith.constant 0 : index
    %4 = vector.load %arg7[%c0_7, %c0_8] : memref<32x128xbf16, #tpu.memory_space<vmem>>, vector<32x128xbf16>
    %c0_9 = arith.constant 0 : index
    %c0_10 = arith.constant 0 : index
    %5 = vector.load %arg8[%c0_9, %c0_10] : memref<1x128xf32, #tpu.memory_space<vmem>>, vector<1x128xf32>
    %c0_11 = arith.constant 0 : index
    %c0_12 = arith.constant 0 : index
    %6 = vector.load %arg2[%c0_11, %c0_12] : memref<64x32xf32, #tpu.memory_space<vmem>>, vector<64x32xf32>
    %c0_13 = arith.constant 0 : index
    %c0_14 = arith.constant 0 : index
    %c0_15 = arith.constant 0 : index
    %7 = vector.load %arg1[%c0_13, %c0_14, %c0_15] : memref<8x64x24xbf16, #tpu.memory_space<vmem>>, vector<1x64x24xbf16>
    %8 = vector.shape_cast %7 : vector<1x64x24xbf16> to vector<64x24xbf16>
    %cst = arith.constant dense<0.000000e+00> : vector<64x32xf32>
    %9 = tpu.matmul %8, %0, %cst {dimension_numbers = #tpu.dot_dimension_numbers<[1], [0], [0], [1], [0, 0, 1, 1], [], []>} : vector<64x24xbf16>, vector<24x32xbf16>, vector<64x32xf32> -> vector<64x32xf32>
    %10 = vector.broadcast %1 : vector<1x32xf32> to vector<64x32xf32>
    %11 = arith.addf %9, %10 : vector<64x32xf32>
    %cst_16 = arith.constant 0.000000e+00 : f32
    %12 = vector.broadcast %cst_16 : f32 to vector<64x32xf32>
    %13 = arith.maximumf %11, %12 : vector<64x32xf32>
    %14 = arith.truncf %13 : vector<64x32xf32> to vector<64x32xbf16>
    %15 = arith.truncf %6 : vector<64x32xf32> to vector<64x32xbf16>
    %16 = tpu.concatenate %14, %15 in 1 : vector<64x32xbf16>, vector<64x32xbf16> -> vector<64x64xbf16>
    %cst_17 = arith.constant dense<0.000000e+00> : vector<64x128xf32>
    %17 = tpu.matmul %16, %2, %cst_17 {dimension_numbers = #tpu.dot_dimension_numbers<[1], [0], [0], [1], [0, 0, 1, 1], [], []>} : vector<64x64xbf16>, vector<64x128xbf16>, vector<64x128xf32> -> vector<64x128xf32>
    %18 = vector.broadcast %3 : vector<1x128xf32> to vector<64x128xf32>
    %19 = arith.addf %17, %18 : vector<64x128xf32>
    %20 = vector.extract_strided_slice %19 {offsets = [0, 0], sizes = [64, 32], strides = [1, 1]} : vector<64x128xf32> to vector<64x32xf32>
    %21 = arith.negf %20 : vector<64x32xf32>
    %22 = math.exp %21 : vector<64x32xf32>
    %cst_18 = arith.constant 1.000000e+00 : f32
    %23 = vector.broadcast %cst_18 : f32 to vector<64x32xf32>
    %24 = arith.addf %23, %22 : vector<64x32xf32>
    %25 = arith.divf %23, %24 : vector<64x32xf32>
    %26 = vector.extract_strided_slice %19 {offsets = [0, 32], sizes = [64, 32], strides = [1, 1]} : vector<64x128xf32> to vector<64x32xf32>
    %27 = arith.negf %26 : vector<64x32xf32>
    %28 = math.exp %27 : vector<64x32xf32>
    %cst_19 = arith.constant 1.000000e+00 : f32
    %29 = vector.broadcast %cst_19 : f32 to vector<64x32xf32>
    %30 = arith.addf %29, %28 : vector<64x32xf32>
    %31 = arith.divf %29, %30 : vector<64x32xf32>
    %32 = vector.extract_strided_slice %19 {offsets = [0, 64], sizes = [64, 32], strides = [1, 1]} : vector<64x128xf32> to vector<64x32xf32>
    %33 = vector.extract_strided_slice %19 {offsets = [0, 96], sizes = [64, 32], strides = [1, 1]} : vector<64x128xf32> to vector<64x32xf32>
    %34 = arith.mulf %25, %33 : vector<64x32xf32>
    %35 = arith.addf %32, %34 : vector<64x32xf32>
    %36 = math.tanh %35 : vector<64x32xf32>
    %cst_20 = arith.constant 1.000000e+00 : f32
    %37 = vector.broadcast %cst_20 : f32 to vector<64x32xf32>
    %38 = arith.subf %37, %31 : vector<64x32xf32>
    %39 = arith.mulf %38, %36 : vector<64x32xf32>
    %40 = arith.mulf %31, %6 : vector<64x32xf32>
    %41 = arith.addf %39, %40 : vector<64x32xf32>
    %42 = arith.truncf %41 : vector<64x32xf32> to vector<64x32xbf16>
    %cst_21 = arith.constant dense<0.000000e+00> : vector<64x128xf32>
    %43 = tpu.matmul %42, %4, %cst_21 {dimension_numbers = #tpu.dot_dimension_numbers<[1], [0], [0], [1], [0, 0, 1, 1], [], []>} : vector<64x32xbf16>, vector<32x128xbf16>, vector<64x128xf32> -> vector<64x128xf32>
    %44 = vector.broadcast %5 : vector<1x128xf32> to vector<64x128xf32>
    %45 = arith.addf %43, %44 : vector<64x128xf32>
    %46 = arith.truncf %45 : vector<64x128xf32> to vector<64x128xbf16>
    %c0_22 = arith.constant 0 : index
    %c0_23 = arith.constant 0 : index
    %c0_24 = arith.constant 0 : index
    %47 = vector.load %arg9[%c0_22, %c0_23, %c0_24] : memref<8x64x128xbf16, #tpu.memory_space<vmem>>, vector<1x64x128xbf16>
    %48 = vector.shape_cast %47 : vector<1x64x128xbf16> to vector<64x128xbf16>
    %49 = vector.shape_cast %46 : vector<64x128xbf16> to vector<1x64x128xbf16>
    tpu.vector_store %arg9[%c0_22, %c0_23, %c0_24], %49 {strides = array<i32>} : memref<8x64x128xbf16, #tpu.memory_space<vmem>>, vector<1x64x128xbf16>,
    %c1 = arith.constant 1 : index
    %c0_25 = arith.constant 0 : index
    %c0_26 = arith.constant 0 : index
    %50 = vector.load %arg1[%c1, %c0_25, %c0_26] : memref<8x64x24xbf16, #tpu.memory_space<vmem>>, vector<1x64x24xbf16>
    %51 = vector.shape_cast %50 : vector<1x64x24xbf16> to vector<64x24xbf16>
    %cst_27 = arith.constant dense<0.000000e+00> : vector<64x32xf32>
    %52 = tpu.matmul %51, %0, %cst_27 {dimension_numbers = #tpu.dot_dimension_numbers<[1], [0], [0], [1], [0, 0, 1, 1], [], []>} : vector<64x24xbf16>, vector<24x32xbf16>, vector<64x32xf32> -> vector<64x32xf32>
    %53 = vector.broadcast %1 : vector<1x32xf32> to vector<64x32xf32>
    %54 = arith.addf %52, %53 : vector<64x32xf32>
    %cst_28 = arith.constant 0.000000e+00 : f32
    %55 = vector.broadcast %cst_28 : f32 to vector<64x32xf32>
    %56 = arith.maximumf %54, %55 : vector<64x32xf32>
    %57 = arith.truncf %56 : vector<64x32xf32> to vector<64x32xbf16>
    %58 = arith.truncf %41 : vector<64x32xf32> to vector<64x32xbf16>
    %59 = tpu.concatenate %57, %58 in 1 : vector<64x32xbf16>, vector<64x32xbf16> -> vector<64x64xbf16>
    %cst_29 = arith.constant dense<0.000000e+00> : vector<64x128xf32>
    %60 = tpu.matmul %59, %2, %cst_29 {dimension_numbers = #tpu.dot_dimension_numbers<[1], [0], [0], [1], [0, 0, 1, 1], [], []>} : vector<64x64xbf16>, vector<64x128xbf16>, vector<64x128xf32> -> vector<64x128xf32>
    %61 = vector.broadcast %3 : vector<1x128xf32> to vector<64x128xf32>
    %62 = arith.addf %60, %61 : vector<64x128xf32>
    %63 = vector.extract_strided_slice %62 {offsets = [0, 0], sizes = [64, 32], strides = [1, 1]} : vector<64x128xf32> to vector<64x32xf32>
    %64 = arith.negf %63 : vector<64x32xf32>
    %65 = math.exp %64 : vector<64x32xf32>
    %cst_30 = arith.constant 1.000000e+00 : f32
    %66 = vector.broadcast %cst_30 : f32 to vector<64x32xf32>
    %67 = arith.addf %66, %65 : vector<64x32xf32>
    %68 = arith.divf %66, %67 : vector<64x32xf32>
    %69 = vector.extract_strided_slice %62 {offsets = [0, 32], sizes = [64, 32], strides = [1, 1]} : vector<64x128xf32> to vector<64x32xf32>
    %70 = arith.negf %69 : vector<64x32xf32>
    %71 = math.exp %70 : vector<64x32xf32>
    %cst_31 = arith.constant 1.000000e+00 : f32
    %72 = vector.broadcast %cst_31 : f32 to vector<64x32xf32>
    %73 = arith.addf %72, %71 : vector<64x32xf32>
    %74 = arith.divf %72, %73 : vector<64x32xf32>
    %75 = vector.extract_strided_slice %62 {offsets = [0, 64], sizes = [64, 32], strides = [1, 1]} : vector<64x128xf32> to vector<64x32xf32>
    %76 = vector.extract_strided_slice %62 {offsets = [0, 96], sizes = [64, 32], strides = [1, 1]} : vector<64x128xf32> to vector<64x32xf32>
    %77 = arith.mulf %68, %76 : vector<64x32xf32>
    %78 = arith.addf %75, %77 : vector<64x32xf32>
    %79 = math.tanh %78 : vector<64x32xf32>
    %cst_32 = arith.constant 1.000000e+00 : f32
    %80 = vector.broadcast %cst_32 : f32 to vector<64x32xf32>
    %81 = arith.subf %80, %74 : vector<64x32xf32>
    %82 = arith.mulf %81, %79 : vector<64x32xf32>
    %83 = arith.mulf %74, %41 : vector<64x32xf32>
    %84 = arith.addf %82, %83 : vector<64x32xf32>
    %85 = arith.truncf %84 : vector<64x32xf32> to vector<64x32xbf16>
    %cst_33 = arith.constant dense<0.000000e+00> : vector<64x128xf32>
    %86 = tpu.matmul %85, %4, %cst_33 {dimension_numbers = #tpu.dot_dimension_numbers<[1], [0], [0], [1], [0, 0, 1, 1], [], []>} : vector<64x32xbf16>, vector<32x128xbf16>, vector<64x128xf32> -> vector<64x128xf32>
    %87 = vector.broadcast %5 : vector<1x128xf32> to vector<64x128xf32>
    %88 = arith.addf %86, %87 : vector<64x128xf32>
    %89 = arith.truncf %88 : vector<64x128xf32> to vector<64x128xbf16>
    %c1_34 = arith.constant 1 : index
    %c0_35 = arith.constant 0 : index
    %c0_36 = arith.constant 0 : index
    %90 = vector.load %arg9[%c1_34, %c0_35, %c0_36] : memref<8x64x128xbf16, #tpu.memory_space<vmem>>, vector<1x64x128xbf16>
    %91 = vector.shape_cast %90 : vector<1x64x128xbf16> to vector<64x128xbf16>
    %92 = vector.shape_cast %89 : vector<64x128xbf16> to vector<1x64x128xbf16>
    tpu.vector_store %arg9[%c1_34, %c0_35, %c0_36], %92 {strides = array<i32>} : memref<8x64x128xbf16, #tpu.memory_space<vmem>>, vector<1x64x128xbf16>,
    %c2 = arith.constant 2 : index
    %c0_37 = arith.constant 0 : index
    %c0_38 = arith.constant 0 : index
    %93 = vector.load %arg1[%c2, %c0_37, %c0_38] : memref<8x64x24xbf16, #tpu.memory_space<vmem>>, vector<1x64x24xbf16>
    %94 = vector.shape_cast %93 : vector<1x64x24xbf16> to vector<64x24xbf16>
    %cst_39 = arith.constant dense<0.000000e+00> : vector<64x32xf32>
    %95 = tpu.matmul %94, %0, %cst_39 {dimension_numbers = #tpu.dot_dimension_numbers<[1], [0], [0], [1], [0, 0, 1, 1], [], []>} : vector<64x24xbf16>, vector<24x32xbf16>, vector<64x32xf32> -> vector<64x32xf32>
    %96 = vector.broadcast %1 : vector<1x32xf32> to vector<64x32xf32>
    %97 = arith.addf %95, %96 : vector<64x32xf32>
    %cst_40 = arith.constant 0.000000e+00 : f32
    %98 = vector.broadcast %cst_40 : f32 to vector<64x32xf32>
    %99 = arith.maximumf %97, %98 : vector<64x32xf32>
    %100 = arith.truncf %99 : vector<64x32xf32> to vector<64x32xbf16>
    %101 = arith.truncf %84 : vector<64x32xf32> to vector<64x32xbf16>
    %102 = tpu.concatenate %100, %101 in 1 : vector<64x32xbf16>, vector<64x32xbf16> -> vector<64x64xbf16>
    %cst_41 = arith.constant dense<0.000000e+00> : vector<64x128xf32>
    %103 = tpu.matmul %102, %2, %cst_41 {dimension_numbers = #tpu.dot_dimension_numbers<[1], [0], [0], [1], [0, 0, 1, 1], [], []>} : vector<64x64xbf16>, vector<64x128xbf16>, vector<64x128xf32> -> vector<64x128xf32>
    %104 = vector.broadcast %3 : vector<1x128xf32> to vector<64x128xf32>
    %105 = arith.addf %103, %104 : vector<64x128xf32>
    %106 = vector.extract_strided_slice %105 {offsets = [0, 0], sizes = [64, 32], strides = [1, 1]} : vector<64x128xf32> to vector<64x32xf32>
    %107 = arith.negf %106 : vector<64x32xf32>
    %108 = math.exp %107 : vector<64x32xf32>
    %cst_42 = arith.constant 1.000000e+00 : f32
    %109 = vector.broadcast %cst_42 : f32 to vector<64x32xf32>
    %110 = arith.addf %109, %108 : vector<64x32xf32>
    %111 = arith.divf %109, %110 : vector<64x32xf32>
    %112 = vector.extract_strided_slice %105 {offsets = [0, 32], sizes = [64, 32], strides = [1, 1]} : vector<64x128xf32> to vector<64x32xf32>
    %113 = arith.negf %112 : vector<64x32xf32>
    %114 = math.exp %113 : vector<64x32xf32>
    %cst_43 = arith.constant 1.000000e+00 : f32
    %115 = vector.broadcast %cst_43 : f32 to vector<64x32xf32>
    %116 = arith.addf %115, %114 : vector<64x32xf32>
    %117 = arith.divf %115, %116 : vector<64x32xf32>
    %118 = vector.extract_strided_slice %105 {offsets = [0, 64], sizes = [64, 32], strides = [1, 1]} : vector<64x128xf32> to vector<64x32xf32>
    %119 = vector.extract_strided_slice %105 {offsets = [0, 96], sizes = [64, 32], strides = [1, 1]} : vector<64x128xf32> to vector<64x32xf32>
    %120 = arith.mulf %111, %119 : vector<64x32xf32>
    %121 = arith.addf %118, %120 : vector<64x32xf32>
    %122 = math.tanh %121 : vector<64x32xf32>
    %cst_44 = arith.constant 1.000000e+00 : f32
    %123 = vector.broadcast %cst_44 : f32 to vector<64x32xf32>
    %124 = arith.subf %123, %117 : vector<64x32xf32>
    %125 = arith.mulf %124, %122 : vector<64x32xf32>
    %126 = arith.mulf %117, %84 : vector<64x32xf32>
    %127 = arith.addf %125, %126 : vector<64x32xf32>
    %128 = arith.truncf %127 : vector<64x32xf32> to vector<64x32xbf16>
    %cst_45 = arith.constant dense<0.000000e+00> : vector<64x128xf32>
    %129 = tpu.matmul %128, %4, %cst_45 {dimension_numbers = #tpu.dot_dimension_numbers<[1], [0], [0], [1], [0, 0, 1, 1], [], []>} : vector<64x32xbf16>, vector<32x128xbf16>, vector<64x128xf32> -> vector<64x128xf32>
    %130 = vector.broadcast %5 : vector<1x128xf32> to vector<64x128xf32>
    %131 = arith.addf %129, %130 : vector<64x128xf32>
    %132 = arith.truncf %131 : vector<64x128xf32> to vector<64x128xbf16>
    %c2_46 = arith.constant 2 : index
    %c0_47 = arith.constant 0 : index
    %c0_48 = arith.constant 0 : index
    %133 = vector.load %arg9[%c2_46, %c0_47, %c0_48] : memref<8x64x128xbf16, #tpu.memory_space<vmem>>, vector<1x64x128xbf16>
    %134 = vector.shape_cast %133 : vector<1x64x128xbf16> to vector<64x128xbf16>
    %135 = vector.shape_cast %132 : vector<64x128xbf16> to vector<1x64x128xbf16>
    tpu.vector_store %arg9[%c2_46, %c0_47, %c0_48], %135 {strides = array<i32>} : memref<8x64x128xbf16, #tpu.memory_space<vmem>>, vector<1x64x128xbf16>,
    %c3 = arith.constant 3 : index
    %c0_49 = arith.constant 0 : index
    %c0_50 = arith.constant 0 : index
    %136 = vector.load %arg1[%c3, %c0_49, %c0_50] : memref<8x64x24xbf16, #tpu.memory_space<vmem>>, vector<1x64x24xbf16>
    %137 = vector.shape_cast %136 : vector<1x64x24xbf16> to vector<64x24xbf16>
    %cst_51 = arith.constant dense<0.000000e+00> : vector<64x32xf32>
    %138 = tpu.matmul %137, %0, %cst_51 {dimension_numbers = #tpu.dot_dimension_numbers<[1], [0], [0], [1], [0, 0, 1, 1], [], []>} : vector<64x24xbf16>, vector<24x32xbf16>, vector<64x32xf32> -> vector<64x32xf32>
    %139 = vector.broadcast %1 : vector<1x32xf32> to vector<64x32xf32>
    %140 = arith.addf %138, %139 : vector<64x32xf32>
    %cst_52 = arith.constant 0.000000e+00 : f32
    %141 = vector.broadcast %cst_52 : f32 to vector<64x32xf32>
    %142 = arith.maximumf %140, %141 : vector<64x32xf32>
    %143 = arith.truncf %142 : vector<64x32xf32> to vector<64x32xbf16>
    %144 = arith.truncf %127 : vector<64x32xf32> to vector<64x32xbf16>
    %145 = tpu.concatenate %143, %144 in 1 : vector<64x32xbf16>, vector<64x32xbf16> -> vector<64x64xbf16>
    %cst_53 = arith.constant dense<0.000000e+00> : vector<64x128xf32>
    %146 = tpu.matmul %145, %2, %cst_53 {dimension_numbers = #tpu.dot_dimension_numbers<[1], [0], [0], [1], [0, 0, 1, 1], [], []>} : vector<64x64xbf16>, vector<64x128xbf16>, vector<64x128xf32> -> vector<64x128xf32>
    %147 = vector.broadcast %3 : vector<1x128xf32> to vector<64x128xf32>
    %148 = arith.addf %146, %147 : vector<64x128xf32>
    %149 = vector.extract_strided_slice %148 {offsets = [0, 0], sizes = [64, 32], strides = [1, 1]} : vector<64x128xf32> to vector<64x32xf32>
    %150 = arith.negf %149 : vector<64x32xf32>
    %151 = math.exp %150 : vector<64x32xf32>
    %cst_54 = arith.constant 1.000000e+00 : f32
    %152 = vector.broadcast %cst_54 : f32 to vector<64x32xf32>
    %153 = arith.addf %152, %151 : vector<64x32xf32>
    %154 = arith.divf %152, %153 : vector<64x32xf32>
    %155 = vector.extract_strided_slice %148 {offsets = [0, 32], sizes = [64, 32], strides = [1, 1]} : vector<64x128xf32> to vector<64x32xf32>
    %156 = arith.negf %155 : vector<64x32xf32>
    %157 = math.exp %156 : vector<64x32xf32>
    %cst_55 = arith.constant 1.000000e+00 : f32
    %158 = vector.broadcast %cst_55 : f32 to vector<64x32xf32>
    %159 = arith.addf %158, %157 : vector<64x32xf32>
    %160 = arith.divf %158, %159 : vector<64x32xf32>
    %161 = vector.extract_strided_slice %148 {offsets = [0, 64], sizes = [64, 32], strides = [1, 1]} : vector<64x128xf32> to vector<64x32xf32>
    %162 = vector.extract_strided_slice %148 {offsets = [0, 96], sizes = [64, 32], strides = [1, 1]} : vector<64x128xf32> to vector<64x32xf32>
    %163 = arith.mulf %154, %162 : vector<64x32xf32>
    %164 = arith.addf %161, %163 : vector<64x32xf32>
    %165 = math.tanh %164 : vector<64x32xf32>
    %cst_56 = arith.constant 1.000000e+00 : f32
    %166 = vector.broadcast %cst_56 : f32 to vector<64x32xf32>
    %167 = arith.subf %166, %160 : vector<64x32xf32>
    %168 = arith.mulf %167, %165 : vector<64x32xf32>
    %169 = arith.mulf %160, %127 : vector<64x32xf32>
    %170 = arith.addf %168, %169 : vector<64x32xf32>
    %171 = arith.truncf %170 : vector<64x32xf32> to vector<64x32xbf16>
    %cst_57 = arith.constant dense<0.000000e+00> : vector<64x128xf32>
    %172 = tpu.matmul %171, %4, %cst_57 {dimension_numbers = #tpu.dot_dimension_numbers<[1], [0], [0], [1], [0, 0, 1, 1], [], []>} : vector<64x32xbf16>, vector<32x128xbf16>, vector<64x128xf32> -> vector<64x128xf32>
    %173 = vector.broadcast %5 : vector<1x128xf32> to vector<64x128xf32>
    %174 = arith.addf %172, %173 : vector<64x128xf32>
    %175 = arith.truncf %174 : vector<64x128xf32> to vector<64x128xbf16>
    %c3_58 = arith.constant 3 : index
    %c0_59 = arith.constant 0 : index
    %c0_60 = arith.constant 0 : index
    %176 = vector.load %arg9[%c3_58, %c0_59, %c0_60] : memref<8x64x128xbf16, #tpu.memory_space<vmem>>, vector<1x64x128xbf16>
    %177 = vector.shape_cast %176 : vector<1x64x128xbf16> to vector<64x128xbf16>
    %178 = vector.shape_cast %175 : vector<64x128xbf16> to vector<1x64x128xbf16>
    tpu.vector_store %arg9[%c3_58, %c0_59, %c0_60], %178 {strides = array<i32>} : memref<8x64x128xbf16, #tpu.memory_space<vmem>>, vector<1x64x128xbf16>,
    %c4 = arith.constant 4 : index
    %c0_61 = arith.constant 0 : index
    %c0_62 = arith.constant 0 : index
    %179 = vector.load %arg1[%c4, %c0_61, %c0_62] : memref<8x64x24xbf16, #tpu.memory_space<vmem>>, vector<1x64x24xbf16>
    %180 = vector.shape_cast %179 : vector<1x64x24xbf16> to vector<64x24xbf16>
    %cst_63 = arith.constant dense<0.000000e+00> : vector<64x32xf32>
    %181 = tpu.matmul %180, %0, %cst_63 {dimension_numbers = #tpu.dot_dimension_numbers<[1], [0], [0], [1], [0, 0, 1, 1], [], []>} : vector<64x24xbf16>, vector<24x32xbf16>, vector<64x32xf32> -> vector<64x32xf32>
    %182 = vector.broadcast %1 : vector<1x32xf32> to vector<64x32xf32>
    %183 = arith.addf %181, %182 : vector<64x32xf32>
    %cst_64 = arith.constant 0.000000e+00 : f32
    %184 = vector.broadcast %cst_64 : f32 to vector<64x32xf32>
    %185 = arith.maximumf %183, %184 : vector<64x32xf32>
    %186 = arith.truncf %185 : vector<64x32xf32> to vector<64x32xbf16>
    %187 = arith.truncf %170 : vector<64x32xf32> to vector<64x32xbf16>
    %188 = tpu.concatenate %186, %187 in 1 : vector<64x32xbf16>, vector<64x32xbf16> -> vector<64x64xbf16>
    %cst_65 = arith.constant dense<0.000000e+00> : vector<64x128xf32>
    %189 = tpu.matmul %188, %2, %cst_65 {dimension_numbers = #tpu.dot_dimension_numbers<[1], [0], [0], [1], [0, 0, 1, 1], [], []>} : vector<64x64xbf16>, vector<64x128xbf16>, vector<64x128xf32> -> vector<64x128xf32>
    %190 = vector.broadcast %3 : vector<1x128xf32> to vector<64x128xf32>
    %191 = arith.addf %189, %190 : vector<64x128xf32>
    %192 = vector.extract_strided_slice %191 {offsets = [0, 0], sizes = [64, 32], strides = [1, 1]} : vector<64x128xf32> to vector<64x32xf32>
    %193 = arith.negf %192 : vector<64x32xf32>
    %194 = math.exp %193 : vector<64x32xf32>
    %cst_66 = arith.constant 1.000000e+00 : f32
    %195 = vector.broadcast %cst_66 : f32 to vector<64x32xf32>
    %196 = arith.addf %195, %194 : vector<64x32xf32>
    %197 = arith.divf %195, %196 : vector<64x32xf32>
    %198 = vector.extract_strided_slice %191 {offsets = [0, 32], sizes = [64, 32], strides = [1, 1]} : vector<64x128xf32> to vector<64x32xf32>
    %199 = arith.negf %198 : vector<64x32xf32>
    %200 = math.exp %199 : vector<64x32xf32>
    %cst_67 = arith.constant 1.000000e+00 : f32
    %201 = vector.broadcast %cst_67 : f32 to vector<64x32xf32>
    %202 = arith.addf %201, %200 : vector<64x32xf32>
    %203 = arith.divf %201, %202 : vector<64x32xf32>
    %204 = vector.extract_strided_slice %191 {offsets = [0, 64], sizes = [64, 32], strides = [1, 1]} : vector<64x128xf32> to vector<64x32xf32>
    %205 = vector.extract_strided_slice %191 {offsets = [0, 96], sizes = [64, 32], strides = [1, 1]} : vector<64x128xf32> to vector<64x32xf32>
    %206 = arith.mulf %197, %205 : vector<64x32xf32>
    %207 = arith.addf %204, %206 : vector<64x32xf32>
    %208 = math.tanh %207 : vector<64x32xf32>
    %cst_68 = arith.constant 1.000000e+00 : f32
    %209 = vector.broadcast %cst_68 : f32 to vector<64x32xf32>
    %210 = arith.subf %209, %203 : vector<64x32xf32>
    %211 = arith.mulf %210, %208 : vector<64x32xf32>
    %212 = arith.mulf %203, %170 : vector<64x32xf32>
    %213 = arith.addf %211, %212 : vector<64x32xf32>
    %214 = arith.truncf %213 : vector<64x32xf32> to vector<64x32xbf16>
    %cst_69 = arith.constant dense<0.000000e+00> : vector<64x128xf32>
    %215 = tpu.matmul %214, %4, %cst_69 {dimension_numbers = #tpu.dot_dimension_numbers<[1], [0], [0], [1], [0, 0, 1, 1], [], []>} : vector<64x32xbf16>, vector<32x128xbf16>, vector<64x128xf32> -> vector<64x128xf32>
    %216 = vector.broadcast %5 : vector<1x128xf32> to vector<64x128xf32>
    %217 = arith.addf %215, %216 : vector<64x128xf32>
    %218 = arith.truncf %217 : vector<64x128xf32> to vector<64x128xbf16>
    %c4_70 = arith.constant 4 : index
    %c0_71 = arith.constant 0 : index
    %c0_72 = arith.constant 0 : index
    %219 = vector.load %arg9[%c4_70, %c0_71, %c0_72] : memref<8x64x128xbf16, #tpu.memory_space<vmem>>, vector<1x64x128xbf16>
    %220 = vector.shape_cast %219 : vector<1x64x128xbf16> to vector<64x128xbf16>
    %221 = vector.shape_cast %218 : vector<64x128xbf16> to vector<1x64x128xbf16>
    tpu.vector_store %arg9[%c4_70, %c0_71, %c0_72], %221 {strides = array<i32>} : memref<8x64x128xbf16, #tpu.memory_space<vmem>>, vector<1x64x128xbf16>,
    %c5 = arith.constant 5 : index
    %c0_73 = arith.constant 0 : index
    %c0_74 = arith.constant 0 : index
    %222 = vector.load %arg1[%c5, %c0_73, %c0_74] : memref<8x64x24xbf16, #tpu.memory_space<vmem>>, vector<1x64x24xbf16>
    %223 = vector.shape_cast %222 : vector<1x64x24xbf16> to vector<64x24xbf16>
    %cst_75 = arith.constant dense<0.000000e+00> : vector<64x32xf32>
    %224 = tpu.matmul %223, %0, %cst_75 {dimension_numbers = #tpu.dot_dimension_numbers<[1], [0], [0], [1], [0, 0, 1, 1], [], []>} : vector<64x24xbf16>, vector<24x32xbf16>, vector<64x32xf32> -> vector<64x32xf32>
    %225 = vector.broadcast %1 : vector<1x32xf32> to vector<64x32xf32>
    %226 = arith.addf %224, %225 : vector<64x32xf32>
    %cst_76 = arith.constant 0.000000e+00 : f32
    %227 = vector.broadcast %cst_76 : f32 to vector<64x32xf32>
    %228 = arith.maximumf %226, %227 : vector<64x32xf32>
    %229 = arith.truncf %228 : vector<64x32xf32> to vector<64x32xbf16>
    %230 = arith.truncf %213 : vector<64x32xf32> to vector<64x32xbf16>
    %231 = tpu.concatenate %229, %230 in 1 : vector<64x32xbf16>, vector<64x32xbf16> -> vector<64x64xbf16>
    %cst_77 = arith.constant dense<0.000000e+00> : vector<64x128xf32>
    %232 = tpu.matmul %231, %2, %cst_77 {dimension_numbers = #tpu.dot_dimension_numbers<[1], [0], [0], [1], [0, 0, 1, 1], [], []>} : vector<64x64xbf16>, vector<64x128xbf16>, vector<64x128xf32> -> vector<64x128xf32>
    %233 = vector.broadcast %3 : vector<1x128xf32> to vector<64x128xf32>
    %234 = arith.addf %232, %233 : vector<64x128xf32>
    %235 = vector.extract_strided_slice %234 {offsets = [0, 0], sizes = [64, 32], strides = [1, 1]} : vector<64x128xf32> to vector<64x32xf32>
    %236 = arith.negf %235 : vector<64x32xf32>
    %237 = math.exp %236 : vector<64x32xf32>
    %cst_78 = arith.constant 1.000000e+00 : f32
    %238 = vector.broadcast %cst_78 : f32 to vector<64x32xf32>
    %239 = arith.addf %238, %237 : vector<64x32xf32>
    %240 = arith.divf %238, %239 : vector<64x32xf32>
    %241 = vector.extract_strided_slice %234 {offsets = [0, 32], sizes = [64, 32], strides = [1, 1]} : vector<64x128xf32> to vector<64x32xf32>
    %242 = arith.negf %241 : vector<64x32xf32>
    %243 = math.exp %242 : vector<64x32xf32>
    %cst_79 = arith.constant 1.000000e+00 : f32
    %244 = vector.broadcast %cst_79 : f32 to vector<64x32xf32>
    %245 = arith.addf %244, %243 : vector<64x32xf32>
    %246 = arith.divf %244, %245 : vector<64x32xf32>
    %247 = vector.extract_strided_slice %234 {offsets = [0, 64], sizes = [64, 32], strides = [1, 1]} : vector<64x128xf32> to vector<64x32xf32>
    %248 = vector.extract_strided_slice %234 {offsets = [0, 96], sizes = [64, 32], strides = [1, 1]} : vector<64x128xf32> to vector<64x32xf32>
    %249 = arith.mulf %240, %248 : vector<64x32xf32>
    %250 = arith.addf %247, %249 : vector<64x32xf32>
    %251 = math.tanh %250 : vector<64x32xf32>
    %cst_80 = arith.constant 1.000000e+00 : f32
    %252 = vector.broadcast %cst_80 : f32 to vector<64x32xf32>
    %253 = arith.subf %252, %246 : vector<64x32xf32>
    %254 = arith.mulf %253, %251 : vector<64x32xf32>
    %255 = arith.mulf %246, %213 : vector<64x32xf32>
    %256 = arith.addf %254, %255 : vector<64x32xf32>
    %257 = arith.truncf %256 : vector<64x32xf32> to vector<64x32xbf16>
    %cst_81 = arith.constant dense<0.000000e+00> : vector<64x128xf32>
    %258 = tpu.matmul %257, %4, %cst_81 {dimension_numbers = #tpu.dot_dimension_numbers<[1], [0], [0], [1], [0, 0, 1, 1], [], []>} : vector<64x32xbf16>, vector<32x128xbf16>, vector<64x128xf32> -> vector<64x128xf32>
    %259 = vector.broadcast %5 : vector<1x128xf32> to vector<64x128xf32>
    %260 = arith.addf %258, %259 : vector<64x128xf32>
    %261 = arith.truncf %260 : vector<64x128xf32> to vector<64x128xbf16>
    %c5_82 = arith.constant 5 : index
    %c0_83 = arith.constant 0 : index
    %c0_84 = arith.constant 0 : index
    %262 = vector.load %arg9[%c5_82, %c0_83, %c0_84] : memref<8x64x128xbf16, #tpu.memory_space<vmem>>, vector<1x64x128xbf16>
    %263 = vector.shape_cast %262 : vector<1x64x128xbf16> to vector<64x128xbf16>
    %264 = vector.shape_cast %261 : vector<64x128xbf16> to vector<1x64x128xbf16>
    tpu.vector_store %arg9[%c5_82, %c0_83, %c0_84], %264 {strides = array<i32>} : memref<8x64x128xbf16, #tpu.memory_space<vmem>>, vector<1x64x128xbf16>,
    %c6 = arith.constant 6 : index
    %c0_85 = arith.constant 0 : index
    %c0_86 = arith.constant 0 : index
    %265 = vector.load %arg1[%c6, %c0_85, %c0_86] : memref<8x64x24xbf16, #tpu.memory_space<vmem>>, vector<1x64x24xbf16>
    %266 = vector.shape_cast %265 : vector<1x64x24xbf16> to vector<64x24xbf16>
    %cst_87 = arith.constant dense<0.000000e+00> : vector<64x32xf32>
    %267 = tpu.matmul %266, %0, %cst_87 {dimension_numbers = #tpu.dot_dimension_numbers<[1], [0], [0], [1], [0, 0, 1, 1], [], []>} : vector<64x24xbf16>, vector<24x32xbf16>, vector<64x32xf32> -> vector<64x32xf32>
    %268 = vector.broadcast %1 : vector<1x32xf32> to vector<64x32xf32>
    %269 = arith.addf %267, %268 : vector<64x32xf32>
    %cst_88 = arith.constant 0.000000e+00 : f32
    %270 = vector.broadcast %cst_88 : f32 to vector<64x32xf32>
    %271 = arith.maximumf %269, %270 : vector<64x32xf32>
    %272 = arith.truncf %271 : vector<64x32xf32> to vector<64x32xbf16>
    %273 = arith.truncf %256 : vector<64x32xf32> to vector<64x32xbf16>
    %274 = tpu.concatenate %272, %273 in 1 : vector<64x32xbf16>, vector<64x32xbf16> -> vector<64x64xbf16>
    %cst_89 = arith.constant dense<0.000000e+00> : vector<64x128xf32>
    %275 = tpu.matmul %274, %2, %cst_89 {dimension_numbers = #tpu.dot_dimension_numbers<[1], [0], [0], [1], [0, 0, 1, 1], [], []>} : vector<64x64xbf16>, vector<64x128xbf16>, vector<64x128xf32> -> vector<64x128xf32>
    %276 = vector.broadcast %3 : vector<1x128xf32> to vector<64x128xf32>
    %277 = arith.addf %275, %276 : vector<64x128xf32>
    %278 = vector.extract_strided_slice %277 {offsets = [0, 0], sizes = [64, 32], strides = [1, 1]} : vector<64x128xf32> to vector<64x32xf32>
    %279 = arith.negf %278 : vector<64x32xf32>
    %280 = math.exp %279 : vector<64x32xf32>
    %cst_90 = arith.constant 1.000000e+00 : f32
    %281 = vector.broadcast %cst_90 : f32 to vector<64x32xf32>
    %282 = arith.addf %281, %280 : vector<64x32xf32>
    %283 = arith.divf %281, %282 : vector<64x32xf32>
    %284 = vector.extract_strided_slice %277 {offsets = [0, 32], sizes = [64, 32], strides = [1, 1]} : vector<64x128xf32> to vector<64x32xf32>
    %285 = arith.negf %284 : vector<64x32xf32>
    %286 = math.exp %285 : vector<64x32xf32>
    %cst_91 = arith.constant 1.000000e+00 : f32
    %287 = vector.broadcast %cst_91 : f32 to vector<64x32xf32>
    %288 = arith.addf %287, %286 : vector<64x32xf32>
    %289 = arith.divf %287, %288 : vector<64x32xf32>
    %290 = vector.extract_strided_slice %277 {offsets = [0, 64], sizes = [64, 32], strides = [1, 1]} : vector<64x128xf32> to vector<64x32xf32>
    %291 = vector.extract_strided_slice %277 {offsets = [0, 96], sizes = [64, 32], strides = [1, 1]} : vector<64x128xf32> to vector<64x32xf32>
    %292 = arith.mulf %283, %291 : vector<64x32xf32>
    %293 = arith.addf %290, %292 : vector<64x32xf32>
    %294 = math.tanh %293 : vector<64x32xf32>
    %cst_92 = arith.constant 1.000000e+00 : f32
    %295 = vector.broadcast %cst_92 : f32 to vector<64x32xf32>
    %296 = arith.subf %295, %289 : vector<64x32xf32>
    %297 = arith.mulf %296, %294 : vector<64x32xf32>
    %298 = arith.mulf %289, %256 : vector<64x32xf32>
    %299 = arith.addf %297, %298 : vector<64x32xf32>
    %300 = arith.truncf %299 : vector<64x32xf32> to vector<64x32xbf16>
    %cst_93 = arith.constant dense<0.000000e+00> : vector<64x128xf32>
    %301 = tpu.matmul %300, %4, %cst_93 {dimension_numbers = #tpu.dot_dimension_numbers<[1], [0], [0], [1], [0, 0, 1, 1], [], []>} : vector<64x32xbf16>, vector<32x128xbf16>, vector<64x128xf32> -> vector<64x128xf32>
    %302 = vector.broadcast %5 : vector<1x128xf32> to vector<64x128xf32>
    %303 = arith.addf %301, %302 : vector<64x128xf32>
    %304 = arith.truncf %303 : vector<64x128xf32> to vector<64x128xbf16>
    %c6_94 = arith.constant 6 : index
    %c0_95 = arith.constant 0 : index
    %c0_96 = arith.constant 0 : index
    %305 = vector.load %arg9[%c6_94, %c0_95, %c0_96] : memref<8x64x128xbf16, #tpu.memory_space<vmem>>, vector<1x64x128xbf16>
    %306 = vector.shape_cast %305 : vector<1x64x128xbf16> to vector<64x128xbf16>
    %307 = vector.shape_cast %304 : vector<64x128xbf16> to vector<1x64x128xbf16>
    tpu.vector_store %arg9[%c6_94, %c0_95, %c0_96], %307 {strides = array<i32>} : memref<8x64x128xbf16, #tpu.memory_space<vmem>>, vector<1x64x128xbf16>,
    %c7 = arith.constant 7 : index
    %c0_97 = arith.constant 0 : index
    %c0_98 = arith.constant 0 : index
    %308 = vector.load %arg1[%c7, %c0_97, %c0_98] : memref<8x64x24xbf16, #tpu.memory_space<vmem>>, vector<1x64x24xbf16>
    %309 = vector.shape_cast %308 : vector<1x64x24xbf16> to vector<64x24xbf16>
    %cst_99 = arith.constant dense<0.000000e+00> : vector<64x32xf32>
    %310 = tpu.matmul %309, %0, %cst_99 {dimension_numbers = #tpu.dot_dimension_numbers<[1], [0], [0], [1], [0, 0, 1, 1], [], []>} : vector<64x24xbf16>, vector<24x32xbf16>, vector<64x32xf32> -> vector<64x32xf32>
    %311 = vector.broadcast %1 : vector<1x32xf32> to vector<64x32xf32>
    %312 = arith.addf %310, %311 : vector<64x32xf32>
    %cst_100 = arith.constant 0.000000e+00 : f32
    %313 = vector.broadcast %cst_100 : f32 to vector<64x32xf32>
    %314 = arith.maximumf %312, %313 : vector<64x32xf32>
    %315 = arith.truncf %314 : vector<64x32xf32> to vector<64x32xbf16>
    %316 = arith.truncf %299 : vector<64x32xf32> to vector<64x32xbf16>
    %317 = tpu.concatenate %315, %316 in 1 : vector<64x32xbf16>, vector<64x32xbf16> -> vector<64x64xbf16>
    %cst_101 = arith.constant dense<0.000000e+00> : vector<64x128xf32>
    %318 = tpu.matmul %317, %2, %cst_101 {dimension_numbers = #tpu.dot_dimension_numbers<[1], [0], [0], [1], [0, 0, 1, 1], [], []>} : vector<64x64xbf16>, vector<64x128xbf16>, vector<64x128xf32> -> vector<64x128xf32>
    %319 = vector.broadcast %3 : vector<1x128xf32> to vector<64x128xf32>
    %320 = arith.addf %318, %319 : vector<64x128xf32>
    %321 = vector.extract_strided_slice %320 {offsets = [0, 0], sizes = [64, 32], strides = [1, 1]} : vector<64x128xf32> to vector<64x32xf32>
    %322 = arith.negf %321 : vector<64x32xf32>
    %323 = math.exp %322 : vector<64x32xf32>
    %cst_102 = arith.constant 1.000000e+00 : f32
    %324 = vector.broadcast %cst_102 : f32 to vector<64x32xf32>
    %325 = arith.addf %324, %323 : vector<64x32xf32>
    %326 = arith.divf %324, %325 : vector<64x32xf32>
    %327 = vector.extract_strided_slice %320 {offsets = [0, 32], sizes = [64, 32], strides = [1, 1]} : vector<64x128xf32> to vector<64x32xf32>
    %328 = arith.negf %327 : vector<64x32xf32>
    %329 = math.exp %328 : vector<64x32xf32>
    %cst_103 = arith.constant 1.000000e+00 : f32
    %330 = vector.broadcast %cst_103 : f32 to vector<64x32xf32>
    %331 = arith.addf %330, %329 : vector<64x32xf32>
    %332 = arith.divf %330, %331 : vector<64x32xf32>
    %333 = vector.extract_strided_slice %320 {offsets = [0, 64], sizes = [64, 32], strides = [1, 1]} : vector<64x128xf32> to vector<64x32xf32>
    %334 = vector.extract_strided_slice %320 {offsets = [0, 96], sizes = [64, 32], strides = [1, 1]} : vector<64x128xf32> to vector<64x32xf32>
    %335 = arith.mulf %326, %334 : vector<64x32xf32>
    %336 = arith.addf %333, %335 : vector<64x32xf32>
    %337 = math.tanh %336 : vector<64x32xf32>
    %cst_104 = arith.constant 1.000000e+00 : f32
    %338 = vector.broadcast %cst_104 : f32 to vector<64x32xf32>
    %339 = arith.subf %338, %332 : vector<64x32xf32>
    %340 = arith.mulf %339, %337 : vector<64x32xf32>
    %341 = arith.mulf %332, %299 : vector<64x32xf32>
    %342 = arith.addf %340, %341 : vector<64x32xf32>
    %343 = arith.truncf %342 : vector<64x32xf32> to vector<64x32xbf16>
    %cst_105 = arith.constant dense<0.000000e+00> : vector<64x128xf32>
    %344 = tpu.matmul %343, %4, %cst_105 {dimension_numbers = #tpu.dot_dimension_numbers<[1], [0], [0], [1], [0, 0, 1, 1], [], []>} : vector<64x32xbf16>, vector<32x128xbf16>, vector<64x128xf32> -> vector<64x128xf32>
    %345 = vector.broadcast %5 : vector<1x128xf32> to vector<64x128xf32>
    %346 = arith.addf %344, %345 : vector<64x128xf32>
    %347 = arith.truncf %346 : vector<64x128xf32> to vector<64x128xbf16>
    %c7_106 = arith.constant 7 : index
    %c0_107 = arith.constant 0 : index
    %c0_108 = arith.constant 0 : index
    %348 = vector.load %arg9[%c7_106, %c0_107, %c0_108] : memref<8x64x128xbf16, #tpu.memory_space<vmem>>, vector<1x64x128xbf16>
    %349 = vector.shape_cast %348 : vector<1x64x128xbf16> to vector<64x128xbf16>
    %350 = vector.shape_cast %347 : vector<64x128xbf16> to vector<1x64x128xbf16>
    tpu.vector_store %arg9[%c7_106, %c0_107, %c0_108], %350 {strides = array<i32>} : memref<8x64x128xbf16, #tpu.memory_space<vmem>>, vector<1x64x128xbf16>,
    %c0_109 = arith.constant 0 : index
    %c0_110 = arith.constant 0 : index
    %351 = vector.load %arg10[%c0_109, %c0_110] : memref<64x32xf32, #tpu.memory_space<vmem>>, vector<64x32xf32>
    tpu.vector_store %arg10[%c0_109, %c0_110], %342 {strides = array<i32>} : memref<64x32xf32, #tpu.memory_space<vmem>>, vector<64x32xf32>,
    return
  }
  func.func @transform_0(%arg0: i32) -> (i32, i32, i32) {
    %c0_i32 = arith.constant 0 : i32
    %c0_i32_0 = arith.constant 0 : i32
    %c0_i32_1 = arith.constant 0 : i32
    return %c0_i32, %arg0, %c0_i32_0 : i32, i32, i32
  }
  func.func @transform_1(%arg0: i32) -> (i32, i32) {
    %c0_i32 = arith.constant 0 : i32
    %c0_i32_0 = arith.constant 0 : i32
    return %arg0, %c0_i32 : i32, i32
  }
  func.func @transform_2(%arg0: i32) -> (i32, i32) {
    %c0_i32 = arith.constant 0 : i32
    %c0_i32_0 = arith.constant 0 : i32
    %c0_i32_1 = arith.constant 0 : i32
    return %c0_i32, %c0_i32_0 : i32, i32
  }
  func.func @transform_3(%arg0: i32) -> (i32, i32) {
    %c0_i32 = arith.constant 0 : i32
    %c0_i32_0 = arith.constant 0 : i32
    %c0_i32_1 = arith.constant 0 : i32
    return %c0_i32, %c0_i32_0 : i32, i32
  }
  func.func @transform_4(%arg0: i32) -> (i32, i32) {
    %c0_i32 = arith.constant 0 : i32
    %c0_i32_0 = arith.constant 0 : i32
    %c0_i32_1 = arith.constant 0 : i32
    return %c0_i32, %c0_i32_0 : i32, i32
  }
  func.func @transform_5(%arg0: i32) -> (i32, i32) {
    %c0_i32 = arith.constant 0 : i32
    %c0_i32_0 = arith.constant 0 : i32
    %c0_i32_1 = arith.constant 0 : i32
    return %c0_i32, %c0_i32_0 : i32, i32
  }
  func.func @transform_6(%arg0: i32) -> (i32, i32) {
    %c0_i32 = arith.constant 0 : i32
    %c0_i32_0 = arith.constant 0 : i32
    %c0_i32_1 = arith.constant 0 : i32
    return %c0_i32, %c0_i32_0 : i32, i32
  }
  func.func @transform_7(%arg0: i32) -> (i32, i32) {
    %c0_i32 = arith.constant 0 : i32
    %c0_i32_0 = arith.constant 0 : i32
    %c0_i32_1 = arith.constant 0 : i32
    return %c0_i32, %c0_i32_0 : i32, i32
  }
  func.func @transform_8(%arg0: i32) -> (i32, i32, i32) {
    %c0_i32 = arith.constant 0 : i32
    %c0_i32_0 = arith.constant 0 : i32
    %c0_i32_1 = arith.constant 0 : i32
    return %c0_i32, %arg0, %c0_i32_0 : i32, i32, i32
  }
  func.func @transform_9(%arg0: i32) -> (i32, i32) {
    %c0_i32 = arith.constant 0 : i32
    %c0_i32_0 = arith.constant 0 : i32
    return %arg0, %c0_i32 : i32, i32
  }
}

</mosaic_0001>

<bundles_post_ra>
// kernel: rnn_agent_rollout.1
= control target key start
LH: loop header
LB: loop body
LE: loop exit
PB: predicated region body
PF: predicated region fallthrough
CT: control target
= control target key end

     0   :  { %vm114_vm0 = vcmask 1043456   ;;  %vm101_vm1 = vcmask 195584   ;;  %s6098_s14 = smov 32   ;;  %vm211_vm2 = vcmask 261120   ;;  %vm254_vm3 = vcmask 523264   ;;  %s6099_s16 = smov 64   ;;  %s8276_s2 = inlined_call_operand.vmem [shape: bf16[24,32], index: 2, kind: input, shape index: {}]   ;;  %s8277_s0 = inlined_call_operand.vmem [shape: bf16[8,64,24], index: 0, kind: input, shape index: {}]   ;;  %s8278_s1 = inlined_call_operand.vmem [shape: f32[64,32], index: 1, kind: input, shape index: {}]   ;;  %s8279_s4 = inlined_call_operand.vmem [shape: bf16[64,128], index: 4, kind: input, shape index: {}]   ;;  %s8280_s3 = inlined_call_operand.vmem [shape: f32[1,32], index: 3, kind: input, shape index: {}]   ;;  %s8281_s5 = inlined_call_operand.vmem [shape: f32[1,128], index: 5, kind: input, shape index: {}]   ;;  %s8282_s6 = inlined_call_operand.vmem [shape: bf16[32,128], index: 6, kind: input, shape index: {}]   ;;  %s8283_s7 = inlined_call_operand.vmem [shape: f32[1,128], index: 7, kind: input, shape index: {}]   ;;  %s8284_s8 = inlined_call_operand.vmem [shape: bf16[8,64,128], index: 8, kind: output, shape index: {0}]   ;;  %s8285_s9 = inlined_call_operand.vmem [shape: f32[64,32], index: 9, kind: output, shape index: {1}]  }
   0x1   :  { %v6154_v0 = vld [vmem:[%s8276_s2] sm:$0xff]   ;;  %v6159_v1 = vld [vmem:[%s8276_s2 + $0x8] ss:$0 sps:$4 sm:$0xff]   ;;  %v5647_v5 = vld [vmem:[%s8277_s0 + $0x10] sm:$0xff]  }
   0x2   :  { %5312 = vmatprep.subr.bf16.mxu0 %v6154_v0  ;;  %v5645_v2 = vld [vmem:[%s8277_s0] sm:$0xff]   ;;  %v6170_v3 = vsel %vm114_vm0, %v6159_v1, 0  ;;  %v5646_v4 = vld [vmem:[%s8277_s0 + $0x8] sm:$0xff]   ;;  %v6192_v8 = vld [vmem:[%s8278_s1 + $0x10] sm:$0xff] }
   0x3   :  { %5313 = vmatpush3.bf16.msra.mxu0 %v6154_v0  ;;  %5316 = vmatprep.mubr.msk.bf16.mxu0 %vm101_vm1, %v5645_v2  ;;  %v6182_v6 = vld [vmem:[%s8278_s1] sm:$0xff]  ;;  %v6187_v7 = vld [vmem:[%s8278_s1 + $0x8] sm:$0xff]  ;;  %v6197_v9 = vld [vmem:[%s8278_s1 + $0x18] sm:$0xff] }
   0x4   :  { %5632 = vmatprep.subr.msk.bf16.mxu0 %vm114_vm0, %v6159_v1  ;;  %v195_v10 = vpack.c.bf16 %v6187_v7, %v6182_v6  ;;  %v6205_v11 = vld [vmem:[%s8278_s1 + $0x20] sm:$0xff]  ;;  %v6210_v12 = vld [vmem:[%s8278_s1 + $0x28] sm:$0xff]  ;;  %v6215_v13 = vld [vmem:[%s8278_s1 + $0x30] sm:$0xff]  ;;  %v196_v16 = vpack.c.bf16 %v6197_v9, %v6192_v8 }
   0x5   :  { %v197_v14 = vpack.c.bf16 %v6210_v12, %v6205_v11  ;;  %v6222_v15 = vld [vmem:[%s8278_s1 + $0x38] sm:$0xff]  ;;  %v6230_v17 = vld [vmem:[%s8279_s4] sm:$0xff]   ;;  %v6248_v20 = vld [vmem:[%s8279_s4 + $0x8] sm:$0xff]   ;;  %s6100_s1 = smov 96  }
   0x6   :  { %203 = vrot.lane.b32.xlu0 %v195_v10, %s6098_s14  ;;  %v198_v18 = vpack.c.bf16 %v6222_v15, %v6215_v13  ;;  %5324 = vmatprep.subr.bf16.mxu1 %v6230_v17  ;;  %v5648_v19 = vld [vmem:[%s8277_s0 + $0x18] sm:$0xff]   ;;  %v6255_v21 = vld [vmem:[%s8279_s4 + $0x10] sm:$0xff]   ;;  %v6270_v23 = vld [vmem:[%s8280_s3] ss:$0 sm:$0xff] }
   0x7   :  { %5315 = vmatpush3.bf16.msra.mxu0 %v6170_v3  ;;  %207 = vrot.lane.b32.xlu1 %v197_v14, %s6098_s14  ;;  %v6262_v22 = vld [vmem:[%s8279_s4 + $0x18] sm:$0xff]   ;;  %v6295_v60 = vld [vmem:[%s8281_s5] ss:$0 sm:$0xff] }
   0x8   :  { %5325 = vmatpush3.bf16.msra.mxu1 %v6230_v17 }
   0x9   :  { %5326 = vmatprep.subr.bf16.mxu1 %v6248_v20 }
   0xa   :  { %5317 = vmatmul.mubr.msk.bf16.vlgmr.msra.gmra.mrb[0].mxu0 %vm101_vm1, %v5646_v4  ;;  %205 = vrot.lane.b32.xlu0 %v196_v16, %s6098_s14 }
   0xb   :  { %5320 = vmatprep.mubr.msk.bf16.mxu0 %vm101_vm1, %v5647_v5  ;;  %209 = vrot.lane.b32.xlu1 %v198_v18, %s6098_s14 }
   0xc   :  { %5327 = vmatpush3.bf16.msra.mxu1 %v6248_v20 }
   0xd   :  { %5328 = vmatprep.subr.bf16.mxu1 %v6255_v21 }
  0x10   :  { %5329 = vmatpush3.bf16.msra.mxu1 %v6255_v21 }
  0x11   :  { %5330 = vmatprep.subr.bf16.mxu1 %v6262_v22 }
  0x12   :  { %5321 = vmatmul.mubr.msk.bf16.gmra.mrb[4].mxu0 %vm101_vm1, %v5648_v19 }
  0x14   :  { %5331 = vmatpush3.bf16.msra.mxu1 %v6262_v22 }
  0x15   :  { %5352 = vmatprep.subr.bf16.mxu1 %v6154_v0 }
  0x78   :  { %v204_v29 = vpop.permute.xlu0 %203 }
  0x79   :  { %v208_v46 = vpop.permute.xlu1 %207 }
  0x7c   :  { %v206_v39 = vpop.permute.xlu0 %205 }
  0x7d   :  { %v210_v57 = vpop.permute.xlu1 %209 }
  0xdd   :  { %v5318_v24 = vpop.f32.mrb[0].mxu0 }
  0xde   :  { %v161_v25 = vadd.f32 %v5318_v24, %v6270_v23  ;;  %v152_v26 = vpop.f32.mrb[1].mxu0 }
  0xdf   :  { %v153_v27 = vadd.f32 %v6270_v23, %v152_v26  ;;  %v5319_v28 = vpop.f32.mrb[2].mxu0 }
  0xe0   :  { %v164_v30 = vadd.f32 %v5319_v28, %v6270_v23  ;;  %v155_v31 = vpop.f32.mrb[3].mxu0  ;;  %v185_v33 = vmax.f32 %v161_v25, 0.0 }
  0xe1   :  { %v156_v32 = vadd.f32 %v6270_v23, %v155_v31  ;;  %v183_v35 = vmax.f32 %v153_v27, 0.0  ;;  %v5655_v31 = vld [vmem:[%s8277_s0 + $0x30] sm:$0xff]  }
  0xe2   :  { %v186_v34 = vmax.f32 %v164_v30, 0.0  ;;  %v5654_v30 = vld [vmem:[%s8277_s0 + $0x28] sm:$0xff]  }
  0xe3   :  { %v184_v36 = vmax.f32 %v156_v32, 0.0  ;;  %v5656_v32 = vld [vmem:[%s8277_s0 + $0x38] sm:$0xff]  }
  0xe4   :  { %v192_v37 = vpack.c.bf16 %v186_v34, %v185_v33 }
  0xe5   :  { %v191_v38 = vpack.c.bf16 %v184_v36, %v183_v35  ;;  %v5322_v40 = vpop.f32.mrb[4].mxu0 }
  0xe6   :  { %v177_v41 = vadd.f32 %v5322_v40, %v6270_v23  ;;  %v168_v42 = vpop.f32.mrb[5].mxu0  ;;  %v217_v47 = vsel %vm211_vm2, %v192_v37, %v206_v39 }
  0xe7   :  { %v169_v43 = vadd.f32 %v6270_v23, %v168_v42  ;;  %v5323_v44 = vpop.f32.mrb[6].mxu0  ;;  %v214_v45 = vsel %vm211_vm2, %v191_v38, %v204_v29  ;;  %v5653_v29 = vld [vmem:[%s8277_s0 + $0x20] sm:$0xff]  }
  0xe8   :  { %v180_v48 = vadd.f32 %v5323_v44, %v6270_v23  ;;  %v171_v49 = vpop.f32.mrb[7].mxu0  ;;  %5332 = vmatprep.mubr.msk.bf16.mxu1 %vm254_vm3, %v214_v45  ;;  %v189_v51 = vmax.f32 %v177_v41, 0.0 }
  0xe9   :  { %v172_v50 = vadd.f32 %v6270_v23, %v171_v49  ;;  %5333 = vmatmul.mubr.msk.bf16.vlgmr.msra.gmra.mrb[0].mxu1 %vm254_vm3, %v217_v47  ;;  %v187_v53 = vmax.f32 %v169_v43, 0.0 }
  0xea   :  { %v190_v52 = vmax.f32 %v180_v48, 0.0  ;;  %5353 = vmatpush3.bf16.msra.mxu1 %v6154_v0 }
  0xeb   :  { %v188_v54 = vmax.f32 %v172_v50, 0.0  ;;  %5633 = vmatprep.subr.msk.bf16.mxu1 %vm114_vm0, %v6159_v1 }
  0xec   :  { %v194_v55 = vpack.c.bf16 %v190_v52, %v189_v51 }
  0xed   :  { %v193_v56 = vpack.c.bf16 %v188_v54, %v187_v53 }
  0xee   :  { %5355 = vmatpush3.bf16.msra.mxu1 %v6170_v3  ;;  %v223_v59 = vsel %vm211_vm2, %v194_v55, %v210_v57 }
  0xef   :  { %v220_v58 = vsel %vm211_vm2, %v193_v56, %v208_v46 }
  0xf0   :  { %5336 = vmatprep.mubr.msk.bf16.mxu1 %vm254_vm3, %v220_v58 }
  0xf1   :  { %5337 = vmatmul.mubr.msk.bf16.gmra.mrb[4].mxu1 %vm254_vm3, %v223_v59 }
  0xf2   :  { %5356 = vmatprep.mubr.msk.bf16.mxu1 %vm101_vm1, %v5653_v29 }
  0xf9   :  { %5357 = vmatmul.mubr.msk.bf16.vlgmr.msra.gmra.mrb[8].mxu1 %vm101_vm1, %v5654_v30 }
  0xfa   :  { %5360 = vmatprep.mubr.msk.bf16.mxu1 %vm101_vm1, %v5655_v31 }
 0x101   :  { %5361 = vmatmul.mubr.msk.bf16.gmra.mrb[12].mxu1 %vm101_vm1, %v5656_v32 }
 0x1bc   :  { %v5334_v61 = vpop.f32.mrb[0].mxu1 }
 0x1bd   :  { %v297_v62 = vpop.f32.mrb[1].mxu1  ;;  %v6306_v10 = vadd.f32 %v5334_v61, %v6295_v60 }
 0x1be   :  { %v6298_v63 = vadd.f32 %v6295_v60, %v297_v62  ;;  %v5335_v2 = vpop.f32.mrb[2].mxu1 }
 0x1bf   :  { %v300_v4 = vpop.f32.mrb[3].mxu1  ;;  %v6311_v14 = vadd.f32 %v5335_v2, %v6295_v60  ;;  %v4540_v35 = vmul.f32 -1.442695, %v6306_v10 }
 0x1c0   :  { %v6301_v5 = vadd.f32 %v6295_v60, %v300_v4  ;;  %384 = vrot.lane.b32.xlu0 %v6298_v63, %s6098_s14  ;;  %v4538_v33 = vmul.f32 -1.442695, %v6298_v63 }
 0x1c1   :  { %v4541_v36 = vmul.f32 -1.442695, %v6311_v14 }
 0x1c2   :  { %386 = vrot.lane.b32.xlu1 %v6301_v5, %s6098_s14  ;;  %v4539_v34 = vmul.f32 -1.442695, %v6301_v5  ;;  %5683 = vpow2.f32 %v4538_v33 }
 0x1c4   :  { %v5338_v16 = vpop.f32.mrb[4].mxu1  ;;  %388 = vrot.lane.b32.xlu0 %v6306_v10, %s6098_s14  ;;  %5685 = vpow2.f32 %v4539_v34 }
 0x1c5   :  { %v313_v18 = vpop.f32.mrb[5].mxu1  ;;  %v6326_v27 = vadd.f32 %v5338_v16, %v6295_v60  ;;  %5687 = vpow2.f32 %v4540_v35 }
 0x1c6   :  { %v6316_v19 = vadd.f32 %v6295_v60, %v313_v18  ;;  %v5339_v24 = vpop.f32.mrb[6].mxu1  ;;  %390 = vrot.lane.b32.xlu1 %v6311_v14, %s6098_s14  ;;  %5689 = vpow2.f32 %v4541_v36 }
 0x1c7   :  { %v316_v25 = vpop.f32.mrb[7].mxu1  ;;  %v6331_v28 = vadd.f32 %v5339_v24, %v6295_v60  ;;  %v4544_v39 = vmul.f32 -1.442695, %v6326_v27 }
 0x1c8   :  { %v6321_v26 = vadd.f32 %v6295_v60, %v316_v25  ;;  %392 = vrot.lane.b32.xlu0 %v6316_v19, %s6098_s14  ;;  %v4542_v37 = vmul.f32 -1.442695, %v6316_v19 }
 0x1c9   :  { %v4545_v41 = vmul.f32 -1.442695, %v6331_v28 }
 0x1ca   :  { %394 = vrot.lane.b32.xlu1 %v6321_v26, %s6098_s14  ;;  %v4543_v38 = vmul.f32 -1.442695, %v6321_v26  ;;  %5691 = vpow2.f32 %v4542_v37 }
 0x1cc   :  { %396 = vrot.lane.b32.xlu0 %v6326_v27, %s6098_s14  ;;  %v5684_v40 = vpop.eup %5683  ;;  %5693 = vpow2.f32 %v4543_v38 }
 0x1cd   :  { %5695 = vpow2.f32 %v4544_v39  ;;  %v352_v43 = vadd.f32 1.0, %v5684_v40 }
 0x1ce   :  { %398 = vrot.lane.b32.xlu1 %v6331_v28, %s6098_s14  ;;  %v5686_v42 = vpop.eup %5685  ;;  %5697 = vpow2.f32 %v4545_v41 }
 0x1cf   :  { %v5688_v44 = vpop.eup %5687  ;;  %v353_v45 = vadd.f32 1.0, %v5686_v42  ;;  %5699 = vrcp.f32 %v352_v43  ;;  %v5358_v42 = vpop.f32.mrb[8].mxu1 }
 0x1d0   :  { %v5690_v46 = vpop.eup %5689  ;;  %v354_v47 = vadd.f32 1.0, %v5688_v44 }
 0x1d1   :  { %v355_v49 = vadd.f32 1.0, %v5690_v46  ;;  %5701 = vrcp.f32 %v353_v45  ;;  %v786_v46 = vpop.f32.mrb[9].mxu1 }
 0x1d2   :  { %5703 = vrcp.f32 %v354_v47 }
 0x1d3   :  { %5705 = vrcp.f32 %v355_v49  ;;  %v787_v49 = vadd.f32 %v6270_v23, %v786_v46  ;;  %v6439_v46 = vld [vmem:[%s8282_s6] sm:$0xff]  }
 0x1d4   :  { %v5692_v48 = vpop.eup %5691  ;;  %5340 = vmatprep.subr.bf16.mxu0 %v6439_v46  ;;  %5380 = vmatprep.subr.bf16.mxu1 %v6439_v46 }
 0x1d5   :  { %v356_v51 = vadd.f32 1.0, %v5692_v48  ;;  %5341 = vmatpush3.bf16.msra.mxu0 %v6439_v46  ;;  %5381 = vmatpush3.bf16.msra.mxu1 %v6439_v46 }
 0x1d6   :  { %v5694_v50 = vpop.eup %5693 }
 0x1d7   :  { %v5696_v52 = vpop.eup %5695  ;;  %v357_v53 = vadd.f32 1.0, %v5694_v50  ;;  %5707 = vrcp.f32 %v356_v51 }
 0x1d8   :  { %v5698_v54 = vpop.eup %5697  ;;  %v358_v55 = vadd.f32 1.0, %v5696_v52 }
 0x1d9   :  { %v6361_v56 = vpop.eup %5699  ;;  %v359_v57 = vadd.f32 1.0, %v5698_v54  ;;  %5709 = vrcp.f32 %v357_v53  ;;  %v817_v54 = vmax.f32 %v787_v49, 0.0 }
 0x1da   :  { %5711 = vrcp.f32 %v358_v55 }
 0x1db   :  { %v6364_v61 = vpop.eup %5701  ;;  %5713 = vrcp.f32 %v359_v57 }
 0x1dc   :  { %v6368_v4 = vpop.eup %5703 }
 0x1dd   :  { %v6372_v24 = vpop.eup %5705 }
 0x1e1   :  { %v6376_v30 = vpop.eup %5707 }
 0x1e3   :  { %v6380_v33 = vpop.eup %5709 }
 0x1e4   :  { %v6384_v36 = vpop.eup %5711 }
 0x1e5   :  { %v6388_v39 = vpop.eup %5713 }
 0x232   :  { %v385_v58 = vpop.permute.xlu0 %384 }
 0x233   :  { %v408_v59 = vmul.f32 %v6361_v56, %v385_v58 }
 0x234   :  { %v387_v62 = vpop.permute.xlu1 %386 }
 0x235   :  { %v409_v2 = vmul.f32 %v6364_v61, %v387_v62  ;;  %424 = vrot.lane.b32.xlu0 %v408_v59, %s6099_s16 }
 0x236   :  { %v389_v16 = vpop.permute.xlu0 %388 }
 0x237   :  { %v410_v18 = vmul.f32 %v6368_v4, %v389_v16  ;;  %426 = vrot.lane.b32.xlu1 %v409_v2, %s6099_s16 }
 0x238   :  { %v391_v25 = vpop.permute.xlu1 %390 }
 0x239   :  { %v411_v29 = vmul.f32 %v6372_v24, %v391_v25  ;;  %428 = vrot.lane.b32.xlu0 %v410_v18, %s6099_s16 }
 0x23a   :  { %v393_v31 = vpop.permute.xlu0 %392 }
 0x23b   :  { %v412_v32 = vmul.f32 %v6376_v30, %v393_v31  ;;  %430 = vrot.lane.b32.xlu1 %v411_v29, %s6099_s16 }
 0x23c   :  { %v395_v34 = vpop.permute.xlu1 %394 }
 0x23d   :  { %v413_v35 = vmul.f32 %v6380_v33, %v395_v34  ;;  %432 = vrot.lane.b32.xlu0 %v412_v32, %s6099_s16 }
 0x23e   :  { %v397_v37 = vpop.permute.xlu0 %396 }
 0x23f   :  { %v414_v38 = vmul.f32 %v6384_v36, %v397_v37  ;;  %434 = vrot.lane.b32.xlu1 %v413_v35, %s6099_s16 }
 0x240   :  { %v399_v40 = vpop.permute.xlu1 %398 }
 0x241   :  { %v415_v41 = vmul.f32 %v6388_v39, %v399_v40  ;;  %436 = vrot.lane.b32.xlu0 %v414_v38, %s6099_s16 }
 0x243   :  { %438 = vrot.lane.b32.xlu1 %v415_v41, %s6099_s16 }
 0x245   :  { %520 = vrot.lane.b32.xlu0 %v6182_v6, %s6098_s14  ;;  %v795_v6 = vadd.f32 %v5358_v42, %v6270_v23 }
 0x247   :  { %522 = vrot.lane.b32.xlu1 %v6187_v7, %s6098_s14  ;;  %v819_v48 = vmax.f32 %v795_v6, 0.0 }
 0x249   :  { %524 = vrot.lane.b32.xlu0 %v6192_v8, %s6098_s14 }
 0x24b   :  { %526 = vrot.lane.b32.xlu1 %v6197_v9, %s6098_s14  ;;  %v5359_v9 = vpop.f32.mrb[10].mxu1 }
 0x24d   :  { %528 = vrot.lane.b32.xlu0 %v6205_v11, %s6098_s14 }
 0x24f   :  { %530 = vrot.lane.b32.xlu1 %v6210_v12, %s6098_s14  ;;  %v798_v12 = vadd.f32 %v5359_v9, %v6270_v23 }
 0x251   :  { %v820_v52 = vmax.f32 %v798_v12, 0.0 }
 0x2a7   :  { %v425_v43 = vpop.permute.xlu0 %424 }
 0x2a8   :  { %v448_v8 = vadd.f32 %v425_v43, %v6298_v63  ;;  %v6412_v63 = vpack.c.bf16 %v820_v52, %v819_v48  ;;  %v467_v52 = vsub.f32 1.0, %v6372_v24 }
 0x2a9   :  { %v427_v44 = vpop.permute.xlu1 %426 }
 0x2aa   :  { %v449_v51 = vadd.f32 %v427_v44, %v6301_v5 }
 0x2ab   :  { %v429_v45 = vpop.permute.xlu0 %428 }
 0x2ac   :  { %v450_v7 = vadd.f32 %v429_v45, %v6306_v10  ;;  %v789_v10 = vpop.f32.mrb[11].mxu1 }
 0x2ad   :  { %v431_v47 = vpop.permute.xlu1 %430  ;;  %v790_v55 = vadd.f32 %v6270_v23, %v789_v10  ;;  %v5362_v16 = vpop.f32.mrb[12].mxu1 }
 0x2ae   :  { %5715 = vtanh.f32 %v450_v7  ;;  %v451_v11 = vadd.f32 %v431_v47, %v6311_v14  ;;  %v811_v18 = vadd.f32 %v5362_v16, %v6270_v23  ;;  %v802_v25 = vpop.f32.mrb[13].mxu1  ;;  %v6444_v47 = vld [vmem:[%s8282_s6 + $0x8] sm:$0xff]  }
 0x2af   :  { %v433_v50 = vpop.permute.xlu0 %432  ;;  %v818_v58 = vmax.f32 %v790_v55, 0.0  ;;  %v803_v32 = vadd.f32 %v6270_v23, %v802_v25  ;;  %5342 = vmatprep.subr.bf16.mxu0 %v6444_v47  ;;  %5382 = vmatprep.subr.bf16.mxu1 %v6444_v47 }
 0x2b0   :  { %5717 = vtanh.f32 %v451_v11  ;;  %v452_v59 = vadd.f32 %v433_v50, %v6316_v19  ;;  %5343 = vmatpush3.bf16.msra.mxu0 %v6444_v47  ;;  %5383 = vmatpush3.bf16.msra.mxu1 %v6444_v47  ;;  %v466_v50 = vsub.f32 1.0, %v6368_v4 }
 0x2b1   :  { %v435_v53 = vpop.permute.xlu1 %434  ;;  %5719 = vtanh.f32 %v448_v8  ;;  %v6418_v2 = vpack.c.bf16 %v818_v58, %v817_v54  ;;  %v821_v35 = vmax.f32 %v803_v32, 0.0  ;;  %5364 = vmatprep.subr.bf16.mxu0 %v6230_v17  ;;  %5404 = vmatprep.subr.bf16.mxu1 %v6230_v17 }
 0x2b2   :  { %5721 = vtanh.f32 %v449_v51  ;;  %v453_v31 = vadd.f32 %v435_v53, %v6321_v26 }
 0x2b3   :  { %v437_v57 = vpop.permute.xlu0 %436 }
 0x2b4   :  { %v454_v14 = vadd.f32 %v437_v57, %v6326_v27  ;;  %v5363_v27 = vpop.f32.mrb[14].mxu1  ;;  %v464_v57 = vsub.f32 1.0, %v6361_v56 }
 0x2b5   :  { %v439_v62 = vpop.permute.xlu1 %438  ;;  %v805_v19 = vpop.f32.mrb[15].mxu1  ;;  %v814_v37 = vadd.f32 %v5363_v27, %v6270_v23 }
 0x2b6   :  { %5723 = vtanh.f32 %v454_v14  ;;  %v455_v5 = vadd.f32 %v439_v62, %v6331_v28  ;;  %v823_v28 = vmax.f32 %v811_v18, 0.0  ;;  %v806_v38 = vadd.f32 %v6270_v23, %v805_v19 }
 0x2b7   :  { %v824_v26 = vmax.f32 %v814_v37, 0.0  ;;  %v521_v48 = vpop.permute.xlu0 %520 }
 0x2b8   :  { %v5716_v29 = vpop.eup %5715  ;;  %5725 = vtanh.f32 %v455_v5  ;;  %v822_v41 = vmax.f32 %v806_v38, 0.0  ;;  %v465_v5 = vsub.f32 1.0, %v6364_v61  ;;  %v544_v18 = vmul.f32 %v6361_v56, %v521_v48 }
 0x2b9   :  { %5727 = vtanh.f32 %v452_v59  ;;  %484 = vrot.lane.b32.xlu0 %v5716_v29, %s6100_s1  ;;  %v6428_v43 = vpack.c.bf16 %v824_v26, %v823_v28  ;;  %v523_v9 = vpop.permute.xlu1 %522 }
 0x2ba   :  { %v5718_v34 = vpop.eup %5717  ;;  %5729 = vtanh.f32 %v453_v31  ;;  %v6430_v44 = vpack.c.bf16 %v822_v41, %v821_v35  ;;  %v545_v25 = vmul.f32 %v6364_v61, %v523_v9  ;;  %v469_v35 = vsub.f32 1.0, %v6380_v33 }
 0x2bb   :  { %486 = vrot.lane.b32.xlu1 %v5718_v34, %s6100_s1  ;;  %v5720_v40 = vpop.eup %5719  ;;  %v468_v34 = vsub.f32 1.0, %v6376_v30  ;;  %v470_v41 = vsub.f32 1.0, %v6384_v36 }
 0x2bc   :  { %v5722_v42 = vpop.eup %5721 }
 0x2bd   :  { %480 = vrot.lane.b32.xlu0 %v5720_v40, %s6100_s1  ;;  %v527_v11 = vpop.permute.xlu1 %526 }
 0x2be   :  { %v547_v54 = vmul.f32 %v6372_v24, %v527_v11 }
 0x2bf   :  { %482 = vrot.lane.b32.xlu1 %v5722_v42, %s6100_s1 }
 0x2c0   :  { %v5724_v6 = vpop.eup %5723 }
 0x2c1   :  { %492 = vrot.lane.b32.xlu0 %v5724_v6, %s6100_s1  ;;  %v531_v12 = vpop.permute.xlu1 %530  ;;  %v471_v6 = vsub.f32 1.0, %v6388_v39 }
 0x2c2   :  { %v5726_v45 = vpop.eup %5725 }
 0x2c3   :  { %v5728_v7 = vpop.eup %5727  ;;  %494 = vrot.lane.b32.xlu1 %v5726_v45, %s6100_s1 }
 0x2c4   :  { %v5730_v8 = vpop.eup %5729 }
 0x2c5   :  { %488 = vrot.lane.b32.xlu0 %v5728_v7, %s6100_s1 }
 0x2c7   :  { %490 = vrot.lane.b32.xlu1 %v5730_v8, %s6100_s1 }
 0x2c9   :  { %532 = vrot.lane.b32.xlu0 %v6215_v13, %s6098_s14  ;;  %v525_v13 = vpop.permute.xlu0 %524 }
 0x2ca   :  { %v546_v10 = vmul.f32 %v6368_v4, %v525_v13 }
 0x2cb   :  { %534 = vrot.lane.b32.xlu1 %v6222_v15, %s6098_s14 }
 0x2cd   :  { %v529_v49 = vpop.permute.xlu0 %528 }
 0x2ce   :  { %v548_v40 = vmul.f32 %v6376_v30, %v529_v49 }
 0x32b   :  { %v485_v51 = vpop.permute.xlu0 %484 }
 0x32c   :  { %v506_v15 = vmul.f32 %v485_v51, %v466_v50 }
 0x32d   :  { %v487_v53 = vpop.permute.xlu1 %486 }
 0x32e   :  { %v507_v55 = vmul.f32 %v487_v53, %v467_v52  ;;  %v6466_v58 = vadd.f32 %v546_v10, %v506_v15 }
 0x32f   :  { %v481_v14 = vpop.permute.xlu0 %480 }
 0x330   :  { %v6468_v59 = vadd.f32 %v547_v54, %v507_v55  ;;  %v504_v62 = vmul.f32 %v481_v14, %v464_v57 }
 0x331   :  { %v483_v16 = vpop.permute.xlu1 %482 }
 0x332   :  { %v505_v29 = vmul.f32 %v483_v16, %v465_v5  ;;  %v561_v4 = vpack.c.bf16 %v6468_v59, %v6466_v58  ;;  %v6475_v31 = vadd.f32 %v544_v18, %v504_v62 }
 0x333   :  { %v493_v24 = vpop.permute.xlu0 %492 }
 0x334   :  { %v6477_v32 = vadd.f32 %v545_v25, %v505_v29  ;;  %576 = vrot.lane.b32.xlu1 %v561_v4, %s6100_s1  ;;  %v834_v27 = vsel %vm211_vm2, %v6412_v63, %v561_v4  ;;  %v549_v63 = vmul.f32 %v6380_v33, %v531_v12  ;;  %v510_v9 = vmul.f32 %v493_v24, %v470_v41 }
 0x335   :  { %v495_v19 = vpop.permute.xlu1 %494 }
 0x336   :  { %v560_v56 = vpack.c.bf16 %v6477_v32, %v6475_v31 }
 0x337   :  { %v489_v61 = vpop.permute.xlu0 %488 }
 0x338   :  { %v508_v28 = vmul.f32 %v489_v61, %v468_v34  ;;  %574 = vrot.lane.b32.xlu0 %v560_v56, %s6100_s1  ;;  %v831_v37 = vsel %vm211_vm2, %v6418_v2, %v560_v56  ;;  %v511_v2 = vmul.f32 %v495_v19, %v471_v6 }
 0x339   :  { %v491_v38 = vpop.permute.xlu1 %490 }
 0x33a   :  { %v509_v26 = vmul.f32 %v491_v38, %v469_v35  ;;  %v6493_v45 = vadd.f32 %v548_v40, %v508_v28  ;;  %v5659_v35 = vld [vmem:[%s8277_s0 + $0x40] sm:$0xff]   ;;  %v5661_v38 = vld [vmem:[%s8277_s0 + $0x50] sm:$0xff]  }
 0x33b   :  { %v533_v42 = vpop.permute.xlu0 %532 }
 0x33c   :  { %v6495_v7 = vadd.f32 %v549_v63, %v509_v26  ;;  %v550_v8 = vmul.f32 %v6384_v36, %v533_v42 }
 0x33d   :  { %v535_v48 = vpop.permute.xlu1 %534 }
 0x33e   :  { %v551_v13 = vmul.f32 %v6388_v39, %v535_v48  ;;  %v562_v30 = vpack.c.bf16 %v6495_v7, %v6493_v45  ;;  %v6501_v33 = vadd.f32 %v550_v8, %v510_v9  ;;  %v5662_v9 = vld [vmem:[%s8277_s0 + $0x58] sm:$0xff]  }
 0x340   :  { %v6503_v11 = vadd.f32 %v551_v13, %v511_v2  ;;  %578 = vrot.lane.b32.xlu0 %v562_v30, %s6100_s1  ;;  %v837_v49 = vsel %vm211_vm2, %v6430_v44, %v562_v30 }
 0x342   :  { %v563_v36 = vpack.c.bf16 %v6503_v11, %v6501_v33 }
 0x344   :  { %580 = vrot.lane.b32.xlu1 %v563_v36, %s6100_s1  ;;  %v840_v39 = vsel %vm211_vm2, %v6428_v43, %v563_v36 }
 0x3a6   :  { %v577_v50 = vpop.permute.xlu1 %576 }
 0x3aa   :  { %v575_v12 = vpop.permute.xlu0 %574 }
 0x3ab   :  { %5344 = vmatprep.mubr.msk.bf16.mxu0 %vm211_vm2, %v575_v12 }
 0x3ac   :  { %5345 = vmatmul.mubr.msk.bf16.vlgmr.msra.gmra.mrb[8].mxu0 %vm211_vm2, %v577_v50 }
 0x3ad   :  { %5365 = vmatpush3.bf16.msra.mxu0 %v6230_v17 }
 0x3ae   :  { %5366 = vmatprep.subr.bf16.mxu0 %v6248_v20 }
 0x3b1   :  { %5367 = vmatpush3.bf16.msra.mxu0 %v6248_v20 }
 0x3b2   :  { %v579_v44 = vpop.permute.xlu0 %578  ;;  %5368 = vmatprep.subr.bf16.mxu0 %v6255_v21 }
 0x3b3   :  { %5348 = vmatprep.mubr.msk.bf16.mxu0 %vm211_vm2, %v579_v44 }
 0x3b5   :  { %5369 = vmatpush3.bf16.msra.mxu0 %v6255_v21  ;;  %v6537_v21 = vld [vmem:[%s8283_s7] ss:$0 sm:$0xff] }
 0x3b6   :  { %v581_v43 = vpop.permute.xlu1 %580  ;;  %5370 = vmatprep.subr.bf16.mxu0 %v6262_v22 }
 0x3b7   :  { %5349 = vmatmul.mubr.msk.bf16.gmra.mrb[12].mxu0 %vm211_vm2, %v581_v43 }
 0x3b8   :  { %5372 = vmatprep.mubr.msk.bf16.mxu0 %vm254_vm3, %v831_v37  ;;  %v5660_v37 = vld [vmem:[%s8277_s0 + $0x48] sm:$0xff]  }
 0x3b9   :  { %5371 = vmatpush3.bf16.msra.mxu0 %v6262_v22 }
 0x3ba   :  { %5392 = vmatprep.subr.bf16.mxu0 %v6154_v0 }
 0x3bf   :  { %5373 = vmatmul.mubr.msk.bf16.vlgmr.msra.gmra.mrb[16].mxu0 %vm254_vm3, %v834_v27 }
 0x3c0   :  { %5376 = vmatprep.mubr.msk.bf16.mxu0 %vm254_vm3, %v837_v49  ;;  %5393 = vmatpush3.bf16.msra.mxu0 %v6154_v0 }
 0x3c1   :  { %5634 = vmatprep.subr.msk.bf16.mxu0 %vm114_vm0, %v6159_v1 }
 0x3c4   :  { %5395 = vmatpush3.bf16.msra.mxu0 %v6170_v3 }
 0x3c5   :  { %5420 = vmatprep.subr.bf16.mxu0 %v6439_v46 }
 0x3c7   :  { %5377 = vmatmul.mubr.msk.bf16.gmra.mrb[20].mxu0 %vm254_vm3, %v840_v39 }
 0x3c8   :  { %5396 = vmatprep.mubr.msk.bf16.mxu0 %vm101_vm1, %v5659_v35 }
 0x3cf   :  { %5397 = vmatmul.mubr.msk.bf16.vlgmr.msra.gmra.mrb[24].mxu0 %vm101_vm1, %v5660_v37 }
 0x3d0   :  { %5400 = vmatprep.mubr.msk.bf16.mxu0 %vm101_vm1, %v5661_v38  ;;  %5421 = vmatpush3.bf16.msra.mxu0 %v6439_v46 }
 0x3d1   :  { %5422 = vmatprep.subr.bf16.mxu0 %v6444_v47 }
 0x3d4   :  { %5423 = vmatpush3.bf16.msra.mxu0 %v6444_v47 }
 0x3d5   :  { %5444 = vmatprep.subr.bf16.mxu0 %v6230_v17 }
 0x3d7   :  { %5401 = vmatmul.mubr.msk.bf16.gmra.mrb[28].mxu0 %vm101_vm1, %v5662_v9 }
 0x47f   :  { %v5346_v20 = vpop.f32.mrb[8].mxu0 }
 0x480   :  { %v640_v22 = vpop.f32.mrb[9].mxu0  ;;  %v649_v15 = vadd.f32 %v5346_v20, %v6537_v21 }
 0x481   :  { %v5347_v51 = vpop.f32.mrb[10].mxu0  ;;  %v641_v1 = vadd.f32 %v6537_v21, %v640_v22 }
 0x482   :  { %v652_v0 = vadd.f32 %v5347_v51, %v6537_v21  ;;  %v643_v52 = vpop.f32.mrb[11].mxu0 }
 0x483   :  { %v644_v53 = vadd.f32 %v6537_v21, %v643_v52 }
 0x484   :  { %v4969_v10 = vpack.c.bf16 %v652_v0, %v649_v15 }
 0x485   :  { %v4964_v54 = vpack.c.bf16 %v644_v53, %v641_v1 }
 0x486   :  { %5121 = vst [vmem:[%s8284_s8 + $0x8] sm:$0xff] %v4969_v10  }
 0x487   :  { %4965 = vst [vmem:[%s8284_s8] sm:$0xff] %v4964_v54  }
 0x48a   :  { %v5350_v55 = vpop.f32.mrb[12].mxu0 }
 0x48b   :  { %v656_v57 = vpop.f32.mrb[13].mxu0  ;;  %v665_v62 = vadd.f32 %v5350_v55, %v6537_v21 }
 0x48c   :  { %v5351_v14 = vpop.f32.mrb[14].mxu0  ;;  %v657_v18 = vadd.f32 %v6537_v21, %v656_v57 }
 0x48d   :  { %v668_v5 = vadd.f32 %v5351_v14, %v6537_v21  ;;  %v659_v16 = vpop.f32.mrb[15].mxu0 }
 0x48e   :  { %v660_v25 = vadd.f32 %v6537_v21, %v659_v16 }
 0x48f   :  { %v4979_v29 = vpack.c.bf16 %v668_v5, %v665_v62 }
 0x490   :  { %v4974_v4 = vpack.c.bf16 %v660_v25, %v657_v18 }
 0x491   :  { %5123 = vst [vmem:[%s8284_s8 + $0x18] sm:$0xff] %v4979_v29  }
 0x492   :  { %5122 = vst [vmem:[%s8284_s8 + $0x10] sm:$0xff] %v4974_v4   ;;  %v5374_v24 = vpop.f32.mrb[16].mxu0 }
 0x493   :  { %v883_v27 = vpop.f32.mrb[17].mxu0  ;;  %v6568_v28 = vadd.f32 %v5374_v24, %v6295_v60 }
 0x494   :  { %v6560_v19 = vadd.f32 %v6295_v60, %v883_v27  ;;  %v5375_v34 = vpop.f32.mrb[18].mxu0 }
 0x495   :  { %v886_v56 = vpop.f32.mrb[19].mxu0  ;;  %v6582_v40 = vadd.f32 %v5375_v34, %v6295_v60  ;;  %v4583_v49 = vmul.f32 -1.442695, %v6568_v28 }
 0x496   :  { %v6563_v61 = vadd.f32 %v6295_v60, %v886_v56  ;;  %970 = vrot.lane.b32.xlu0 %v6560_v19, %s6098_s14  ;;  %v4581_v13 = vmul.f32 -1.442695, %v6560_v19 }
 0x498   :  { %972 = vrot.lane.b32.xlu1 %v6563_v61, %s6098_s14  ;;  %v4582_v30 = vmul.f32 -1.442695, %v6563_v61  ;;  %5731 = vpow2.f32 %v4581_v13 }
 0x49a   :  { %v5378_v63 = vpop.f32.mrb[20].mxu0  ;;  %974 = vrot.lane.b32.xlu0 %v6568_v28, %s6098_s14  ;;  %5733 = vpow2.f32 %v4582_v30 }
 0x49b   :  { %v899_v26 = vpop.f32.mrb[21].mxu0  ;;  %v6602_v48 = vadd.f32 %v5378_v63, %v6295_v60  ;;  %5735 = vpow2.f32 %v4583_v49 }
 0x49c   :  { %v6588_v41 = vadd.f32 %v6295_v60, %v899_v26  ;;  %v5379_v42 = vpop.f32.mrb[22].mxu0  ;;  %976 = vrot.lane.b32.xlu1 %v6582_v40, %s6098_s14 }
 0x49d   :  { %v902_v6 = vpop.f32.mrb[23].mxu0  ;;  %v6611_v2 = vadd.f32 %v5379_v42, %v6295_v60  ;;  %v4587_v39 = vmul.f32 -1.442695, %v6602_v48 }
 0x49e   :  { %v6596_v8 = vadd.f32 %v6295_v60, %v902_v6  ;;  %978 = vrot.lane.b32.xlu0 %v6588_v41, %s6098_s14  ;;  %v4584_v60 = vmul.f32 -1.442695, %v6582_v40  ;;  %v4585_v36 = vmul.f32 -1.442695, %v6588_v41 }
 0x49f   :  { %v4588_v50 = vmul.f32 -1.442695, %v6611_v2 }
 0x4a0   :  { %980 = vrot.lane.b32.xlu1 %v6596_v8, %s6098_s14  ;;  %5737 = vpow2.f32 %v4584_v60  ;;  %v4586_v17 = vmul.f32 -1.442695, %v6596_v8 }
 0x4a1   :  { %5739 = vpow2.f32 %v4585_v36 }
 0x4a2   :  { %982 = vrot.lane.b32.xlu0 %v6602_v48, %s6098_s14  ;;  %v5732_v12 = vpop.eup %5731  ;;  %5741 = vpow2.f32 %v4586_v17  ;;  %v5398_v17 = vpop.f32.mrb[24].mxu0 }
 0x4a3   :  { %5743 = vpow2.f32 %v4587_v39  ;;  %v938_v43 = vadd.f32 1.0, %v5732_v12  ;;  %v1323_v39 = vpop.f32.mrb[25].mxu0  ;;  %v1332_v12 = vadd.f32 %v5398_v17, %v6270_v23 }
 0x4a4   :  { %984 = vrot.lane.b32.xlu1 %v6611_v2, %s6098_s14  ;;  %v5734_v44 = vpop.eup %5733  ;;  %5745 = vpow2.f32 %v4588_v50  ;;  %v1324_v50 = vadd.f32 %v6270_v23, %v1323_v39 }
 0x4a5   :  { %v5736_v20 = vpop.eup %5735  ;;  %v939_v22 = vadd.f32 1.0, %v5734_v44  ;;  %5747 = vrcp.f32 %v938_v43 }
 0x4a6   :  { %v940_v15 = vadd.f32 1.0, %v5736_v20  ;;  %v5399_v20 = vpop.f32.mrb[26].mxu0 }
 0x4a7   :  { %5749 = vrcp.f32 %v939_v22 }
 0x4a8   :  { %5751 = vrcp.f32 %v940_v15  ;;  %v1354_v15 = vmax.f32 %v1324_v50, 0.0 }
 0x4aa   :  { %v5738_v51 = vpop.eup %5737 }
 0x4ab   :  { %v5740_v0 = vpop.eup %5739  ;;  %v941_v52 = vadd.f32 1.0, %v5738_v51  ;;  %v1356_v51 = vmax.f32 %v1332_v12, 0.0 }
 0x4ac   :  { %v5742_v1 = vpop.eup %5741  ;;  %v942_v53 = vadd.f32 1.0, %v5740_v0  ;;  %v1326_v0 = vpop.f32.mrb[27].mxu0 }
 0x4ad   :  { %v5744_v10 = vpop.eup %5743  ;;  %5753 = vrcp.f32 %v941_v52  ;;  %v943_v54 = vadd.f32 1.0, %v5742_v1  ;;  %v1335_v1 = vadd.f32 %v5399_v20, %v6270_v23 }
 0x4ae   :  { %v5746_v55 = vpop.eup %5745  ;;  %v944_v57 = vadd.f32 1.0, %v5744_v10  ;;  %5755 = vrcp.f32 %v942_v53  ;;  %v1327_v53 = vadd.f32 %v6270_v23, %v1326_v0 }
 0x4af   :  { %v6627_v14 = vpop.eup %5747  ;;  %v945_v62 = vadd.f32 1.0, %v5746_v55  ;;  %5757 = vrcp.f32 %v943_v54  ;;  %v1357_v55 = vmax.f32 %v1335_v1, 0.0 }
 0x4b0   :  { %5759 = vrcp.f32 %v944_v57  ;;  %v1355_v57 = vmax.f32 %v1327_v53, 0.0  ;;  %v1098_v53 = vmul.f32 %v6627_v14, %v6475_v31 }
 0x4b1   :  { %v6630_v18 = vpop.eup %5749  ;;  %5761 = vrcp.f32 %v945_v62 }
 0x4b2   :  { %v6634_v4 = vpop.eup %5751 }
 0x4b7   :  { %v6638_v34 = vpop.eup %5753 }
 0x4b8   :  { %v6642_v37 = vpop.eup %5755  ;;  %v1101_v31 = vmul.f32 %v6638_v34, %v6468_v59 }
 0x4b9   :  { %v6646_v26 = vpop.eup %5757 }
 0x4ba   :  { %v6650_v9 = vpop.eup %5759 }
 0x4bb   :  { %v6654_v49 = vpop.eup %5761 }
 0x508   :  { %v971_v5 = vpop.permute.xlu0 %970 }
 0x509   :  { %v994_v16 = vmul.f32 %v6627_v14, %v971_v5  ;;  %v6667_v5 = vpack.c.bf16 %v1357_v55, %v1356_v51  ;;  %v1050_v51 = vsub.f32 1.0, %v6627_v14  ;;  %v1052_v55 = vsub.f32 1.0, %v6634_v4 }
 0x50a   :  { %v973_v25 = vpop.permute.xlu1 %972 }
 0x50b   :  { %v995_v29 = vmul.f32 %v6630_v18, %v973_v25  ;;  %1010 = vrot.lane.b32.xlu0 %v994_v16, %s6099_s16  ;;  %v6669_v16 = vpack.c.bf16 %v1355_v57, %v1354_v15  ;;  %v5402_v25 = vpop.f32.mrb[28].mxu0 }
 0x50c   :  { %v975_v24 = vpop.permute.xlu0 %974 }
 0x50d   :  { %v996_v27 = vmul.f32 %v6634_v4, %v975_v24  ;;  %1012 = vrot.lane.b32.xlu1 %v995_v29, %s6099_s16  ;;  %v1339_v29 = vpop.f32.mrb[29].mxu0 }
 0x50e   :  { %v977_v56 = vpop.permute.xlu1 %976 }
 0x50f   :  { %v997_v35 = vmul.f32 %v6638_v34, %v977_v56  ;;  %1014 = vrot.lane.b32.xlu0 %v996_v27, %s6099_s16  ;;  %v1348_v27 = vadd.f32 %v5402_v25, %v6270_v23  ;;  %v5403_v56 = vpop.f32.mrb[30].mxu0 }
 0x510   :  { %v979_v38 = vpop.permute.xlu0 %978 }
 0x511   :  { %v998_v63 = vmul.f32 %v6642_v37, %v979_v38  ;;  %1016 = vrot.lane.b32.xlu1 %v997_v35, %s6099_s16  ;;  %v1342_v38 = vpop.f32.mrb[31].mxu0 }
 0x512   :  { %v981_v42 = vpop.permute.xlu1 %980 }
 0x513   :  { %v999_v6 = vmul.f32 %v6646_v26, %v981_v42  ;;  %1018 = vrot.lane.b32.xlu0 %v998_v63, %s6099_s16  ;;  %v1360_v42 = vmax.f32 %v1348_v27, 0.0 }
 0x514   :  { %v983_v13 = vpop.permute.xlu0 %982 }
 0x515   :  { %v1000_v30 = vmul.f32 %v6650_v9, %v983_v13  ;;  %1020 = vrot.lane.b32.xlu1 %v999_v6, %s6099_s16  ;;  %v1351_v13 = vadd.f32 %v5403_v56, %v6270_v23 }
 0x516   :  { %v985_v60 = vpop.permute.xlu1 %984 }
 0x517   :  { %v1001_v36 = vmul.f32 %v6654_v49, %v985_v60  ;;  %1022 = vrot.lane.b32.xlu0 %v1000_v30, %s6099_s16  ;;  %v1343_v30 = vadd.f32 %v6270_v23, %v1342_v38  ;;  %v1361_v17 = vmax.f32 %v1351_v13, 0.0  ;;  %v1057_v13 = vsub.f32 1.0, %v6654_v49 }
 0x519   :  { %1024 = vrot.lane.b32.xlu1 %v1001_v36, %s6099_s16  ;;  %v1359_v39 = vmax.f32 %v1343_v30, 0.0  ;;  %v6681_v50 = vpack.c.bf16 %v1361_v17, %v1360_v42 }
 0x57d   :  { %v1011_v44 = vpop.permute.xlu0 %1010 }
 0x57e   :  { %v1034_v43 = vadd.f32 %v1011_v44, %v6560_v19 }
 0x57f   :  { %v1013_v22 = vpop.permute.xlu1 %1012 }
 0x580   :  { %5763 = vtanh.f32 %v1034_v43  ;;  %v1035_v52 = vadd.f32 %v1013_v22, %v6563_v61 }
 0x581   :  { %v1015_v10 = vpop.permute.xlu0 %1014 }
 0x582   :  { %5765 = vtanh.f32 %v1035_v52  ;;  %v1036_v54 = vadd.f32 %v1015_v10, %v6568_v28  ;;  %v1340_v28 = vadd.f32 %v6270_v23, %v1339_v29  ;;  %v1051_v52 = vsub.f32 1.0, %v6630_v18 }
 0x583   :  { %v1017_v62 = vpop.permute.xlu1 %1016  ;;  %v1099_v10 = vmul.f32 %v6630_v18, %v6477_v32  ;;  %v1100_v29 = vmul.f32 %v6634_v4, %v6466_v58  ;;  %v1054_v32 = vsub.f32 1.0, %v6642_v37  ;;  %v1056_v4 = vsub.f32 1.0, %v6650_v9 }
 0x584   :  { %5767 = vtanh.f32 %v1036_v54  ;;  %v1037_v19 = vadd.f32 %v1017_v62, %v6582_v40  ;;  %v1358_v6 = vmax.f32 %v1340_v28, 0.0  ;;  %v1055_v28 = vsub.f32 1.0, %v6646_v26 }
 0x585   :  { %v1019_v61 = vpop.permute.xlu0 %1018 }
 0x586   :  { %5769 = vtanh.f32 %v1037_v19  ;;  %v1038_v24 = vadd.f32 %v1019_v61, %v6588_v41  ;;  %v6683_v44 = vpack.c.bf16 %v1359_v39, %v1358_v6  ;;  %v1053_v61 = vsub.f32 1.0, %v6638_v34 }
 0x587   :  { %v1021_v35 = vpop.permute.xlu1 %1020  ;;  %v1102_v34 = vmul.f32 %v6642_v37, %v6493_v45 }
 0x588   :  { %5771 = vtanh.f32 %v1038_v24  ;;  %v1039_v40 = vadd.f32 %v1021_v35, %v6596_v8 }
 0x589   :  { %v1023_v63 = vpop.permute.xlu0 %1022 }
 0x58a   :  { %v5764_v60 = vpop.eup %5763  ;;  %5773 = vtanh.f32 %v1039_v40  ;;  %v1040_v41 = vadd.f32 %v1023_v63, %v6602_v48  ;;  %v1103_v40 = vmul.f32 %v6646_v26, %v6495_v7  ;;  %v1104_v7 = vmul.f32 %v6650_v9, %v6501_v33 }
 0x58b   :  { %v1025_v36 = vpop.permute.xlu1 %1024  ;;  %1066 = vrot.lane.b32.xlu0 %v5764_v60, %s6100_s1  ;;  %v1105_v26 = vmul.f32 %v6654_v49, %v6503_v11  ;;  %v6756_v49 = vld [vmem:[%s8279_s4] sm:$0xff]  }
 0x58c   :  { %v5766_v12 = vpop.eup %5765  ;;  %5775 = vtanh.f32 %v1040_v41  ;;  %v1041_v8 = vadd.f32 %v1025_v36, %v6611_v2 }
 0x58d   :  { %1068 = vrot.lane.b32.xlu1 %v5766_v12, %s6100_s1 }
 0x58e   :  { %v5768_v23 = vpop.eup %5767  ;;  %5777 = vtanh.f32 %v1041_v8  ;;  %v6762_v8 = vld [vmem:[%s8279_s4 + $0x8] sm:$0xff]  }
 0x58f   :  { %1070 = vrot.lane.b32.xlu0 %v5768_v23, %s6100_s1 }
 0x590   :  { %v5770_v48 = vpop.eup %5769 }
 0x591   :  { %1072 = vrot.lane.b32.xlu1 %v5770_v48, %s6100_s1  ;;  %v6779_v48 = vld [vmem:[%s8279_s4 + $0x18] sm:$0xff]  }
 0x592   :  { %v5772_v43 = vpop.eup %5771 }
 0x593   :  { %1074 = vrot.lane.b32.xlu0 %v5772_v43, %s6100_s1  ;;  %v6786_v43 = vld [vmem:[%s8276_s2] sm:$0xff]  }
 0x594   :  { %v5774_v20 = vpop.eup %5773 }
 0x595   :  { %1076 = vrot.lane.b32.xlu1 %v5774_v20, %s6100_s1  ;;  %v6795_v20 = vld [vmem:[%s8276_s2 + $0x8] ss:$0 sps:$4 sm:$0xff]  }
 0x596   :  { %v5776_v2 = vpop.eup %5775 }
 0x597   :  { %1078 = vrot.lane.b32.xlu0 %v5776_v2, %s6100_s1 }
 0x598   :  { %v5778_v22 = vpop.eup %5777 }
 0x599   :  { %1080 = vrot.lane.b32.xlu1 %v5778_v22, %s6100_s1 }
 0x5fd   :  { %v1067_v15 = vpop.permute.xlu0 %1066 }
 0x5fe   :  { %v1090_v0 = vmul.f32 %v1067_v15, %v1050_v51 }
 0x5ff   :  { %v1069_v1 = vpop.permute.xlu1 %1068 }
 0x600   :  { %v1091_v54 = vmul.f32 %v1069_v1, %v1051_v52  ;;  %v6698_v62 = vadd.f32 %v1098_v53, %v1090_v0 }
 0x601   :  { %v1071_v57 = vpop.permute.xlu0 %1070 }
 0x602   :  { %v6700_v19 = vadd.f32 %v1099_v10, %v1091_v54  ;;  %v1092_v25 = vmul.f32 %v1071_v57, %v1052_v55 }
 0x603   :  { %v1073_v24 = vpop.permute.xlu1 %1072 }
 0x604   :  { %v1093_v14 = vmul.f32 %v1073_v24, %v1053_v61  ;;  %v1114_v18 = vpack.c.bf16 %v6700_v19, %v6698_v62  ;;  %v6711_v56 = vadd.f32 %v1100_v29, %v1092_v25 }
 0x605   :  { %v1075_v27 = vpop.permute.xlu0 %1074 }
 0x606   :  { %v6713_v35 = vadd.f32 %v1101_v31, %v1093_v14  ;;  %v1094_v38 = vmul.f32 %v1075_v27, %v1054_v32  ;;  %1122 = vrot.lane.b32.xlu0 %v1114_v18, %s6100_s1  ;;  %v1368_v58 = vsel %vm211_vm2, %v6669_v16, %v1114_v18 }
 0x607   :  { %v1077_v59 = vpop.permute.xlu1 %1076 }
 0x608   :  { %v1095_v63 = vmul.f32 %v1077_v59, %v1055_v28  ;;  %v1115_v42 = vpack.c.bf16 %v6713_v35, %v6711_v56  ;;  %v6726_v30 = vadd.f32 %v1102_v34, %v1094_v38  ;;  %v6825_v38 = vld [vmem:[%s8281_s5] ss:$0 sm:$0xff] }
 0x609   :  { %v1079_v6 = vpop.permute.xlu0 %1078 }
 0x60a   :  { %v6728_v60 = vadd.f32 %v1103_v40, %v1095_v63  ;;  %v1096_v16 = vmul.f32 %v1079_v6, %v1056_v4  ;;  %1124 = vrot.lane.b32.xlu1 %v1115_v42, %s6100_s1  ;;  %v1371_v45 = vsel %vm211_vm2, %v6667_v5, %v1115_v42  ;;  %v5663_v40 = vld [vmem:[%s8277_s0 + $0x60] sm:$0xff]   ;;  %v5664_v63 = vld [vmem:[%s8277_s0 + $0x68] sm:$0xff]   ;;  %v5665_v42 = vld [vmem:[%s8277_s0 + $0x70] sm:$0xff]  }
 0x60b   :  { %v1081_v37 = vpop.permute.xlu1 %1080 }
 0x60c   :  { %v1097_v41 = vmul.f32 %v1081_v37, %v1057_v13  ;;  %v1116_v36 = vpack.c.bf16 %v6728_v60, %v6726_v30  ;;  %v6739_v17 = vadd.f32 %v1104_v7, %v1096_v16 }
 0x60e   :  { %v6741_v39 = vadd.f32 %v1105_v26, %v1097_v41  ;;  %1126 = vrot.lane.b32.xlu0 %v1116_v36, %s6100_s1  ;;  %v1374_v5 = vsel %vm211_vm2, %v6683_v44, %v1116_v36  ;;  %v6770_v44 = vld [vmem:[%s8279_s4 + $0x10] sm:$0xff]   ;;  %v5666_v36 = vld [vmem:[%s8277_s0 + $0x78] sm:$0xff]  }
 0x610   :  { %v1117_v12 = vpack.c.bf16 %v6741_v39, %v6739_v17 }
 0x612   :  { %1128 = vrot.lane.b32.xlu1 %v1117_v12, %s6100_s1  ;;  %v1377_v33 = vsel %vm211_vm2, %v6681_v50, %v1117_v12 }
 0x678   :  { %v1123_v11 = vpop.permute.xlu0 %1122 }
 0x679   :  { %5384 = vmatprep.mubr.msk.bf16.mxu1 %vm211_vm2, %v1123_v11 }
 0x67c   :  { %v1125_v9 = vpop.permute.xlu1 %1124 }
 0x67d   :  { %5385 = vmatmul.mubr.msk.bf16.vlgmr.msra.gmra.mrb[16].mxu1 %vm211_vm2, %v1125_v9 }
 0x67e   :  { %5405 = vmatpush3.bf16.msra.mxu1 %v6756_v49 }
 0x67f   :  { %5406 = vmatprep.subr.bf16.mxu1 %v6762_v8 }
 0x680   :  { %v1127_v50 = vpop.permute.xlu0 %1126 }
 0x681   :  { %5388 = vmatprep.mubr.msk.bf16.mxu1 %vm211_vm2, %v1127_v50 }
 0x682   :  { %5407 = vmatpush3.bf16.msra.mxu1 %v6762_v8 }
 0x683   :  { %5408 = vmatprep.subr.bf16.mxu1 %v6770_v44 }
 0x684   :  { %v1129_v23 = vpop.permute.xlu1 %1128 }
 0x685   :  { %5389 = vmatmul.mubr.msk.bf16.gmra.mrb[20].mxu1 %vm211_vm2, %v1129_v23 }
 0x686   :  { %5409 = vmatpush3.bf16.msra.mxu1 %v6770_v44  ;;  %5412 = vmatprep.mubr.msk.bf16.mxu1 %vm254_vm3, %v1368_v58 }
 0x687   :  { %5410 = vmatprep.subr.bf16.mxu1 %v6779_v48 }
 0x68a   :  { %5411 = vmatpush3.bf16.msra.mxu1 %v6779_v48 }
 0x68b   :  { %5432 = vmatprep.subr.bf16.mxu1 %v6786_v43 }
 0x68d   :  { %5413 = vmatmul.mubr.msk.bf16.vlgmr.msra.gmra.mrb[24].mxu1 %vm254_vm3, %v1371_v45 }
 0x68e   :  { %5416 = vmatprep.mubr.msk.bf16.mxu1 %vm254_vm3, %v1374_v5  ;;  %5433 = vmatpush3.bf16.msra.mxu1 %v6786_v43 }
 0x68f   :  { %5635 = vmatprep.subr.msk.bf16.mxu1 %vm114_vm0, %v6795_v20 }
 0x692   :  { %5435 = vmatpush3.bf16.msra.mxu1 %v6170_v3 }
 0x693   :  { %5460 = vmatprep.subr.bf16.mxu1 %v6439_v46 }
 0x695   :  { %5417 = vmatmul.mubr.msk.bf16.gmra.mrb[28].mxu1 %vm254_vm3, %v1377_v33 }
 0x696   :  { %5436 = vmatprep.mubr.msk.bf16.mxu1 %vm101_vm1, %v5663_v40 }
 0x69d   :  { %5437 = vmatmul.mubr.msk.bf16.vlgmr.msra.gmra.mrb[32].mxu1 %vm101_vm1, %v5664_v63 }
 0x69e   :  { %5440 = vmatprep.mubr.msk.bf16.mxu1 %vm101_vm1, %v5665_v42  ;;  %5461 = vmatpush3.bf16.msra.mxu1 %v6439_v46 }
 0x69f   :  { %5462 = vmatprep.subr.bf16.mxu1 %v6444_v47 }
 0x6a2   :  { %5463 = vmatpush3.bf16.msra.mxu1 %v6444_v47 }
 0x6a3   :  { %5484 = vmatprep.subr.bf16.mxu1 %v6756_v49 }
 0x6a5   :  { %5441 = vmatmul.mubr.msk.bf16.gmra.mrb[36].mxu1 %vm101_vm1, %v5666_v36 }
 0x750   :  { %v5386_v2 = vpop.f32.mrb[16].mxu1 }
 0x751   :  { %v1176_v22 = vpop.f32.mrb[17].mxu1  ;;  %v1185_v15 = vadd.f32 %v5386_v2, %v6537_v21 }
 0x752   :  { %v5387_v51 = vpop.f32.mrb[18].mxu1  ;;  %v1177_v1 = vadd.f32 %v6537_v21, %v1176_v22 }
 0x753   :  { %v1188_v0 = vadd.f32 %v5387_v51, %v6537_v21  ;;  %v1179_v52 = vpop.f32.mrb[19].mxu1 }
 0x754   :  { %v1180_v53 = vadd.f32 %v6537_v21, %v1179_v52 }
 0x755   :  { %v4989_v10 = vpack.c.bf16 %v1188_v0, %v1185_v15 }
 0x756   :  { %v4984_v54 = vpack.c.bf16 %v1180_v53, %v1177_v1 }
 0x757   :  { %5125 = vst [vmem:[%s8284_s8 + $0x28] sm:$0xff] %v4989_v10  }
 0x758   :  { %5124 = vst [vmem:[%s8284_s8 + $0x20] sm:$0xff] %v4984_v54   ;;  %v5390_v55 = vpop.f32.mrb[20].mxu1 }
 0x759   :  { %v1192_v57 = vpop.f32.mrb[21].mxu1  ;;  %v1201_v61 = vadd.f32 %v5390_v55, %v6537_v21 }
 0x75a   :  { %v5391_v25 = vpop.f32.mrb[22].mxu1  ;;  %v1193_v31 = vadd.f32 %v6537_v21, %v1192_v57 }
 0x75b   :  { %v1204_v29 = vadd.f32 %v5391_v25, %v6537_v21  ;;  %v1195_v24 = vpop.f32.mrb[23].mxu1 }
 0x75c   :  { %v1196_v14 = vadd.f32 %v6537_v21, %v1195_v24 }
 0x75d   :  { %v4999_v32 = vpack.c.bf16 %v1204_v29, %v1201_v61 }
 0x75e   :  { %v4994_v18 = vpack.c.bf16 %v1196_v14, %v1193_v31 }
 0x75f   :  { %5127 = vst [vmem:[%s8284_s8 + $0x38] sm:$0xff] %v4999_v32  }
 0x760   :  { %5126 = vst [vmem:[%s8284_s8 + $0x30] sm:$0xff] %v4994_v18   ;;  %v5414_v27 = vpop.f32.mrb[24].mxu1 }
 0x761   :  { %v1420_v28 = vpop.f32.mrb[25].mxu1  ;;  %v6836_v34 = vadd.f32 %v6825_v38, %v5414_v27 }
 0x762   :  { %v6828_v58 = vadd.f32 %v6825_v38, %v1420_v28  ;;  %v5415_v21 = vpop.f32.mrb[26].mxu1 }
 0x763   :  { %v1423_v59 = vpop.f32.mrb[27].mxu1  ;;  %v6850_v6 = vadd.f32 %v6825_v38, %v5415_v21  ;;  %v4631_v33 = vmul.f32 -1.442695, %v6836_v34 }
 0x764   :  { %v6831_v4 = vadd.f32 %v6825_v38, %v1423_v59  ;;  %1507 = vrot.lane.b32.xlu0 %v6828_v58, %s6098_s14  ;;  %v4629_v5 = vmul.f32 -1.442695, %v6828_v58 }
 0x765   :  { %v4632_v47 = vmul.f32 -1.442695, %v6850_v6 }
 0x766   :  { %1509 = vrot.lane.b32.xlu1 %v6831_v4, %s6098_s14  ;;  %v4630_v12 = vmul.f32 -1.442695, %v6831_v4  ;;  %5779 = vpow2.f32 %v4629_v5 }
 0x768   :  { %v5418_v13 = vpop.f32.mrb[28].mxu1  ;;  %1511 = vrot.lane.b32.xlu0 %v6836_v34, %s6098_s14  ;;  %5781 = vpow2.f32 %v4630_v12 }
 0x769   :  { %v1436_v16 = vpop.f32.mrb[29].mxu1  ;;  %v6870_v41 = vadd.f32 %v6825_v38, %v5418_v13  ;;  %5783 = vpow2.f32 %v4631_v33 }
 0x76a   :  { %v6856_v45 = vadd.f32 %v6825_v38, %v1436_v16  ;;  %v5419_v37 = vpop.f32.mrb[30].mxu1  ;;  %1513 = vrot.lane.b32.xlu1 %v6850_v6, %s6098_s14  ;;  %5785 = vpow2.f32 %v4632_v47 }
 0x76b   :  { %v1439_v7 = vpop.f32.mrb[31].mxu1  ;;  %v6879_v46 = vadd.f32 %v6825_v38, %v5419_v37  ;;  %v4635_v50 = vmul.f32 -1.442695, %v6870_v41 }
 0x76c   :  { %v6864_v26 = vadd.f32 %v6825_v38, %v1439_v7  ;;  %1515 = vrot.lane.b32.xlu0 %v6856_v45, %s6098_s14  ;;  %v4633_v11 = vmul.f32 -1.442695, %v6856_v45 }
 0x76d   :  { %v4636_v2 = vmul.f32 -1.442695, %v6879_v46 }
 0x76e   :  { %1517 = vrot.lane.b32.xlu1 %v6864_v26, %s6098_s14  ;;  %v4634_v9 = vmul.f32 -1.442695, %v6864_v26  ;;  %5787 = vpow2.f32 %v4633_v11 }
 0x770   :  { %1519 = vrot.lane.b32.xlu0 %v6870_v41, %s6098_s14  ;;  %v5780_v23 = vpop.eup %5779  ;;  %5789 = vpow2.f32 %v4634_v9 }
 0x771   :  { %5791 = vpow2.f32 %v4635_v50  ;;  %v1475_v51 = vadd.f32 1.0, %v5780_v23 }
 0x772   :  { %1521 = vrot.lane.b32.xlu1 %v6879_v46, %s6098_s14  ;;  %v5782_v22 = vpop.eup %5781  ;;  %5793 = vpow2.f32 %v4636_v2  ;;  %v5438_v2 = vpop.f32.mrb[32].mxu1 }
 0x773   :  { %v5784_v15 = vpop.eup %5783  ;;  %v1476_v0 = vadd.f32 1.0, %v5782_v22  ;;  %5795 = vrcp.f32 %v1475_v51  ;;  %v1860_v22 = vpop.f32.mrb[33].mxu1  ;;  %v6930_v51 = vld [vmem:[%s8280_s3] ss:$0 sm:$0xff] }
 0x774   :  { %v5786_v52 = vpop.eup %5785  ;;  %v1477_v1 = vadd.f32 1.0, %v5784_v15  ;;  %v1869_v15 = vadd.f32 %v6930_v51, %v5438_v2 }
 0x775   :  { %v1478_v10 = vadd.f32 1.0, %v5786_v52  ;;  %5797 = vrcp.f32 %v1476_v0  ;;  %v1861_v0 = vadd.f32 %v6930_v51, %v1860_v22 }
 0x776   :  { %5799 = vrcp.f32 %v1477_v1 }
 0x777   :  { %5801 = vrcp.f32 %v1478_v10 }
 0x778   :  { %v5788_v53 = vpop.eup %5787 }
 0x779   :  { %v1479_v55 = vadd.f32 1.0, %v5788_v53  ;;  %v5439_v53 = vpop.f32.mrb[34].mxu1 }
 0x77a   :  { %v5790_v54 = vpop.eup %5789 }
 0x77b   :  { %v5792_v57 = vpop.eup %5791  ;;  %v1480_v25 = vadd.f32 1.0, %v5790_v54  ;;  %5803 = vrcp.f32 %v1479_v55  ;;  %v1893_v54 = vmax.f32 %v1869_v15, 0.0  ;;  %v1891_v55 = vmax.f32 %v1861_v0, 0.0 }
 0x77c   :  { %v5794_v61 = vpop.eup %5793  ;;  %v1481_v29 = vadd.f32 1.0, %v5792_v57  ;;  %v1863_v57 = vpop.f32.mrb[35].mxu1 }
 0x77d   :  { %v6895_v24 = vpop.eup %5795  ;;  %v1482_v31 = vadd.f32 1.0, %v5794_v61  ;;  %5805 = vrcp.f32 %v1480_v25  ;;  %v1872_v61 = vadd.f32 %v6930_v51, %v5439_v53 }
 0x77e   :  { %5807 = vrcp.f32 %v1481_v29  ;;  %v1864_v29 = vadd.f32 %v6930_v51, %v1863_v57 }
 0x77f   :  { %v6898_v18 = vpop.eup %5797  ;;  %5809 = vrcp.f32 %v1482_v31 }
 0x780   :  { %v6902_v21 = vpop.eup %5799 }
 0x781   :  { %v6906_v63 = vpop.eup %5801 }
 0x785   :  { %v6910_v16 = vpop.eup %5803 }
 0x787   :  { %v6914_v36 = vpop.eup %5805 }
 0x788   :  { %v6918_v33 = vpop.eup %5807 }
 0x789   :  { %v6922_v9 = vpop.eup %5809 }
 0x7d6   :  { %v1508_v14 = vpop.permute.xlu0 %1507 }
 0x7d7   :  { %v1531_v32 = vmul.f32 %v6895_v24, %v1508_v14 }
 0x7d8   :  { %v1510_v27 = vpop.permute.xlu1 %1509 }
 0x7d9   :  { %v1532_v28 = vmul.f32 %v6898_v18, %v1510_v27  ;;  %1547 = vrot.lane.b32.xlu0 %v1531_v32, %s6099_s16  ;;  %v1894_v32 = vmax.f32 %v1872_v61, 0.0  ;;  %v1892_v27 = vmax.f32 %v1864_v29, 0.0  ;;  %v1587_v29 = vsub.f32 1.0, %v6895_v24 }
 0x7da   :  { %v1512_v59 = vpop.permute.xlu0 %1511 }
 0x7db   :  { %v1533_v40 = vmul.f32 %v6902_v21, %v1512_v59  ;;  %1549 = vrot.lane.b32.xlu1 %v1532_v28, %s6099_s16  ;;  %v6940_v59 = vpack.c.bf16 %v1894_v32, %v1893_v54  ;;  %v1588_v32 = vsub.f32 1.0, %v6898_v18 }
 0x7dc   :  { %v1514_v42 = vpop.permute.xlu1 %1513 }
 0x7dd   :  { %v1534_v13 = vmul.f32 %v6906_v63, %v1514_v42  ;;  %1551 = vrot.lane.b32.xlu0 %v1533_v40, %s6099_s16  ;;  %v6942_v40 = vpack.c.bf16 %v1892_v27, %v1891_v55  ;;  %v5442_v42 = vpop.f32.mrb[36].mxu1 }
 0x7de   :  { %v1516_v37 = vpop.permute.xlu0 %1515 }
 0x7df   :  { %v1535_v7 = vmul.f32 %v6910_v16, %v1516_v37  ;;  %1553 = vrot.lane.b32.xlu1 %v1534_v13, %s6099_s16  ;;  %v1876_v13 = vpop.f32.mrb[37].mxu1 }
 0x7e0   :  { %v1518_v5 = vpop.permute.xlu1 %1517 }
 0x7e1   :  { %v1536_v12 = vmul.f32 %v6914_v36, %v1518_v5  ;;  %1555 = vrot.lane.b32.xlu0 %v1535_v7, %s6099_s16  ;;  %v1885_v7 = vadd.f32 %v6930_v51, %v5442_v42  ;;  %v5443_v5 = vpop.f32.mrb[38].mxu1 }
 0x7e2   :  { %v1520_v47 = vpop.permute.xlu0 %1519  ;;  %v1888_v2 = vadd.f32 %v6930_v51, %v5443_v5  ;;  %v1590_v5 = vsub.f32 1.0, %v6906_v63 }
 0x7e3   :  { %v1537_v11 = vmul.f32 %v6918_v33, %v1520_v47  ;;  %1557 = vrot.lane.b32.xlu1 %v1536_v12, %s6099_s16  ;;  %v1879_v47 = vpop.f32.mrb[39].mxu1 }
 0x7e4   :  { %v1522_v50 = vpop.permute.xlu1 %1521  ;;  %v1880_v22 = vadd.f32 %v6930_v51, %v1879_v47 }
 0x7e5   :  { %v1538_v23 = vmul.f32 %v6922_v9, %v1522_v50  ;;  %1559 = vrot.lane.b32.xlu0 %v1537_v11, %s6099_s16  ;;  %v1897_v50 = vmax.f32 %v1885_v7, 0.0 }
 0x7e7   :  { %1561 = vrot.lane.b32.xlu1 %v1538_v23, %s6099_s16 }
 0x84b   :  { %v1548_v52 = vpop.permute.xlu0 %1547 }
 0x84c   :  { %v1571_v1 = vadd.f32 %v1548_v52, %v6828_v58  ;;  %v1898_v52 = vmax.f32 %v1888_v2, 0.0 }
 0x84d   :  { %v1550_v10 = vpop.permute.xlu1 %1549 }
 0x84e   :  { %5811 = vtanh.f32 %v1571_v1  ;;  %v1572_v25 = vadd.f32 %v1550_v10, %v6831_v4  ;;  %v1896_v1 = vmax.f32 %v1880_v22, 0.0  ;;  %v6954_v10 = vpack.c.bf16 %v1898_v52, %v1897_v50 }
 0x84f   :  { %v1552_v31 = vpop.permute.xlu0 %1551  ;;  %v1640_v22 = vmul.f32 %v6914_v36, %v6728_v60  ;;  %v1594_v52 = vsub.f32 1.0, %v6922_v9  ;;  %v1641_v60 = vmul.f32 %v6918_v33, %v6739_v17 }
 0x850   :  { %5813 = vtanh.f32 %v1572_v25  ;;  %v1573_v14 = vadd.f32 %v1552_v31, %v6836_v34  ;;  %v1877_v34 = vadd.f32 %v6930_v51, %v1876_v13 }
 0x851   :  { %v1554_v28 = vpop.permute.xlu1 %1553 }
 0x852   :  { %5815 = vtanh.f32 %v1573_v14  ;;  %v1574_v58 = vadd.f32 %v1554_v28, %v6850_v6  ;;  %v1895_v23 = vmax.f32 %v1877_v34, 0.0  ;;  %v1635_v28 = vmul.f32 %v6895_v24, %v6698_v62 }
 0x853   :  { %v1556_v4 = vpop.permute.xlu0 %1555  ;;  %v1638_v62 = vmul.f32 %v6906_v63, %v6713_v35  ;;  %v1639_v63 = vmul.f32 %v6910_v16, %v6726_v30 }
 0x854   :  { %5817 = vtanh.f32 %v1574_v58  ;;  %v1575_v37 = vadd.f32 %v1556_v4, %v6856_v45  ;;  %v6956_v54 = vpack.c.bf16 %v1896_v1, %v1895_v23  ;;  %v1636_v58 = vmul.f32 %v6898_v18, %v6700_v19 }
 0x855   :  { %v1558_v12 = vpop.permute.xlu1 %1557  ;;  %v1589_v4 = vsub.f32 1.0, %v6902_v21  ;;  %v1591_v19 = vsub.f32 1.0, %v6910_v16 }
 0x856   :  { %5819 = vtanh.f32 %v1575_v37  ;;  %v1576_v6 = vadd.f32 %v1558_v12, %v6864_v26  ;;  %v1637_v12 = vmul.f32 %v6902_v21, %v6711_v56  ;;  %v1593_v21 = vsub.f32 1.0, %v6918_v33 }
 0x857   :  { %v1560_v11 = vpop.permute.xlu0 %1559 }
 0x858   :  { %v5812_v15 = vpop.eup %5811  ;;  %5821 = vtanh.f32 %v1576_v6  ;;  %v1577_v45 = vadd.f32 %v1560_v11, %v6870_v41  ;;  %v1592_v11 = vsub.f32 1.0, %v6914_v36  ;;  %v1642_v36 = vmul.f32 %v6922_v9, %v6741_v39 }
 0x859   :  { %v1562_v0 = vpop.permute.xlu1 %1561  ;;  %1603 = vrot.lane.b32.xlu0 %v5812_v15, %s6100_s1 }
 0x85a   :  { %v5814_v53 = vpop.eup %5813  ;;  %5823 = vtanh.f32 %v1577_v45  ;;  %v1578_v26 = vadd.f32 %v1562_v0, %v6879_v46 }
 0x85b   :  { %1605 = vrot.lane.b32.xlu1 %v5814_v53, %s6100_s1 }
 0x85c   :  { %v5816_v55 = vpop.eup %5815  ;;  %5825 = vtanh.f32 %v1578_v26 }
 0x85d   :  { %1607 = vrot.lane.b32.xlu0 %v5816_v55, %s6100_s1 }
 0x85e   :  { %v5818_v41 = vpop.eup %5817 }
 0x85f   :  { %1609 = vrot.lane.b32.xlu1 %v5818_v41, %s6100_s1 }
 0x860   :  { %v5820_v57 = vpop.eup %5819 }
 0x861   :  { %1611 = vrot.lane.b32.xlu0 %v5820_v57, %s6100_s1 }
 0x862   :  { %v5822_v25 = vpop.eup %5821 }
 0x863   :  { %1613 = vrot.lane.b32.xlu1 %v5822_v25, %s6100_s1 }
 0x864   :  { %v5824_v46 = vpop.eup %5823 }
 0x865   :  { %1615 = vrot.lane.b32.xlu0 %v5824_v46, %s6100_s1 }
 0x866   :  { %v5826_v61 = vpop.eup %5825 }
 0x867   :  { %1617 = vrot.lane.b32.xlu1 %v5826_v61, %s6100_s1 }
 0x8cb   :  { %v1604_v31 = vpop.permute.xlu0 %1603 }
 0x8cc   :  { %v1627_v14 = vmul.f32 %v1604_v31, %v1587_v29 }
 0x8cd   :  { %v1606_v27 = vpop.permute.xlu1 %1605 }
 0x8ce   :  { %v1628_v42 = vmul.f32 %v1606_v27, %v1588_v32  ;;  %v6971_v37 = vadd.f32 %v1635_v28, %v1627_v14 }
 0x8cf   :  { %v1608_v13 = vpop.permute.xlu0 %1607 }
 0x8d0   :  { %v6973_v7 = vadd.f32 %v1636_v58, %v1628_v42  ;;  %v1629_v34 = vmul.f32 %v1608_v13, %v1589_v4 }
 0x8d1   :  { %v1610_v47 = vpop.permute.xlu1 %1609 }
 0x8d2   :  { %v1630_v24 = vmul.f32 %v1610_v47, %v1590_v5  ;;  %v1651_v18 = vpack.c.bf16 %v6973_v7, %v6971_v37  ;;  %v6984_v50 = vadd.f32 %v1637_v12, %v1629_v34 }
 0x8d3   :  { %v1612_v6 = vpop.permute.xlu0 %1611 }
 0x8d4   :  { %v6986_v23 = vadd.f32 %v1638_v62, %v1630_v24  ;;  %v1631_v2 = vmul.f32 %v1612_v6, %v1591_v19  ;;  %1659 = vrot.lane.b32.xlu0 %v1651_v18, %s6100_s1  ;;  %v1905_v56 = vsel %vm211_vm2, %v6942_v40, %v1651_v18 }
 0x8d5   :  { %v1614_v35 = vpop.permute.xlu1 %1613 }
 0x8d6   :  { %v1632_v15 = vmul.f32 %v1614_v35, %v1592_v11  ;;  %v1652_v45 = vpack.c.bf16 %v6986_v23, %v6984_v50  ;;  %v6999_v1 = vadd.f32 %v1639_v63, %v1631_v2  ;;  %v5668_v35 = vld [vmem:[%s8277_s0 + $0x88] sm:$0xff]  }
 0x8d7   :  { %v1616_v0 = vpop.permute.xlu0 %1615 }
 0x8d8   :  { %v7001_v53 = vadd.f32 %v1640_v22, %v1632_v15  ;;  %v1633_v40 = vmul.f32 %v1616_v0, %v1593_v21  ;;  %1661 = vrot.lane.b32.xlu1 %v1652_v45, %s6100_s1  ;;  %v1908_v30 = vsel %vm211_vm2, %v6940_v59, %v1652_v45  ;;  %v5669_v21 = vld [vmem:[%s8277_s0 + $0x90] sm:$0xff]  }
 0x8d9   :  { %v1618_v16 = vpop.permute.xlu1 %1617 }
 0x8da   :  { %v1634_v26 = vmul.f32 %v1618_v16, %v1594_v52  ;;  %v1653_v55 = vpack.c.bf16 %v7001_v53, %v6999_v1  ;;  %v7012_v41 = vadd.f32 %v1641_v60, %v1633_v40  ;;  %v5670_v60 = vld [vmem:[%s8277_s0 + $0x98] sm:$0xff]  }
 0x8dc   :  { %v7014_v57 = vadd.f32 %v1642_v36, %v1634_v26  ;;  %1663 = vrot.lane.b32.xlu0 %v1653_v55, %s6100_s1  ;;  %v1911_v59 = vsel %vm211_vm2, %v6956_v54, %v1653_v55 }
 0x8de   :  { %v1654_v25 = vpack.c.bf16 %v7014_v57, %v7012_v41 }
 0x8e0   :  { %1665 = vrot.lane.b32.xlu1 %v1654_v25, %s6100_s1  ;;  %v1914_v17 = vsel %vm211_vm2, %v6954_v10, %v1654_v25 }
 0x946   :  { %v1660_v39 = vpop.permute.xlu0 %1659 }
 0x947   :  { %5424 = vmatprep.mubr.msk.bf16.mxu0 %vm211_vm2, %v1660_v39 }
 0x94a   :  { %v1662_v33 = vpop.permute.xlu1 %1661 }
 0x94b   :  { %5425 = vmatmul.mubr.msk.bf16.vlgmr.msra.gmra.mrb[32].mxu0 %vm211_vm2, %v1662_v33 }
 0x94c   :  { %5445 = vmatpush3.bf16.msra.mxu0 %v6756_v49 }
 0x94d   :  { %5446 = vmatprep.subr.bf16.mxu0 %v6762_v8 }
 0x94e   :  { %v1664_v9 = vpop.permute.xlu0 %1663 }
 0x94f   :  { %5428 = vmatprep.mubr.msk.bf16.mxu0 %vm211_vm2, %v1664_v9 }
 0x950   :  { %5447 = vmatpush3.bf16.msra.mxu0 %v6762_v8  ;;  %v7046_v8 = vld [vmem:[%s8282_s6] sm:$0xff]  }
 0x951   :  { %5448 = vmatprep.subr.bf16.mxu0 %v6770_v44 }
 0x952   :  { %v1666_v54 = vpop.permute.xlu1 %1665 }
 0x953   :  { %5429 = vmatmul.mubr.msk.bf16.gmra.mrb[36].mxu0 %vm211_vm2, %v1666_v54 }
 0x954   :  { %5449 = vmatpush3.bf16.msra.mxu0 %v6770_v44  ;;  %5452 = vmatprep.mubr.msk.bf16.mxu0 %vm254_vm3, %v1905_v56  ;;  %v5667_v56 = vld [vmem:[%s8277_s0 + $0x80] sm:$0xff]  }
 0x955   :  { %5450 = vmatprep.subr.bf16.mxu0 %v6779_v48 }
 0x958   :  { %5451 = vmatpush3.bf16.msra.mxu0 %v6779_v48 }
 0x959   :  { %5472 = vmatprep.subr.bf16.mxu0 %v6786_v43 }
 0x95b   :  { %5453 = vmatmul.mubr.msk.bf16.vlgmr.msra.gmra.mrb[40].mxu0 %vm254_vm3, %v1908_v30  ;;  %v7119_v30 = vld [vmem:[%s8282_s6 + $0x8] sm:$0xff]  }
 0x95c   :  { %5456 = vmatprep.mubr.msk.bf16.mxu0 %vm254_vm3, %v1911_v59  ;;  %5473 = vmatpush3.bf16.msra.mxu0 %v6786_v43  ;;  %v7053_v43 = vld [vmem:[%s8283_s7] ss:$0 sm:$0xff] }
 0x95d   :  { %5636 = vmatprep.subr.msk.bf16.mxu0 %vm114_vm0, %v6795_v20 }
 0x960   :  { %5475 = vmatpush3.bf16.msra.mxu0 %v6170_v3 }
 0x961   :  { %5500 = vmatprep.subr.bf16.mxu0 %v7046_v8 }
 0x963   :  { %5457 = vmatmul.mubr.msk.bf16.gmra.mrb[44].mxu0 %vm254_vm3, %v1914_v17 }
 0x964   :  { %5476 = vmatprep.mubr.msk.bf16.mxu0 %vm101_vm1, %v5667_v56 }
 0x96b   :  { %5477 = vmatmul.mubr.msk.bf16.vlgmr.msra.gmra.mrb[48].mxu0 %vm101_vm1, %v5668_v35 }
 0x96c   :  { %5480 = vmatprep.mubr.msk.bf16.mxu0 %vm101_vm1, %v5669_v21  ;;  %5501 = vmatpush3.bf16.msra.mxu0 %v7046_v8 }
 0x96d   :  { %5502 = vmatprep.subr.bf16.mxu0 %v7119_v30 }
 0x970   :  { %5503 = vmatpush3.bf16.msra.mxu0 %v7119_v30 }
 0x971   :  { %5524 = vmatprep.subr.bf16.mxu0 %v6756_v49 }
 0x973   :  { %5481 = vmatmul.mubr.msk.bf16.gmra.mrb[52].mxu0 %vm101_vm1, %v5670_v60 }
 0xa1e   :  { %v5426_v44 = vpop.f32.mrb[32].mxu0 }
 0xa1f   :  { %v1713_v48 = vpop.f32.mrb[33].mxu0  ;;  %v1722_v20 = vadd.f32 %v7053_v43, %v5426_v44 }
 0xa20   :  { %v5427_v10 = vpop.f32.mrb[34].mxu0  ;;  %v1714_v29 = vadd.f32 %v7053_v43, %v1713_v48 }
 0xa21   :  { %v1725_v46 = vadd.f32 %v7053_v43, %v5427_v10  ;;  %v1716_v61 = vpop.f32.mrb[35].mxu0 }
 0xa22   :  { %v1717_v31 = vadd.f32 %v7053_v43, %v1716_v61 }
 0xa23   :  { %v5009_v14 = vpack.c.bf16 %v1725_v46, %v1722_v20 }
 0xa24   :  { %v5004_v32 = vpack.c.bf16 %v1717_v31, %v1714_v29 }
 0xa25   :  { %5129 = vst [vmem:[%s8284_s8 + $0x48] sm:$0xff] %v5009_v14  }
 0xa26   :  { %5128 = vst [vmem:[%s8284_s8 + $0x40] sm:$0xff] %v5004_v32   ;;  %v5430_v27 = vpop.f32.mrb[36].mxu0 }
 0xa27   :  { %v1729_v28 = vpop.f32.mrb[37].mxu0  ;;  %v1738_v42 = vadd.f32 %v7053_v43, %v5430_v27 }
 0xa28   :  { %v5431_v58 = vpop.f32.mrb[38].mxu0  ;;  %v1730_v34 = vadd.f32 %v7053_v43, %v1729_v28 }
 0xa29   :  { %v1741_v4 = vadd.f32 %v7053_v43, %v5431_v58  ;;  %v1732_v13 = vpop.f32.mrb[39].mxu0 }
 0xa2a   :  { %v1733_v5 = vadd.f32 %v7053_v43, %v1732_v13 }
 0xa2b   :  { %v5019_v12 = vpack.c.bf16 %v1741_v4, %v1738_v42 }
 0xa2c   :  { %v5014_v47 = vpack.c.bf16 %v1733_v5, %v1730_v34 }
 0xa2d   :  { %5131 = vst [vmem:[%s8284_s8 + $0x58] sm:$0xff] %v5019_v12  }
 0xa2e   :  { %5130 = vst [vmem:[%s8284_s8 + $0x50] sm:$0xff] %v5014_v47   ;;  %v5454_v62 = vpop.f32.mrb[40].mxu0 }
 0xa2f   :  { %v1957_v24 = vpop.f32.mrb[41].mxu0  ;;  %v7084_v2 = vadd.f32 %v6825_v38, %v5454_v62 }
 0xa30   :  { %v7076_v19 = vadd.f32 %v6825_v38, %v1957_v24  ;;  %v5455_v18 = vpop.f32.mrb[42].mxu0 }
 0xa31   :  { %v1960_v6 = vpop.f32.mrb[43].mxu0  ;;  %v7098_v63 = vadd.f32 %v6825_v38, %v5455_v18  ;;  %v4679_v59 = vmul.f32 -1.442695, %v7084_v2 }
 0xa32   :  { %v7079_v11 = vadd.f32 %v6825_v38, %v1960_v6  ;;  %2044 = vrot.lane.b32.xlu0 %v7076_v19, %s6098_s14  ;;  %v4677_v26 = vmul.f32 -1.442695, %v7076_v19 }
 0xa34   :  { %2046 = vrot.lane.b32.xlu1 %v7079_v11, %s6098_s14  ;;  %v4678_v55 = vmul.f32 -1.442695, %v7079_v11  ;;  %5827 = vpow2.f32 %v4677_v26 }
 0xa36   :  { %v5458_v22 = vpop.f32.mrb[44].mxu0  ;;  %2048 = vrot.lane.b32.xlu0 %v7084_v2, %s6098_s14  ;;  %5829 = vpow2.f32 %v4678_v55 }
 0xa37   :  { %v1973_v15 = vpop.f32.mrb[45].mxu0  ;;  %v7123_v16 = vadd.f32 %v6825_v38, %v5458_v22  ;;  %5831 = vpow2.f32 %v4679_v59 }
 0xa38   :  { %v7104_v45 = vadd.f32 %v6825_v38, %v1973_v15  ;;  %v5459_v0 = vpop.f32.mrb[46].mxu0  ;;  %2050 = vrot.lane.b32.xlu1 %v7098_v63, %s6098_s14 }
 0xa39   :  { %v1976_v52 = vpop.f32.mrb[47].mxu0  ;;  %v7132_v36 = vadd.f32 %v6825_v38, %v5459_v0  ;;  %v4683_v17 = vmul.f32 -1.442695, %v7123_v16 }
 0xa3a   :  { %v7112_v40 = vadd.f32 %v6825_v38, %v1976_v52  ;;  %2052 = vrot.lane.b32.xlu0 %v7104_v45, %s6098_s14  ;;  %v4680_v38 = vmul.f32 -1.442695, %v7098_v63  ;;  %v4681_v25 = vmul.f32 -1.442695, %v7104_v45 }
 0xa3b   :  { %v4684_v33 = vmul.f32 -1.442695, %v7132_v36 }
 0xa3c   :  { %2054 = vrot.lane.b32.xlu1 %v7112_v40, %s6098_s14  ;;  %5833 = vpow2.f32 %v4680_v38  ;;  %v4682_v49 = vmul.f32 -1.442695, %v7112_v40 }
 0xa3d   :  { %5835 = vpow2.f32 %v4681_v25 }
 0xa3e   :  { %2056 = vrot.lane.b32.xlu0 %v7123_v16, %s6098_s14  ;;  %v5828_v39 = vpop.eup %5827  ;;  %5837 = vpow2.f32 %v4682_v49  ;;  %v5478_v49 = vpop.f32.mrb[48].mxu0 }
 0xa3f   :  { %5839 = vpow2.f32 %v4683_v17  ;;  %v2012_v54 = vadd.f32 1.0, %v5828_v39  ;;  %v2397_v17 = vpop.f32.mrb[49].mxu0  ;;  %v2406_v39 = vadd.f32 %v6930_v51, %v5478_v49 }
 0xa40   :  { %2058 = vrot.lane.b32.xlu1 %v7132_v36, %s6098_s14  ;;  %v5830_v9 = vpop.eup %5829  ;;  %5841 = vpow2.f32 %v4684_v33  ;;  %v2398_v33 = vadd.f32 %v6930_v51, %v2397_v17 }
 0xa41   :  { %v5832_v44 = vpop.eup %5831  ;;  %v2013_v48 = vadd.f32 1.0, %v5830_v9  ;;  %5843 = vrcp.f32 %v2012_v54 }
 0xa42   :  { %v2014_v20 = vadd.f32 1.0, %v5832_v44  ;;  %v5479_v44 = vpop.f32.mrb[50].mxu0 }
 0xa43   :  { %5845 = vrcp.f32 %v2013_v48 }
 0xa44   :  { %5847 = vrcp.f32 %v2014_v20  ;;  %v2428_v20 = vmax.f32 %v2398_v33, 0.0 }
 0xa46   :  { %v5834_v10 = vpop.eup %5833 }
 0xa47   :  { %v5836_v46 = vpop.eup %5835  ;;  %v2015_v61 = vadd.f32 1.0, %v5834_v10  ;;  %v2430_v10 = vmax.f32 %v2406_v39, 0.0 }
 0xa48   :  { %v5838_v29 = vpop.eup %5837  ;;  %v2016_v31 = vadd.f32 1.0, %v5836_v46  ;;  %v2400_v46 = vpop.f32.mrb[51].mxu0 }
 0xa49   :  { %v5840_v14 = vpop.eup %5839  ;;  %5849 = vrcp.f32 %v2015_v61  ;;  %v2017_v32 = vadd.f32 1.0, %v5838_v29  ;;  %v2409_v29 = vadd.f32 %v6930_v51, %v5479_v44 }
 0xa4a   :  { %v5842_v27 = vpop.eup %5841  ;;  %v2018_v28 = vadd.f32 1.0, %v5840_v14  ;;  %5851 = vrcp.f32 %v2016_v31  ;;  %v2401_v31 = vadd.f32 %v6930_v51, %v2400_v46 }
 0xa4b   :  { %v7148_v58 = vpop.eup %5843  ;;  %v2019_v42 = vadd.f32 1.0, %v5842_v27  ;;  %5853 = vrcp.f32 %v2017_v32  ;;  %v2431_v27 = vmax.f32 %v2409_v29, 0.0 }
 0xa4c   :  { %5855 = vrcp.f32 %v2018_v28  ;;  %v2429_v28 = vmax.f32 %v2401_v31, 0.0  ;;  %v2172_v31 = vmul.f32 %v7148_v58, %v6971_v37 }
 0xa4d   :  { %v7151_v34 = vpop.eup %5845  ;;  %5857 = vrcp.f32 %v2019_v42 }
 0xa4e   :  { %v7155_v47 = vpop.eup %5847 }
 0xa53   :  { %v7159_v18 = vpop.eup %5849 }
 0xa54   :  { %v7163_v35 = vpop.eup %5851 }
 0xa55   :  { %v7167_v15 = vpop.eup %5853 }
 0xa56   :  { %v7171_v60 = vpop.eup %5855 }
 0xa57   :  { %v7175_v59 = vpop.eup %5857 }
 0xaa4   :  { %v2045_v4 = vpop.permute.xlu0 %2044 }
 0xaa5   :  { %v2068_v13 = vmul.f32 %v7148_v58, %v2045_v4  ;;  %v7188_v4 = vpack.c.bf16 %v2431_v27, %v2430_v10  ;;  %v2124_v10 = vsub.f32 1.0, %v7148_v58  ;;  %v2126_v27 = vsub.f32 1.0, %v7155_v47 }
 0xaa6   :  { %v2047_v5 = vpop.permute.xlu1 %2046 }
 0xaa7   :  { %v2069_v12 = vmul.f32 %v7151_v34, %v2047_v5  ;;  %2084 = vrot.lane.b32.xlu0 %v2068_v13, %s6099_s16  ;;  %v7190_v13 = vpack.c.bf16 %v2429_v28, %v2428_v20  ;;  %v5482_v5 = vpop.f32.mrb[52].mxu0 }
 0xaa8   :  { %v2049_v62 = vpop.permute.xlu0 %2048 }
 0xaa9   :  { %v2070_v24 = vmul.f32 %v7155_v47, %v2049_v62  ;;  %2086 = vrot.lane.b32.xlu1 %v2069_v12, %s6099_s16  ;;  %v2413_v12 = vpop.f32.mrb[53].mxu0 }
 0xaaa   :  { %v2051_v6 = vpop.permute.xlu1 %2050 }
 0xaab   :  { %v2071_v56 = vmul.f32 %v7159_v18, %v2051_v6  ;;  %2088 = vrot.lane.b32.xlu0 %v2070_v24, %s6099_s16  ;;  %v5483_v24 = vpop.f32.mrb[54].mxu0 }
 0xaac   :  { %v2053_v21 = vpop.permute.xlu0 %2052 }
 0xaad   :  { %v2072_v22 = vmul.f32 %v7163_v35, %v2053_v21  ;;  %2090 = vrot.lane.b32.xlu1 %v2071_v56, %s6099_s16  ;;  %v2416_v56 = vpop.f32.mrb[55].mxu0  ;;  %v2422_v21 = vadd.f32 %v6930_v51, %v5482_v5 }
 0xaae   :  { %v2055_v0 = vpop.permute.xlu1 %2054 }
 0xaaf   :  { %v2073_v52 = vmul.f32 %v7167_v15, %v2055_v0  ;;  %2092 = vrot.lane.b32.xlu0 %v2072_v22, %s6099_s16  ;;  %v2425_v0 = vadd.f32 %v6930_v51, %v5483_v24 }
 0xab0   :  { %v2057_v26 = vpop.permute.xlu0 %2056 }
 0xab1   :  { %v2074_v55 = vmul.f32 %v7171_v60, %v2057_v26  ;;  %2094 = vrot.lane.b32.xlu1 %v2073_v52, %s6099_s16  ;;  %v2417_v52 = vadd.f32 %v6930_v51, %v2416_v56  ;;  %v2435_v49 = vmax.f32 %v2425_v0, 0.0 }
 0xab2   :  { %v2059_v38 = vpop.permute.xlu1 %2058 }
 0xab3   :  { %v2075_v25 = vmul.f32 %v7175_v59, %v2059_v38  ;;  %2096 = vrot.lane.b32.xlu0 %v2074_v55, %s6099_s16 }
 0xab5   :  { %2098 = vrot.lane.b32.xlu1 %v2075_v25, %s6099_s16 }
 0xb19   :  { %v2085_v9 = vpop.permute.xlu0 %2084 }
 0xb1a   :  { %v2108_v54 = vadd.f32 %v2085_v9, %v7076_v19 }
 0xb1b   :  { %v2087_v48 = vpop.permute.xlu1 %2086 }
 0xb1c   :  { %5859 = vtanh.f32 %v2108_v54  ;;  %v2109_v61 = vadd.f32 %v2087_v48, %v7079_v11 }
 0xb1d   :  { %v2089_v14 = vpop.permute.xlu0 %2088 }
 0xb1e   :  { %5861 = vtanh.f32 %v2109_v61  ;;  %v2110_v32 = vadd.f32 %v2089_v14, %v7084_v2  ;;  %v2125_v61 = vsub.f32 1.0, %v7151_v34  ;;  %v2173_v14 = vmul.f32 %v7151_v34, %v6973_v7 }
 0xb1f   :  { %v2091_v42 = vpop.permute.xlu1 %2090  ;;  %v2175_v7 = vmul.f32 %v7159_v18, %v6986_v23  ;;  %v2128_v34 = vsub.f32 1.0, %v7163_v35 }
 0xb20   :  { %5863 = vtanh.f32 %v2110_v32  ;;  %v2111_v19 = vadd.f32 %v2091_v42, %v7098_v63  ;;  %v2414_v63 = vadd.f32 %v6930_v51, %v2413_v12  ;;  %v2174_v12 = vmul.f32 %v7155_v47, %v6984_v50 }
 0xb21   :  { %v2093_v11 = vpop.permute.xlu0 %2092 }
 0xb22   :  { %5865 = vtanh.f32 %v2111_v19  ;;  %v2112_v62 = vadd.f32 %v2093_v11, %v7104_v45  ;;  %v2434_v45 = vmax.f32 %v2422_v21, 0.0  ;;  %v2432_v38 = vmax.f32 %v2414_v63, 0.0 }
 0xb23   :  { %v2095_v6 = vpop.permute.xlu1 %2094  ;;  %v2127_v11 = vsub.f32 1.0, %v7159_v18  ;;  %v2130_v63 = vsub.f32 1.0, %v7171_v60  ;;  %v2176_v18 = vmul.f32 %v7163_v35, %v6999_v1  ;;  %v2179_v35 = vmul.f32 %v7175_v59, %v7014_v57 }
 0xb24   :  { %5867 = vtanh.f32 %v2112_v62  ;;  %v2113_v2 = vadd.f32 %v2095_v6, %v7112_v40  ;;  %v2433_v40 = vmax.f32 %v2417_v52, 0.0  ;;  %v7202_v33 = vpack.c.bf16 %v2435_v49, %v2434_v45 }
 0xb25   :  { %v2097_v22 = vpop.permute.xlu0 %2096  ;;  %v2129_v6 = vsub.f32 1.0, %v7167_v15 }
 0xb26   :  { %v5860_v26 = vpop.eup %5859  ;;  %5869 = vtanh.f32 %v2113_v2  ;;  %v2114_v55 = vadd.f32 %v2097_v22, %v7123_v16  ;;  %v7204_v51 = vpack.c.bf16 %v2433_v40, %v2432_v38  ;;  %v2177_v22 = vmul.f32 %v7167_v15, %v7001_v53 }
 0xb27   :  { %v2099_v25 = vpop.permute.xlu1 %2098  ;;  %2140 = vrot.lane.b32.xlu0 %v5860_v26, %s6100_s1  ;;  %v2131_v26 = vsub.f32 1.0, %v7175_v59  ;;  %v2178_v53 = vmul.f32 %v7171_v60, %v7012_v41  ;;  %v7277_v59 = vld [vmem:[%s8279_s4] sm:$0xff]  }
 0xb28   :  { %v5862_v17 = vpop.eup %5861  ;;  %5871 = vtanh.f32 %v2114_v55  ;;  %v2115_v39 = vadd.f32 %v2099_v25, %v7132_v36 }
 0xb29   :  { %2142 = vrot.lane.b32.xlu1 %v5862_v17, %s6100_s1 }
 0xb2a   :  { %v5864_v9 = vpop.eup %5863  ;;  %5873 = vtanh.f32 %v2115_v39  ;;  %v7283_v39 = vld [vmem:[%s8279_s4 + $0x8] sm:$0xff]  }
 0xb2b   :  { %2144 = vrot.lane.b32.xlu0 %v5864_v9, %s6100_s1 }
 0xb2c   :  { %v5866_v16 = vpop.eup %5865 }
 0xb2d   :  { %2146 = vrot.lane.b32.xlu1 %v5866_v16, %s6100_s1  ;;  %v7300_v16 = vld [vmem:[%s8279_s4 + $0x18] sm:$0xff]  }
 0xb2e   :  { %v5868_v54 = vpop.eup %5867 }
 0xb2f   :  { %2148 = vrot.lane.b32.xlu0 %v5868_v54, %s6100_s1  ;;  %v7307_v54 = vld [vmem:[%s8276_s2] sm:$0xff]  }
 0xb30   :  { %v5870_v44 = vpop.eup %5869 }
 0xb31   :  { %2150 = vrot.lane.b32.xlu1 %v5870_v44, %s6100_s1  ;;  %v7316_v44 = vld [vmem:[%s8276_s2 + $0x8] ss:$0 sps:$4 sm:$0xff]  }
 0xb32   :  { %v5872_v36 = vpop.eup %5871 }
 0xb33   :  { %2152 = vrot.lane.b32.xlu0 %v5872_v36, %s6100_s1 }
 0xb34   :  { %v5874_v48 = vpop.eup %5873 }
 0xb35   :  { %2154 = vrot.lane.b32.xlu1 %v5874_v48, %s6100_s1 }
 0xb99   :  { %v2141_v20 = vpop.permute.xlu0 %2140 }
 0xb9a   :  { %v2164_v46 = vmul.f32 %v2141_v20, %v2124_v10 }
 0xb9b   :  { %v2143_v29 = vpop.permute.xlu1 %2142 }
 0xb9c   :  { %v2165_v32 = vmul.f32 %v2143_v29, %v2125_v61  ;;  %v7219_v42 = vadd.f32 %v2172_v31, %v2164_v46 }
 0xb9d   :  { %v2145_v28 = vpop.permute.xlu0 %2144 }
 0xb9e   :  { %v7221_v19 = vadd.f32 %v2173_v14, %v2165_v32  ;;  %v2166_v5 = vmul.f32 %v2145_v28, %v2126_v27 }
 0xb9f   :  { %v2147_v62 = vpop.permute.xlu1 %2146 }
 0xba0   :  { %v2188_v37 = vpack.c.bf16 %v7221_v19, %v7219_v42  ;;  %v2167_v58 = vmul.f32 %v2147_v62, %v2127_v11  ;;  %v7232_v56 = vadd.f32 %v2174_v12, %v2166_v5 }
 0xba1   :  { %v2149_v24 = vpop.permute.xlu0 %2148 }
 0xba2   :  { %v7234_v2 = vadd.f32 %v2175_v7, %v2167_v58  ;;  %v2168_v21 = vmul.f32 %v2149_v24, %v2128_v34  ;;  %2196 = vrot.lane.b32.xlu0 %v2188_v37, %s6100_s1  ;;  %v2442_v50 = vsel %vm211_vm2, %v7190_v13, %v2188_v37 }
 0xba3   :  { %v2151_v47 = vpop.permute.xlu1 %2150 }
 0xba4   :  { %v2189_v23 = vpack.c.bf16 %v7234_v2, %v7232_v56  ;;  %v2169_v0 = vmul.f32 %v2151_v47, %v2129_v6  ;;  %v7247_v55 = vadd.f32 %v2176_v18, %v2168_v21  ;;  %v7346_v21 = vld [vmem:[%s8281_s5] ss:$0 sm:$0xff] }
 0xba5   :  { %v2153_v52 = vpop.permute.xlu0 %2152  ;;  %v5671_v18 = vld [vmem:[%s8277_s0 + $0xa0] sm:$0xff]  }
 0xba6   :  { %v7249_v45 = vadd.f32 %v2177_v22, %v2169_v0  ;;  %v2170_v13 = vmul.f32 %v2153_v52, %v2130_v63  ;;  %2198 = vrot.lane.b32.xlu1 %v2189_v23, %s6100_s1  ;;  %v2445_v38 = vsel %vm211_vm2, %v7188_v4, %v2189_v23  ;;  %v5672_v22 = vld [vmem:[%s8277_s0 + $0xa8] sm:$0xff]   ;;  %v5673_v0 = vld [vmem:[%s8277_s0 + $0xb0] sm:$0xff]  }
 0xba7   :  { %v2155_v25 = vpop.permute.xlu1 %2154 }
 0xba8   :  { %v2190_v1 = vpack.c.bf16 %v7249_v45, %v7247_v55  ;;  %v2171_v15 = vmul.f32 %v2155_v25, %v2131_v26  ;;  %v7260_v49 = vadd.f32 %v2178_v53, %v2170_v13 }
 0xbaa   :  { %v7262_v40 = vadd.f32 %v2179_v35, %v2171_v15  ;;  %2200 = vrot.lane.b32.xlu0 %v2190_v1, %s6100_s1  ;;  %v2448_v4 = vsel %vm211_vm2, %v7204_v51, %v2190_v1  ;;  %v7291_v51 = vld [vmem:[%s8279_s4 + $0x10] sm:$0xff]   ;;  %v5674_v15 = vld [vmem:[%s8277_s0 + $0xb8] sm:$0xff]  }
 0xbac   :  { %v2191_v17 = vpack.c.bf16 %v7262_v40, %v7260_v49 }
 0xbae   :  { %2202 = vrot.lane.b32.xlu1 %v2191_v17, %s6100_s1  ;;  %v2451_v41 = vsel %vm211_vm2, %v7202_v33, %v2191_v17 }
 0xc14   :  { %v2197_v60 = vpop.permute.xlu0 %2196 }
 0xc15   :  { %5464 = vmatprep.mubr.msk.bf16.mxu1 %vm211_vm2, %v2197_v60 }
 0xc18   :  { %v2199_v57 = vpop.permute.xlu1 %2198 }
 0xc19   :  { %5465 = vmatmul.mubr.msk.bf16.vlgmr.msra.gmra.mrb[40].mxu1 %vm211_vm2, %v2199_v57 }
 0xc1a   :  { %5485 = vmatpush3.bf16.msra.mxu1 %v7277_v59 }
 0xc1b   :  { %5486 = vmatprep.subr.bf16.mxu1 %v7283_v39 }
 0xc1c   :  { %v2201_v33 = vpop.permute.xlu0 %2200 }
 0xc1d   :  { %5468 = vmatprep.mubr.msk.bf16.mxu1 %vm211_vm2, %v2201_v33 }
 0xc1e   :  { %5487 = vmatpush3.bf16.msra.mxu1 %v7283_v39 }
 0xc1f   :  { %5488 = vmatprep.subr.bf16.mxu1 %v7291_v51 }
 0xc20   :  { %v2203_v9 = vpop.permute.xlu1 %2202 }
 0xc21   :  { %5469 = vmatmul.mubr.msk.bf16.gmra.mrb[44].mxu1 %vm211_vm2, %v2203_v9 }
 0xc22   :  { %5489 = vmatpush3.bf16.msra.mxu1 %v7291_v51  ;;  %5492 = vmatprep.mubr.msk.bf16.mxu1 %vm254_vm3, %v2442_v50 }
 0xc23   :  { %5490 = vmatprep.subr.bf16.mxu1 %v7300_v16 }
 0xc26   :  { %5491 = vmatpush3.bf16.msra.mxu1 %v7300_v16 }
 0xc27   :  { %5512 = vmatprep.subr.bf16.mxu1 %v7307_v54 }
 0xc29   :  { %5493 = vmatmul.mubr.msk.bf16.vlgmr.msra.gmra.mrb[48].mxu1 %vm254_vm3, %v2445_v38 }
 0xc2a   :  { %5496 = vmatprep.mubr.msk.bf16.mxu1 %vm254_vm3, %v2448_v4  ;;  %5513 = vmatpush3.bf16.msra.mxu1 %v7307_v54 }
 0xc2b   :  { %5637 = vmatprep.subr.msk.bf16.mxu1 %vm114_vm0, %v7316_v44 }
 0xc2e   :  { %5515 = vmatpush3.bf16.msra.mxu1 %v6170_v3 }
 0xc2f   :  { %5540 = vmatprep.subr.bf16.mxu1 %v7046_v8 }
 0xc31   :  { %5497 = vmatmul.mubr.msk.bf16.gmra.mrb[52].mxu1 %vm254_vm3, %v2451_v41 }
 0xc32   :  { %5516 = vmatprep.mubr.msk.bf16.mxu1 %vm101_vm1, %v5671_v18 }
 0xc39   :  { %5517 = vmatmul.mubr.msk.bf16.vlgmr.msra.gmra.mrb[56].mxu1 %vm101_vm1, %v5672_v22 }
 0xc3a   :  { %5520 = vmatprep.mubr.msk.bf16.mxu1 %vm101_vm1, %v5673_v0  ;;  %5541 = vmatpush3.bf16.msra.mxu1 %v7046_v8 }
 0xc3b   :  { %5542 = vmatprep.subr.bf16.mxu1 %v7119_v30 }
 0xc3e   :  { %5543 = vmatpush3.bf16.msra.mxu1 %v7119_v30 }
 0xc3f   :  { %5564 = vmatprep.subr.bf16.mxu1 %v7277_v59 }
 0xc41   :  { %5521 = vmatmul.mubr.msk.bf16.gmra.mrb[60].mxu1 %vm101_vm1, %v5674_v15 }
 0xcec   :  { %v5466_v36 = vpop.f32.mrb[40].mxu1 }
 0xced   :  { %v2250_v48 = vpop.f32.mrb[41].mxu1  ;;  %v2259_v20 = vadd.f32 %v7053_v43, %v5466_v36 }
 0xcee   :  { %v5467_v10 = vpop.f32.mrb[42].mxu1  ;;  %v2251_v29 = vadd.f32 %v7053_v43, %v2250_v48 }
 0xcef   :  { %v2262_v46 = vadd.f32 %v7053_v43, %v5467_v10  ;;  %v2253_v61 = vpop.f32.mrb[43].mxu1 }
 0xcf0   :  { %v2254_v31 = vadd.f32 %v7053_v43, %v2253_v61 }
 0xcf1   :  { %v5029_v14 = vpack.c.bf16 %v2262_v46, %v2259_v20 }
 0xcf2   :  { %v5024_v32 = vpack.c.bf16 %v2254_v31, %v2251_v29 }
 0xcf3   :  { %5133 = vst [vmem:[%s8284_s8 + $0x68] sm:$0xff] %v5029_v14  }
 0xcf4   :  { %5132 = vst [vmem:[%s8284_s8 + $0x60] sm:$0xff] %v5024_v32   ;;  %v5470_v27 = vpop.f32.mrb[44].mxu1 }
 0xcf5   :  { %v2266_v28 = vpop.f32.mrb[45].mxu1  ;;  %v2275_v11 = vadd.f32 %v7053_v43, %v5470_v27 }
 0xcf6   :  { %v5471_v5 = vpop.f32.mrb[46].mxu1  ;;  %v2267_v37 = vadd.f32 %v7053_v43, %v2266_v28 }
 0xcf7   :  { %v2278_v12 = vadd.f32 %v7053_v43, %v5471_v5  ;;  %v2269_v62 = vpop.f32.mrb[47].mxu1 }
 0xcf8   :  { %v2270_v7 = vadd.f32 %v7053_v43, %v2269_v62 }
 0xcf9   :  { %v5039_v58 = vpack.c.bf16 %v2278_v12, %v2275_v11 }
 0xcfa   :  { %v5034_v34 = vpack.c.bf16 %v2270_v7, %v2267_v37 }
 0xcfb   :  { %5135 = vst [vmem:[%s8284_s8 + $0x78] sm:$0xff] %v5039_v58  }
 0xcfc   :  { %5134 = vst [vmem:[%s8284_s8 + $0x70] sm:$0xff] %v5034_v34   ;;  %v5494_v24 = vpop.f32.mrb[48].mxu1 }
 0xcfd   :  { %v2494_v6 = vpop.f32.mrb[49].mxu1  ;;  %v7357_v23 = vadd.f32 %v7346_v21, %v5494_v24 }
 0xcfe   :  { %v7349_v50 = vadd.f32 %v7346_v21, %v2494_v6  ;;  %v5495_v43 = vpop.f32.mrb[50].mxu1 }
 0xcff   :  { %v2497_v47 = vpop.f32.mrb[51].mxu1  ;;  %v7371_v52 = vadd.f32 %v7346_v21, %v5495_v43  ;;  %v4727_v41 = vmul.f32 -1.442695, %v7357_v23 }
 0xd00   :  { %v7352_v63 = vadd.f32 %v7346_v21, %v2497_v47  ;;  %2581 = vrot.lane.b32.xlu0 %v7349_v50, %s6098_s14  ;;  %v4725_v4 = vmul.f32 -1.442695, %v7349_v50 }
 0xd01   :  { %v4728_v30 = vmul.f32 -1.442695, %v7371_v52 }
 0xd02   :  { %2583 = vrot.lane.b32.xlu1 %v7352_v63, %s6098_s14  ;;  %v4726_v17 = vmul.f32 -1.442695, %v7352_v63  ;;  %5875 = vpow2.f32 %v4725_v4 }
 0xd04   :  { %v5498_v26 = vpop.f32.mrb[52].mxu1  ;;  %2585 = vrot.lane.b32.xlu0 %v7357_v23, %s6098_s14  ;;  %5877 = vpow2.f32 %v4726_v17 }
 0xd05   :  { %v2510_v13 = vpop.f32.mrb[53].mxu1  ;;  %v7391_v35 = vadd.f32 %v7346_v21, %v5498_v26  ;;  %5879 = vpow2.f32 %v4727_v41 }
 0xd06   :  { %v7377_v38 = vadd.f32 %v7346_v21, %v2510_v13  ;;  %v5499_v25 = vpop.f32.mrb[54].mxu1  ;;  %2587 = vrot.lane.b32.xlu1 %v7371_v52, %s6098_s14  ;;  %5881 = vpow2.f32 %v4728_v30 }
 0xd07   :  { %v2513_v1 = vpop.f32.mrb[55].mxu1  ;;  %v7400_v8 = vadd.f32 %v7346_v21, %v5499_v25  ;;  %v4731_v33 = vmul.f32 -1.442695, %v7391_v35 }
 0xd08   :  { %v7385_v53 = vadd.f32 %v7346_v21, %v2513_v1  ;;  %2589 = vrot.lane.b32.xlu0 %v7377_v38, %s6098_s14  ;;  %v4729_v60 = vmul.f32 -1.442695, %v7377_v38 }
 0xd09   :  { %v4732_v36 = vmul.f32 -1.442695, %v7400_v8 }
 0xd0a   :  { %2591 = vrot.lane.b32.xlu1 %v7385_v53, %s6098_s14  ;;  %v4730_v57 = vmul.f32 -1.442695, %v7385_v53  ;;  %5883 = vpow2.f32 %v4729_v60 }
 0xd0c   :  { %2593 = vrot.lane.b32.xlu0 %v7391_v35, %s6098_s14  ;;  %v5876_v9 = vpop.eup %5875  ;;  %5885 = vpow2.f32 %v4730_v57 }
 0xd0d   :  { %5887 = vpow2.f32 %v4731_v33  ;;  %v2549_v10 = vadd.f32 1.0, %v5876_v9 }
 0xd0e   :  { %2595 = vrot.lane.b32.xlu1 %v7400_v8, %s6098_s14  ;;  %v5878_v48 = vpop.eup %5877  ;;  %5889 = vpow2.f32 %v4732_v36  ;;  %v5518_v36 = vpop.f32.mrb[56].mxu1 }
 0xd0f   :  { %v5880_v20 = vpop.eup %5879  ;;  %v2550_v46 = vadd.f32 1.0, %v5878_v48  ;;  %5891 = vrcp.f32 %v2549_v10  ;;  %v2934_v48 = vpop.f32.mrb[57].mxu1  ;;  %v7451_v10 = vld [vmem:[%s8280_s3] ss:$0 sm:$0xff] }
 0xd10   :  { %v5882_v61 = vpop.eup %5881  ;;  %v2551_v29 = vadd.f32 1.0, %v5880_v20  ;;  %v2943_v20 = vadd.f32 %v7451_v10, %v5518_v36 }
 0xd11   :  { %v2552_v14 = vadd.f32 1.0, %v5882_v61  ;;  %5893 = vrcp.f32 %v2550_v46  ;;  %v2935_v46 = vadd.f32 %v7451_v10, %v2934_v48 }
 0xd12   :  { %5895 = vrcp.f32 %v2551_v29 }
 0xd13   :  { %5897 = vrcp.f32 %v2552_v14 }
 0xd14   :  { %v5884_v31 = vpop.eup %5883 }
 0xd15   :  { %v2553_v27 = vadd.f32 1.0, %v5884_v31  ;;  %v5519_v31 = vpop.f32.mrb[58].mxu1 }
 0xd16   :  { %v5886_v32 = vpop.eup %5885 }
 0xd17   :  { %v5888_v28 = vpop.eup %5887  ;;  %v2554_v5 = vadd.f32 1.0, %v5886_v32  ;;  %5899 = vrcp.f32 %v2553_v27  ;;  %v2967_v32 = vmax.f32 %v2943_v20, 0.0  ;;  %v2965_v27 = vmax.f32 %v2935_v46, 0.0 }
 0xd18   :  { %v5890_v11 = vpop.eup %5889  ;;  %v2555_v12 = vadd.f32 1.0, %v5888_v28  ;;  %v2937_v28 = vpop.f32.mrb[59].mxu1 }
 0xd19   :  { %v7416_v62 = vpop.eup %5891  ;;  %v2556_v37 = vadd.f32 1.0, %v5890_v11  ;;  %5901 = vrcp.f32 %v2554_v5  ;;  %v2946_v11 = vadd.f32 %v7451_v10, %v5519_v31 }
 0xd1a   :  { %5903 = vrcp.f32 %v2555_v12  ;;  %v2938_v12 = vadd.f32 %v7451_v10, %v2937_v28 }
 0xd1b   :  { %v7419_v34 = vpop.eup %5893  ;;  %5905 = vrcp.f32 %v2556_v37 }
 0xd1c   :  { %v7423_v43 = vpop.eup %5895 }
 0xd1d   :  { %v7427_v22 = vpop.eup %5897 }
 0xd21   :  { %v7431_v13 = vpop.eup %5899 }
 0xd23   :  { %v7435_v15 = vpop.eup %5901 }
 0xd24   :  { %v7439_v41 = vpop.eup %5903 }
 0xd25   :  { %v7443_v57 = vpop.eup %5905 }
 0xd72   :  { %v2582_v7 = vpop.permute.xlu0 %2581 }
 0xd73   :  { %v2605_v58 = vmul.f32 %v7416_v62, %v2582_v7 }
 0xd74   :  { %v2584_v24 = vpop.permute.xlu1 %2583 }
 0xd75   :  { %v2606_v6 = vmul.f32 %v7419_v34, %v2584_v24  ;;  %2621 = vrot.lane.b32.xlu0 %v2605_v58, %s6099_s16  ;;  %v2968_v58 = vmax.f32 %v2946_v11, 0.0  ;;  %v2966_v24 = vmax.f32 %v2938_v12, 0.0  ;;  %v2661_v12 = vsub.f32 1.0, %v7416_v62 }
 0xd76   :  { %v2586_v47 = vpop.permute.xlu0 %2585 }
 0xd77   :  { %v2607_v18 = vmul.f32 %v7423_v43, %v2586_v47  ;;  %2623 = vrot.lane.b32.xlu1 %v2606_v6, %s6099_s16  ;;  %v7461_v47 = vpack.c.bf16 %v2968_v58, %v2967_v32  ;;  %v2662_v58 = vsub.f32 1.0, %v7419_v34 }
 0xd78   :  { %v2588_v0 = vpop.permute.xlu1 %2587 }
 0xd79   :  { %v2608_v26 = vmul.f32 %v7427_v22, %v2588_v0  ;;  %2625 = vrot.lane.b32.xlu0 %v2607_v18, %s6099_s16  ;;  %v7463_v18 = vpack.c.bf16 %v2966_v24, %v2965_v27  ;;  %v5522_v0 = vpop.f32.mrb[60].mxu1 }
 0xd7a   :  { %v2590_v25 = vpop.permute.xlu0 %2589 }
 0xd7b   :  { %v2609_v1 = vmul.f32 %v7431_v13, %v2590_v25  ;;  %2627 = vrot.lane.b32.xlu1 %v2608_v26, %s6099_s16  ;;  %v2950_v26 = vpop.f32.mrb[61].mxu1 }
 0xd7c   :  { %v2592_v4 = vpop.permute.xlu1 %2591 }
 0xd7d   :  { %v2610_v17 = vmul.f32 %v7435_v15, %v2592_v4  ;;  %2629 = vrot.lane.b32.xlu0 %v2609_v1, %s6099_s16  ;;  %v5523_v1 = vpop.f32.mrb[62].mxu1 }
 0xd7e   :  { %v2594_v30 = vpop.permute.xlu0 %2593 }
 0xd7f   :  { %v2611_v60 = vmul.f32 %v7439_v41, %v2594_v30  ;;  %2631 = vrot.lane.b32.xlu1 %v2610_v17, %s6099_s16  ;;  %v2953_v17 = vpop.f32.mrb[63].mxu1  ;;  %v2959_v30 = vadd.f32 %v7451_v10, %v5522_v0 }
 0xd80   :  { %v2596_v33 = vpop.permute.xlu1 %2595 }
 0xd81   :  { %v2612_v9 = vmul.f32 %v7443_v57, %v2596_v33  ;;  %2633 = vrot.lane.b32.xlu0 %v2611_v60, %s6099_s16  ;;  %v2962_v33 = vadd.f32 %v7451_v10, %v5523_v1 }
 0xd83   :  { %2635 = vrot.lane.b32.xlu1 %v2612_v9, %s6099_s16  ;;  %v2954_v9 = vadd.f32 %v7451_v10, %v2953_v17  ;;  %v2664_v17 = vsub.f32 1.0, %v7427_v22 }
 0xde7   :  { %v2622_v61 = vpop.permute.xlu0 %2621 }
 0xde8   :  { %v2645_v29 = vadd.f32 %v2622_v61, %v7349_v50  ;;  %v2972_v61 = vmax.f32 %v2962_v33, 0.0 }
 0xde9   :  { %v2624_v14 = vpop.permute.xlu1 %2623 }
 0xdea   :  { %5907 = vtanh.f32 %v2645_v29  ;;  %v2646_v5 = vadd.f32 %v2624_v14, %v7352_v63 }
 0xdeb   :  { %v2626_v37 = vpop.permute.xlu0 %2625 }
 0xdec   :  { %5909 = vtanh.f32 %v2646_v5  ;;  %v2647_v7 = vadd.f32 %v2626_v37, %v7357_v23 }
 0xded   :  { %v2628_v6 = vpop.permute.xlu1 %2627 }
 0xdee   :  { %5911 = vtanh.f32 %v2647_v7  ;;  %v2648_v50 = vadd.f32 %v2628_v6, %v7371_v52  ;;  %v2951_v52 = vadd.f32 %v7451_v10, %v2950_v26  ;;  %v2709_v6 = vmul.f32 %v7416_v62, %v7219_v42 }
 0xdef   :  { %v2630_v63 = vpop.permute.xlu0 %2629 }
 0xdf0   :  { %5913 = vtanh.f32 %v2648_v50  ;;  %v2649_v25 = vadd.f32 %v2630_v63, %v7377_v38  ;;  %v2971_v38 = vmax.f32 %v2959_v30, 0.0  ;;  %v2969_v20 = vmax.f32 %v2951_v52, 0.0 }
 0xdf1   :  { %v2632_v4 = vpop.permute.xlu1 %2631  ;;  %v2710_v50 = vmul.f32 %v7419_v34, %v7221_v19  ;;  %v2663_v63 = vsub.f32 1.0, %v7423_v43  ;;  %v2712_v19 = vmul.f32 %v7427_v22, %v7234_v2  ;;  %v2665_v34 = vsub.f32 1.0, %v7431_v13 }
 0xdf2   :  { %5915 = vtanh.f32 %v2649_v25  ;;  %v2650_v23 = vadd.f32 %v2632_v4, %v7385_v53  ;;  %v2970_v53 = vmax.f32 %v2954_v9, 0.0  ;;  %v7475_v14 = vpack.c.bf16 %v2972_v61, %v2971_v38 }
 0xdf3   :  { %v2634_v60 = vpop.permute.xlu0 %2633  ;;  %v2713_v22 = vmul.f32 %v7431_v13, %v7247_v55  ;;  %v2714_v38 = vmul.f32 %v7435_v15, %v7249_v45  ;;  %v2668_v61 = vsub.f32 1.0, %v7443_v57  ;;  %v2715_v45 = vmul.f32 %v7439_v41, %v7260_v49 }
 0xdf4   :  { %v5908_v36 = vpop.eup %5907  ;;  %5917 = vtanh.f32 %v2650_v23  ;;  %v2651_v48 = vadd.f32 %v2634_v60, %v7391_v35  ;;  %v7477_v32 = vpack.c.bf16 %v2970_v53, %v2969_v20  ;;  %v2711_v23 = vmul.f32 %v7423_v43, %v7232_v56 }
 0xdf5   :  { %v2636_v46 = vpop.permute.xlu1 %2635  ;;  %2677 = vrot.lane.b32.xlu0 %v5908_v36, %s6100_s1  ;;  %v2666_v60 = vsub.f32 1.0, %v7435_v15  ;;  %v2716_v13 = vmul.f32 %v7443_v57, %v7262_v40 }
 0xdf6   :  { %v5910_v29 = vpop.eup %5909  ;;  %5919 = vtanh.f32 %v2651_v48  ;;  %v2652_v31 = vadd.f32 %v2636_v46, %v7400_v8  ;;  %v2667_v48 = vsub.f32 1.0, %v7439_v41 }
 0xdf7   :  { %2679 = vrot.lane.b32.xlu1 %v5910_v29, %s6100_s1 }
 0xdf8   :  { %v5912_v27 = vpop.eup %5911  ;;  %5921 = vtanh.f32 %v2652_v31 }
 0xdf9   :  { %2681 = vrot.lane.b32.xlu0 %v5912_v27, %s6100_s1 }
 0xdfa   :  { %v5914_v35 = vpop.eup %5913 }
 0xdfb   :  { %2683 = vrot.lane.b32.xlu1 %v5914_v35, %s6100_s1 }
 0xdfc   :  { %v5916_v28 = vpop.eup %5915 }
 0xdfd   :  { %2685 = vrot.lane.b32.xlu0 %v5916_v28, %s6100_s1 }
 0xdfe   :  { %v5918_v5 = vpop.eup %5917 }
 0xdff   :  { %2687 = vrot.lane.b32.xlu1 %v5918_v5, %s6100_s1 }
 0xe00   :  { %v5920_v8 = vpop.eup %5919 }
 0xe01   :  { %2689 = vrot.lane.b32.xlu0 %v5920_v8, %s6100_s1 }
 0xe02   :  { %v5922_v11 = vpop.eup %5921 }
 0xe03   :  { %2691 = vrot.lane.b32.xlu1 %v5922_v11, %s6100_s1 }
 0xe67   :  { %v2678_v37 = vpop.permute.xlu0 %2677 }
 0xe68   :  { %v2701_v7 = vmul.f32 %v2678_v37, %v2661_v12 }
 0xe69   :  { %v2680_v24 = vpop.permute.xlu1 %2679 }
 0xe6a   :  { %v2702_v0 = vmul.f32 %v2680_v24, %v2662_v58  ;;  %v7492_v25 = vadd.f32 %v2709_v6, %v2701_v7 }
 0xe6b   :  { %v2682_v26 = vpop.permute.xlu0 %2681 }
 0xe6c   :  { %v7494_v1 = vadd.f32 %v2710_v50, %v2702_v0  ;;  %v2703_v4 = vmul.f32 %v2682_v26, %v2663_v63 }
 0xe6d   :  { %v2684_v30 = vpop.permute.xlu1 %2683 }
 0xe6e   :  { %v2725_v42 = vpack.c.bf16 %v7494_v1, %v7492_v25  ;;  %v2704_v62 = vmul.f32 %v2684_v30, %v2664_v17  ;;  %v7505_v33 = vadd.f32 %v2711_v23, %v2703_v4 }
 0xe6f   :  { %v2686_v52 = vpop.permute.xlu0 %2685 }
 0xe70   :  { %v7507_v9 = vadd.f32 %v2712_v19, %v2704_v62  ;;  %v2705_v36 = vmul.f32 %v2686_v52, %v2665_v34  ;;  %2733 = vrot.lane.b32.xlu0 %v2725_v42, %s6100_s1  ;;  %v2979_v56 = vsel %vm211_vm2, %v7463_v18, %v2725_v42 }
 0xe71   :  { %v2688_v43 = vpop.permute.xlu1 %2687 }
 0xe72   :  { %v2726_v2 = vpack.c.bf16 %v7507_v9, %v7505_v33  ;;  %v2706_v20 = vmul.f32 %v2688_v43, %v2666_v60  ;;  %v7520_v53 = vadd.f32 %v2713_v22, %v2705_v36  ;;  %v5676_v43 = vld [vmem:[%s8277_s0 + $0xc8] sm:$0xff]  }
 0xe73   :  { %v2690_v46 = vpop.permute.xlu0 %2689 }
 0xe74   :  { %v7522_v29 = vadd.f32 %v2714_v38, %v2706_v20  ;;  %v2707_v18 = vmul.f32 %v2690_v46, %v2667_v48  ;;  %2735 = vrot.lane.b32.xlu1 %v2726_v2, %s6100_s1  ;;  %v2982_v31 = vsel %vm211_vm2, %v7461_v47, %v2726_v2  ;;  %v5677_v48 = vld [vmem:[%s8277_s0 + $0xd0] sm:$0xff]  }
 0xe75   :  { %v2692_v27 = vpop.permute.xlu1 %2691 }
 0xe76   :  { %v2727_v55 = vpack.c.bf16 %v7522_v29, %v7520_v53  ;;  %v2708_v15 = vmul.f32 %v2692_v27, %v2668_v61  ;;  %v7533_v35 = vadd.f32 %v2715_v45, %v2707_v18 }
 0xe78   :  { %v7535_v28 = vadd.f32 %v2716_v13, %v2708_v15  ;;  %2737 = vrot.lane.b32.xlu0 %v2727_v55, %s6100_s1  ;;  %v2985_v47 = vsel %vm211_vm2, %v7477_v32, %v2727_v55  ;;  %v5678_v55 = vld [vmem:[%s8277_s0 + $0xd8] sm:$0xff]  }
 0xe7a   :  { %v2728_v5 = vpack.c.bf16 %v7535_v28, %v7533_v35 }
 0xe7c   :  { %2739 = vrot.lane.b32.xlu1 %v2728_v5, %s6100_s1  ;;  %v2988_v49 = vsel %vm211_vm2, %v7475_v14, %v2728_v5 }
 0xee2   :  { %v2734_v41 = vpop.permute.xlu0 %2733 }
 0xee3   :  { %5504 = vmatprep.mubr.msk.bf16.mxu0 %vm211_vm2, %v2734_v41 }
 0xee6   :  { %v2736_v40 = vpop.permute.xlu1 %2735 }
 0xee7   :  { %5505 = vmatmul.mubr.msk.bf16.vlgmr.msra.gmra.mrb[56].mxu0 %vm211_vm2, %v2736_v40 }
 0xee8   :  { %5525 = vmatpush3.bf16.msra.mxu0 %v7277_v59 }
 0xee9   :  { %5526 = vmatprep.subr.bf16.mxu0 %v7283_v39 }
 0xeea   :  { %v2738_v57 = vpop.permute.xlu0 %2737 }
 0xeeb   :  { %5508 = vmatprep.mubr.msk.bf16.mxu0 %vm211_vm2, %v2738_v57 }
 0xeec   :  { %5527 = vmatpush3.bf16.msra.mxu0 %v7283_v39  ;;  %v7567_v39 = vld [vmem:[%s8282_s6] sm:$0xff]  }
 0xeed   :  { %5528 = vmatprep.subr.bf16.mxu0 %v7291_v51 }
 0xeee   :  { %v2740_v32 = vpop.permute.xlu1 %2739 }
 0xeef   :  { %5509 = vmatmul.mubr.msk.bf16.gmra.mrb[60].mxu0 %vm211_vm2, %v2740_v32 }
 0xef0   :  { %5529 = vmatpush3.bf16.msra.mxu0 %v7291_v51  ;;  %5532 = vmatprep.mubr.msk.bf16.mxu0 %vm254_vm3, %v2979_v56  ;;  %v5675_v56 = vld [vmem:[%s8277_s0 + $0xc0] sm:$0xff]  }
 0xef1   :  { %5530 = vmatprep.subr.bf16.mxu0 %v7300_v16 }
 0xef4   :  { %5531 = vmatpush3.bf16.msra.mxu0 %v7300_v16 }
 0xef5   :  { %5552 = vmatprep.subr.bf16.mxu0 %v7307_v54 }
 0xef7   :  { %5533 = vmatmul.mubr.msk.bf16.vlgmr.msra.gmra.mrb[64].mxu0 %vm254_vm3, %v2982_v31  ;;  %v7640_v31 = vld [vmem:[%s8282_s6 + $0x8] sm:$0xff]  }
 0xef8   :  { %5536 = vmatprep.mubr.msk.bf16.mxu0 %vm254_vm3, %v2985_v47  ;;  %5553 = vmatpush3.bf16.msra.mxu0 %v7307_v54  ;;  %v7574_v54 = vld [vmem:[%s8283_s7] ss:$0 sm:$0xff] }
 0xef9   :  { %5638 = vmatprep.subr.msk.bf16.mxu0 %vm114_vm0, %v7316_v44 }
 0xefc   :  { %5555 = vmatpush3.bf16.msra.mxu0 %v6170_v3 }
 0xefd   :  { %5580 = vmatprep.subr.bf16.mxu0 %v7567_v39 }
 0xeff   :  { %5537 = vmatmul.mubr.msk.bf16.gmra.mrb[68].mxu0 %vm254_vm3, %v2988_v49 }
 0xf00   :  { %5556 = vmatprep.mubr.msk.bf16.mxu0 %vm101_vm1, %v5675_v56 }
 0xf07   :  { %5557 = vmatmul.mubr.msk.bf16.vlgmr.msra.gmra.mrb[72].mxu0 %vm101_vm1, %v5676_v43 }
 0xf08   :  { %5560 = vmatprep.mubr.msk.bf16.mxu0 %vm101_vm1, %v5677_v48  ;;  %5581 = vmatpush3.bf16.msra.mxu0 %v7567_v39 }
 0xf09   :  { %5582 = vmatprep.subr.bf16.mxu0 %v7640_v31 }
 0xf0c   :  { %5583 = vmatpush3.bf16.msra.mxu0 %v7640_v31 }
 0xf0d   :  { %5604 = vmatprep.subr.bf16.mxu0 %v7277_v59 }
 0xf0f   :  { %5561 = vmatmul.mubr.msk.bf16.gmra.mrb[76].mxu0 %vm101_vm1, %v5678_v55 }
 0xfba   :  { %v5506_v51 = vpop.f32.mrb[56].mxu0 }
 0xfbb   :  { %v2787_v16 = vpop.f32.mrb[57].mxu0  ;;  %v2796_v44 = vadd.f32 %v7574_v54, %v5506_v51 }
 0xfbc   :  { %v5507_v14 = vpop.f32.mrb[58].mxu0  ;;  %v2788_v12 = vadd.f32 %v7574_v54, %v2787_v16 }
 0xfbd   :  { %v2799_v8 = vadd.f32 %v7574_v54, %v5507_v14  ;;  %v2790_v11 = vpop.f32.mrb[59].mxu0 }
 0xfbe   :  { %v2791_v37 = vadd.f32 %v7574_v54, %v2790_v11 }
 0xfbf   :  { %v5049_v7 = vpack.c.bf16 %v2799_v8, %v2796_v44 }
 0xfc0   :  { %v5044_v58 = vpack.c.bf16 %v2791_v37, %v2788_v12 }
 0xfc1   :  { %5137 = vst [vmem:[%s8284_s8 + $0x88] sm:$0xff] %v5049_v7  }
 0xfc2   :  { %5136 = vst [vmem:[%s8284_s8 + $0x80] sm:$0xff] %v5044_v58   ;;  %v5510_v24 = vpop.f32.mrb[60].mxu0 }
 0xfc3   :  { %v2803_v6 = vpop.f32.mrb[61].mxu0  ;;  %v2812_v0 = vadd.f32 %v7574_v54, %v5510_v24 }
 0xfc4   :  { %v5511_v50 = vpop.f32.mrb[62].mxu0  ;;  %v2804_v4 = vadd.f32 %v7574_v54, %v2803_v6 }
 0xfc5   :  { %v2815_v63 = vadd.f32 %v7574_v54, %v5511_v50  ;;  %v2806_v26 = vpop.f32.mrb[63].mxu0 }
 0xfc6   :  { %v2807_v17 = vadd.f32 %v7574_v54, %v2806_v26 }
 0xfc7   :  { %v5059_v23 = vpack.c.bf16 %v2815_v63, %v2812_v0 }
 0xfc8   :  { %v5054_v30 = vpack.c.bf16 %v2807_v17, %v2804_v4 }
 0xfc9   :  { %5139 = vst [vmem:[%s8284_s8 + $0x98] sm:$0xff] %v5059_v23  }
 0xfca   :  { %5138 = vst [vmem:[%s8284_s8 + $0x90] sm:$0xff] %v5054_v30   ;;  %v5534_v42 = vpop.f32.mrb[64].mxu0 }
 0xfcb   :  { %v3031_v19 = vpop.f32.mrb[65].mxu0  ;;  %v7605_v36 = vadd.f32 %v7346_v21, %v5534_v42 }
 0xfcc   :  { %v7597_v62 = vadd.f32 %v7346_v21, %v3031_v19  ;;  %v5535_v34 = vpop.f32.mrb[66].mxu0 }
 0xfcd   :  { %v3034_v52 = vpop.f32.mrb[67].mxu0  ;;  %v7619_v2 = vadd.f32 %v7346_v21, %v5535_v34  ;;  %v4775_v47 = vmul.f32 -1.442695, %v7605_v36 }
 0xfce   :  { %v7600_v60 = vadd.f32 %v7346_v21, %v3034_v52  ;;  %3118 = vrot.lane.b32.xlu0 %v7597_v62, %s6098_s14  ;;  %v4773_v13 = vmul.f32 -1.442695, %v7597_v62 }
 0xfd0   :  { %3120 = vrot.lane.b32.xlu1 %v7600_v60, %s6098_s14  ;;  %v4774_v15 = vmul.f32 -1.442695, %v7600_v60  ;;  %5923 = vpow2.f32 %v4773_v13 }
 0xfd2   :  { %v5538_v22 = vpop.f32.mrb[68].mxu0  ;;  %3122 = vrot.lane.b32.xlu0 %v7605_v36, %s6098_s14  ;;  %5925 = vpow2.f32 %v4774_v15 }
 0xfd3   :  { %v3047_v38 = vpop.f32.mrb[69].mxu0  ;;  %v7644_v27 = vadd.f32 %v7346_v21, %v5538_v22  ;;  %5927 = vpow2.f32 %v4775_v47 }
 0xfd4   :  { %v7625_v20 = vadd.f32 %v7346_v21, %v3047_v38  ;;  %v5539_v46 = vpop.f32.mrb[70].mxu0  ;;  %3124 = vrot.lane.b32.xlu1 %v7619_v2, %s6098_s14 }
 0xfd5   :  { %v3050_v61 = vpop.f32.mrb[71].mxu0  ;;  %v7653_v45 = vadd.f32 %v7346_v21, %v5539_v46  ;;  %v4779_v49 = vmul.f32 -1.442695, %v7644_v27 }
 0xfd6   :  { %v7633_v18 = vadd.f32 %v7346_v21, %v3050_v61  ;;  %3126 = vrot.lane.b32.xlu0 %v7625_v20, %s6098_s14  ;;  %v4776_v21 = vmul.f32 -1.442695, %v7619_v2  ;;  %v4777_v5 = vmul.f32 -1.442695, %v7625_v20 }
 0xfd7   :  { %v4780_v40 = vmul.f32 -1.442695, %v7653_v45 }
 0xfd8   :  { %3128 = vrot.lane.b32.xlu1 %v7633_v18, %s6098_s14  ;;  %5929 = vpow2.f32 %v4776_v21  ;;  %v4778_v59 = vmul.f32 -1.442695, %v7633_v18 }
 0xfd9   :  { %5931 = vpow2.f32 %v4777_v5 }
 0xfda   :  { %3130 = vrot.lane.b32.xlu0 %v7644_v27, %s6098_s14  ;;  %v5924_v41 = vpop.eup %5923  ;;  %5933 = vpow2.f32 %v4778_v59  ;;  %v5558_v59 = vpop.f32.mrb[72].mxu0 }
 0xfdb   :  { %5935 = vpow2.f32 %v4779_v49  ;;  %v3086_v32 = vadd.f32 1.0, %v5924_v41  ;;  %v3471_v49 = vpop.f32.mrb[73].mxu0  ;;  %v3480_v41 = vadd.f32 %v7451_v10, %v5558_v59 }
 0xfdc   :  { %3132 = vrot.lane.b32.xlu1 %v7653_v45, %s6098_s14  ;;  %v5926_v57 = vpop.eup %5925  ;;  %5937 = vpow2.f32 %v4780_v40  ;;  %v3472_v40 = vadd.f32 %v7451_v10, %v3471_v49 }
 0xfdd   :  { %v5928_v51 = vpop.eup %5927  ;;  %v3087_v16 = vadd.f32 1.0, %v5926_v57  ;;  %5939 = vrcp.f32 %v3086_v32 }
 0xfde   :  { %v3088_v44 = vadd.f32 1.0, %v5928_v51  ;;  %v5559_v51 = vpop.f32.mrb[74].mxu0 }
 0xfdf   :  { %5941 = vrcp.f32 %v3087_v16 }
 0xfe0   :  { %5943 = vrcp.f32 %v3088_v44  ;;  %v3502_v44 = vmax.f32 %v3472_v40, 0.0 }
 0xfe2   :  { %v5930_v14 = vpop.eup %5929 }
 0xfe3   :  { %v5932_v8 = vpop.eup %5931  ;;  %v3089_v11 = vadd.f32 1.0, %v5930_v14  ;;  %v3504_v14 = vmax.f32 %v3480_v41, 0.0 }
 0xfe4   :  { %v5934_v12 = vpop.eup %5933  ;;  %v3090_v37 = vadd.f32 1.0, %v5932_v8  ;;  %v3474_v8 = vpop.f32.mrb[75].mxu0 }
 0xfe5   :  { %v5936_v7 = vpop.eup %5935  ;;  %5945 = vrcp.f32 %v3089_v11  ;;  %v3091_v58 = vadd.f32 1.0, %v5934_v12  ;;  %v3483_v12 = vadd.f32 %v7451_v10, %v5559_v51 }
 0xfe6   :  { %v5938_v24 = vpop.eup %5937  ;;  %v3092_v6 = vadd.f32 1.0, %v5936_v7  ;;  %5947 = vrcp.f32 %v3090_v37  ;;  %v3475_v37 = vadd.f32 %v7451_v10, %v3474_v8 }
 0xfe7   :  { %v7669_v50 = vpop.eup %5939  ;;  %v3093_v0 = vadd.f32 1.0, %v5938_v24  ;;  %5949 = vrcp.f32 %v3091_v58  ;;  %v3505_v24 = vmax.f32 %v3483_v12, 0.0 }
 0xfe8   :  { %5951 = vrcp.f32 %v3092_v6  ;;  %v3503_v6 = vmax.f32 %v3475_v37, 0.0  ;;  %v3246_v37 = vmul.f32 %v7669_v50, %v7492_v25 }
 0xfe9   :  { %v7672_v4 = vpop.eup %5941  ;;  %5953 = vrcp.f32 %v3093_v0 }
 0xfea   :  { %v7676_v30 = vpop.eup %5943 }
 0xfef   :  { %v7680_v34 = vpop.eup %5945 }
 0xff0   :  { %v7684_v43 = vpop.eup %5947 }
 0xff1   :  { %v7688_v38 = vpop.eup %5949 }
 0xff2   :  { %v7692_v55 = vpop.eup %5951 }
 0xff3   :  { %v7696_v47 = vpop.eup %5953 }
0x1040   :  { %v3119_v63 = vpop.permute.xlu0 %3118 }
0x1041   :  { %v3142_v26 = vmul.f32 %v7669_v50, %v3119_v63  ;;  %v7709_v63 = vpack.c.bf16 %v3505_v24, %v3504_v14  ;;  %v3198_v14 = vsub.f32 1.0, %v7669_v50  ;;  %v3200_v24 = vsub.f32 1.0, %v7676_v30 }
0x1042   :  { %v3121_v17 = vpop.permute.xlu1 %3120 }
0x1043   :  { %v3143_v23 = vmul.f32 %v7672_v4, %v3121_v17  ;;  %3158 = vrot.lane.b32.xlu0 %v3142_v26, %s6099_s16  ;;  %v7711_v26 = vpack.c.bf16 %v3503_v6, %v3502_v44  ;;  %v5562_v17 = vpop.f32.mrb[76].mxu0 }
0x1044   :  { %v3123_v42 = vpop.permute.xlu0 %3122 }
0x1045   :  { %v3144_v19 = vmul.f32 %v7676_v30, %v3123_v42  ;;  %3160 = vrot.lane.b32.xlu1 %v3143_v23, %s6099_s16  ;;  %v3487_v23 = vpop.f32.mrb[77].mxu0 }
0x1046   :  { %v3125_v52 = vpop.permute.xlu1 %3124 }
0x1047   :  { %v3145_v56 = vmul.f32 %v7680_v34, %v3125_v52  ;;  %3162 = vrot.lane.b32.xlu0 %v3144_v19, %s6099_s16  ;;  %v5563_v19 = vpop.f32.mrb[78].mxu0 }
0x1048   :  { %v3127_v48 = vpop.permute.xlu0 %3126 }
0x1049   :  { %v3146_v22 = vmul.f32 %v7684_v43, %v3127_v48  ;;  %3164 = vrot.lane.b32.xlu1 %v3145_v56, %s6099_s16  ;;  %v3490_v56 = vpop.f32.mrb[79].mxu0  ;;  %v3496_v48 = vadd.f32 %v7451_v10, %v5562_v17 }
0x104a   :  { %v3129_v46 = vpop.permute.xlu1 %3128 }
0x104b   :  { %v3147_v61 = vmul.f32 %v7688_v38, %v3129_v46  ;;  %3166 = vrot.lane.b32.xlu0 %v3146_v22, %s6099_s16  ;;  %v3499_v46 = vadd.f32 %v7451_v10, %v5563_v19 }
0x104c   :  { %v3131_v13 = vpop.permute.xlu0 %3130 }
0x104d   :  { %v3148_v15 = vmul.f32 %v7692_v55, %v3131_v13  ;;  %3168 = vrot.lane.b32.xlu1 %v3147_v61, %s6099_s16  ;;  %v3491_v61 = vadd.f32 %v7451_v10, %v3490_v56  ;;  %v3509_v59 = vmax.f32 %v3499_v46, 0.0 }
0x104e   :  { %v3133_v21 = vpop.permute.xlu1 %3132 }
0x104f   :  { %v3149_v5 = vmul.f32 %v7696_v47, %v3133_v21  ;;  %3170 = vrot.lane.b32.xlu0 %v3148_v15, %s6099_s16 }
0x1051   :  { %3172 = vrot.lane.b32.xlu1 %v3149_v5, %s6099_s16 }
0x10b5   :  { %v3159_v57 = vpop.permute.xlu0 %3158 }
0x10b6   :  { %v3182_v32 = vadd.f32 %v3159_v57, %v7597_v62 }
0x10b7   :  { %v3161_v16 = vpop.permute.xlu1 %3160 }
0x10b8   :  { %5955 = vtanh.f32 %v3182_v32  ;;  %v3183_v11 = vadd.f32 %v3161_v16, %v7600_v60 }
0x10b9   :  { %v3163_v7 = vpop.permute.xlu0 %3162 }
0x10ba   :  { %5957 = vtanh.f32 %v3183_v11  ;;  %v3184_v58 = vadd.f32 %v3163_v7, %v7605_v36  ;;  %v3199_v11 = vsub.f32 1.0, %v7672_v4  ;;  %v3247_v7 = vmul.f32 %v7672_v4, %v7494_v1 }
0x10bb   :  { %v3165_v0 = vpop.permute.xlu1 %3164  ;;  %v3249_v1 = vmul.f32 %v7680_v34, %v7507_v9  ;;  %v3202_v4 = vsub.f32 1.0, %v7684_v43 }
0x10bc   :  { %5959 = vtanh.f32 %v3184_v58  ;;  %v3185_v62 = vadd.f32 %v3165_v0, %v7619_v2  ;;  %v3488_v2 = vadd.f32 %v7451_v10, %v3487_v23  ;;  %v3248_v23 = vmul.f32 %v7676_v30, %v7505_v33 }
0x10bd   :  { %v3167_v60 = vpop.permute.xlu0 %3166 }
0x10be   :  { %5961 = vtanh.f32 %v3185_v62  ;;  %v3186_v42 = vadd.f32 %v3167_v60, %v7625_v20  ;;  %v3508_v20 = vmax.f32 %v3496_v48, 0.0  ;;  %v3506_v21 = vmax.f32 %v3488_v2, 0.0 }
0x10bf   :  { %v3169_v52 = vpop.permute.xlu1 %3168  ;;  %v3201_v60 = vsub.f32 1.0, %v7680_v34  ;;  %v3204_v2 = vsub.f32 1.0, %v7692_v55  ;;  %v3250_v34 = vmul.f32 %v7684_v43, %v7520_v53  ;;  %v3253_v43 = vmul.f32 %v7696_v47, %v7535_v28 }
0x10c0   :  { %5963 = vtanh.f32 %v3186_v42  ;;  %v3187_v36 = vadd.f32 %v3169_v52, %v7633_v18  ;;  %v3507_v18 = vmax.f32 %v3491_v61, 0.0  ;;  %v7723_v40 = vpack.c.bf16 %v3509_v59, %v3508_v20 }
0x10c1   :  { %v3171_v22 = vpop.permute.xlu0 %3170  ;;  %v3203_v52 = vsub.f32 1.0, %v7688_v38 }
0x10c2   :  { %v5956_v13 = vpop.eup %5955  ;;  %5965 = vtanh.f32 %v3187_v36  ;;  %v3188_v15 = vadd.f32 %v3171_v22, %v7644_v27  ;;  %v7725_v10 = vpack.c.bf16 %v3507_v18, %v3506_v21  ;;  %v3251_v22 = vmul.f32 %v7688_v38, %v7522_v29 }
0x10c3   :  { %v3173_v5 = vpop.permute.xlu1 %3172  ;;  %3214 = vrot.lane.b32.xlu0 %v5956_v13, %s6100_s1  ;;  %v3205_v13 = vsub.f32 1.0, %v7696_v47  ;;  %v3252_v29 = vmul.f32 %v7692_v55, %v7533_v35  ;;  %v7798_v47 = vld [vmem:[%s8279_s4] sm:$0xff]  }
0x10c4   :  { %v5958_v49 = vpop.eup %5957  ;;  %5967 = vtanh.f32 %v3188_v15  ;;  %v3189_v41 = vadd.f32 %v3173_v5, %v7653_v45 }
0x10c5   :  { %3216 = vrot.lane.b32.xlu1 %v5958_v49, %s6100_s1 }
0x10c6   :  { %v5960_v57 = vpop.eup %5959  ;;  %5969 = vtanh.f32 %v3189_v41  ;;  %v7804_v41 = vld [vmem:[%s8279_s4 + $0x8] sm:$0xff]  }
0x10c7   :  { %3218 = vrot.lane.b32.xlu0 %v5960_v57, %s6100_s1 }
0x10c8   :  { %v5962_v27 = vpop.eup %5961 }
0x10c9   :  { %3220 = vrot.lane.b32.xlu1 %v5962_v27, %s6100_s1  ;;  %v7821_v27 = vld [vmem:[%s8279_s4 + $0x18] sm:$0xff]  }
0x10ca   :  { %v5964_v32 = vpop.eup %5963 }
0x10cb   :  { %3222 = vrot.lane.b32.xlu0 %v5964_v32, %s6100_s1  ;;  %v6093_v32 = vld [vmem:[%s8276_s2] sm:$0xff]  }
0x10cc   :  { %v5966_v51 = vpop.eup %5965 }
0x10cd   :  { %3224 = vrot.lane.b32.xlu1 %v5966_v51, %s6100_s1  ;;  %v6094_v51 = vld [vmem:[%s8276_s2 + $0x8] ss:$0 sps:$4 sm:$0xff]  }
0x10ce   :  { %v5968_v45 = vpop.eup %5967 }
0x10cf   :  { %3226 = vrot.lane.b32.xlu0 %v5968_v45, %s6100_s1 }
0x10d0   :  { %v5970_v16 = vpop.eup %5969 }
0x10d1   :  { %3228 = vrot.lane.b32.xlu1 %v5970_v16, %s6100_s1 }
0x1135   :  { %v3215_v44 = vpop.permute.xlu0 %3214 }
0x1136   :  { %v3238_v8 = vmul.f32 %v3215_v44, %v3198_v14 }
0x1137   :  { %v3217_v12 = vpop.permute.xlu1 %3216 }
0x1138   :  { %v3239_v58 = vmul.f32 %v3217_v12, %v3199_v11  ;;  %v7740_v0 = vadd.f32 %v3246_v37, %v3238_v8 }
0x1139   :  { %v3219_v6 = vpop.permute.xlu0 %3218 }
0x113a   :  { %v7742_v62 = vadd.f32 %v3247_v7, %v3239_v58  ;;  %v3240_v17 = vmul.f32 %v3219_v6, %v3200_v24 }
0x113b   :  { %v3221_v42 = vpop.permute.xlu1 %3220 }
0x113c   :  { %v3262_v25 = vpack.c.bf16 %v7742_v62, %v7740_v0  ;;  %v3241_v50 = vmul.f32 %v3221_v42, %v3201_v60  ;;  %v7753_v56 = vadd.f32 %v3248_v23, %v3240_v17 }
0x113d   :  { %v3223_v19 = vpop.permute.xlu0 %3222 }
0x113e   :  { %v7755_v36 = vadd.f32 %v3249_v1, %v3241_v50  ;;  %v3242_v48 = vmul.f32 %v3223_v19, %v3202_v4  ;;  %3270 = vrot.lane.b32.xlu0 %v3262_v25, %s6100_s1  ;;  %v3516_v33 = vsel %vm211_vm2, %v7711_v26, %v3262_v25 }
0x113f   :  { %v3225_v30 = vpop.permute.xlu1 %3224 }
0x1140   :  { %v3263_v9 = vpack.c.bf16 %v7755_v36, %v7753_v56  ;;  %v3243_v46 = vmul.f32 %v3225_v30, %v3203_v52  ;;  %v7768_v15 = vadd.f32 %v3250_v34, %v3242_v48  ;;  %v7860_v52 = vld [vmem:[%s8281_s5] ss:$0 sm:$0xff]  ;;  %v5680_v34 = vld [vmem:[%s8277_s0 + $0xe8] sm:$0xff]  }
0x1141   :  { %v3227_v61 = vpop.permute.xlu0 %3226 }
0x1142   :  { %v7770_v20 = vadd.f32 %v3251_v22, %v3243_v46  ;;  %v3244_v26 = vmul.f32 %v3227_v61, %v3204_v2  ;;  %3272 = vrot.lane.b32.xlu1 %v3263_v9, %s6100_s1  ;;  %v3519_v21 = vsel %vm211_vm2, %v7709_v63, %v3263_v9  ;;  %v5679_v9 = vld [vmem:[%s8277_s0 + $0xe0] sm:$0xff]   ;;  %v5681_v22 = vld [vmem:[%s8277_s0 + $0xf0] sm:$0xff]  }
0x1143   :  { %v3229_v5 = vpop.permute.xlu1 %3228 }
0x1144   :  { %v3264_v53 = vpack.c.bf16 %v7770_v20, %v7768_v15  ;;  %v3245_v38 = vmul.f32 %v3229_v5, %v3205_v13  ;;  %v7781_v59 = vadd.f32 %v3252_v29, %v3244_v26 }
0x1146   :  { %v7783_v18 = vadd.f32 %v3253_v43, %v3245_v38  ;;  %3274 = vrot.lane.b32.xlu0 %v3264_v53, %s6100_s1  ;;  %v3522_v63 = vsel %vm211_vm2, %v7725_v10, %v3264_v53  ;;  %v7812_v10 = vld [vmem:[%s8279_s4 + $0x10] sm:$0xff]   ;;  %v5682_v43 = vld [vmem:[%s8277_s0 + $0xf8] sm:$0xff]  }
0x1148   :  { %v3265_v49 = vpack.c.bf16 %v7783_v18, %v7781_v59 }
0x114a   :  { %3276 = vrot.lane.b32.xlu1 %v3265_v49, %s6100_s1  ;;  %v3525_v35 = vsel %vm211_vm2, %v7723_v40, %v3265_v49 }
0x11b0   :  { %v3271_v55 = vpop.permute.xlu0 %3270 }
0x11b1   :  { %5544 = vmatprep.mubr.msk.bf16.mxu1 %vm211_vm2, %v3271_v55 }
0x11b4   :  { %v3273_v28 = vpop.permute.xlu1 %3272 }
0x11b5   :  { %5545 = vmatmul.mubr.msk.bf16.vlgmr.msra.gmra.mrb[64].mxu1 %vm211_vm2, %v3273_v28 }
0x11b6   :  { %5565 = vmatpush3.bf16.msra.mxu1 %v7798_v47 }
0x11b7   :  { %5566 = vmatprep.subr.bf16.mxu1 %v7804_v41 }
0x11b8   :  { %v3275_v40 = vpop.permute.xlu0 %3274 }
0x11b9   :  { %5548 = vmatprep.mubr.msk.bf16.mxu1 %vm211_vm2, %v3275_v40 }
0x11ba   :  { %5567 = vmatpush3.bf16.msra.mxu1 %v7804_v41 }
0x11bb   :  { %5568 = vmatprep.subr.bf16.mxu1 %v7812_v10 }
0x11bc   :  { %v3277_v57 = vpop.permute.xlu1 %3276 }
0x11bd   :  { %5549 = vmatmul.mubr.msk.bf16.gmra.mrb[68].mxu1 %vm211_vm2, %v3277_v57 }
0x11be   :  { %5569 = vmatpush3.bf16.msra.mxu1 %v7812_v10  ;;  %5572 = vmatprep.mubr.msk.bf16.mxu1 %vm254_vm3, %v3516_v33 }
0x11bf   :  { %5570 = vmatprep.subr.bf16.mxu1 %v7821_v27 }
0x11c2   :  { %5571 = vmatpush3.bf16.msra.mxu1 %v7821_v27 }
0x11c3   :  { %5592 = vmatprep.subr.bf16.mxu1 %v6093_v32 }
0x11c5   :  { %5573 = vmatmul.mubr.msk.bf16.vlgmr.msra.gmra.mrb[72].mxu1 %vm254_vm3, %v3519_v21 }
0x11c6   :  { %5576 = vmatprep.mubr.msk.bf16.mxu1 %vm254_vm3, %v3522_v63  ;;  %5593 = vmatpush3.bf16.msra.mxu1 %v6093_v32 }
0x11c7   :  { %5639 = vmatprep.subr.msk.bf16.mxu1 %vm114_vm0, %v6094_v51 }
0x11ca   :  { %5595 = vmatpush3.bf16.msra.mxu1 %v6170_v3 }
0x11cb   :  { %5620 = vmatprep.subr.bf16.mxu1 %v7567_v39 }
0x11cd   :  { %5577 = vmatmul.mubr.msk.bf16.gmra.mrb[76].mxu1 %vm254_vm3, %v3525_v35 }
0x11ce   :  { %5596 = vmatprep.mubr.msk.bf16.mxu1 %vm101_vm1, %v5679_v9 }
0x11d5   :  { %5597 = vmatmul.mubr.msk.bf16.vlgmr.msra.gmra.mrb[80].mxu1 %vm101_vm1, %v5680_v34 }
0x11d6   :  { %5600 = vmatprep.mubr.msk.bf16.mxu1 %vm101_vm1, %v5681_v22  ;;  %5621 = vmatpush3.bf16.msra.mxu1 %v7567_v39 }
0x11d7   :  { %5622 = vmatprep.subr.bf16.mxu1 %v7640_v31 }
0x11da   :  { %5623 = vmatpush3.bf16.msra.mxu1 %v7640_v31 }
0x11dd   :  { %5601 = vmatmul.mubr.msk.bf16.gmra.mrb[84].mxu1 %vm101_vm1, %v5682_v43 }
0x1288   :  { %v5546_v45 = vpop.f32.mrb[64].mxu1 }
0x1289   :  { %v3324_v16 = vpop.f32.mrb[65].mxu1  ;;  %v3333_v44 = vadd.f32 %v7574_v54, %v5546_v45 }
0x128a   :  { %v5547_v14 = vpop.f32.mrb[66].mxu1  ;;  %v3325_v12 = vadd.f32 %v7574_v54, %v3324_v16 }
0x128b   :  { %v3336_v8 = vadd.f32 %v7574_v54, %v5547_v14  ;;  %v3327_v11 = vpop.f32.mrb[67].mxu1 }
0x128c   :  { %v3328_v37 = vadd.f32 %v7574_v54, %v3327_v11 }
0x128d   :  { %v5069_v7 = vpack.c.bf16 %v3336_v8, %v3333_v44 }
0x128e   :  { %v5064_v58 = vpack.c.bf16 %v3328_v37, %v3325_v12 }
0x128f   :  { %5141 = vst [vmem:[%s8284_s8 + $0xa8] sm:$0xff] %v5069_v7  }
0x1290   :  { %5140 = vst [vmem:[%s8284_s8 + $0xa0] sm:$0xff] %v5064_v58   ;;  %v5550_v3 = vpop.f32.mrb[68].mxu1 }
0x1291   :  { %v3340_v24 = vpop.f32.mrb[69].mxu1  ;;  %v3349_v17 = vadd.f32 %v7574_v54, %v5550_v3 }
0x1292   :  { %v5551_v6 = vpop.f32.mrb[70].mxu1  ;;  %v3341_v42 = vadd.f32 %v7574_v54, %v3340_v24 }
0x1293   :  { %v3352_v60 = vadd.f32 %v7574_v54, %v5551_v6  ;;  %v3343_v23 = vpop.f32.mrb[71].mxu1 }
0x1294   :  { %v3344_v25 = vadd.f32 %v7574_v54, %v3343_v23 }
0x1295   :  { %v5079_v1 = vpack.c.bf16 %v3352_v60, %v3349_v17 }
0x1296   :  { %v5074_v50 = vpack.c.bf16 %v3344_v25, %v3341_v42 }
0x1297   :  { %5143 = vst [vmem:[%s8284_s8 + $0xb8] sm:$0xff] %v5079_v1  }
0x1298   :  { %5142 = vst [vmem:[%s8284_s8 + $0xb0] sm:$0xff] %v5074_v50   ;;  %v5574_v4 = vpop.f32.mrb[72].mxu1 }
0x1299   :  { %v3568_v19 = vpop.f32.mrb[73].mxu1  ;;  %v7871_v2 = vadd.f32 %v7860_v52, %v5574_v4 }
0x129a   :  { %v7863_v48 = vadd.f32 %v7860_v52, %v3568_v19  ;;  %v5575_v54 = vpop.f32.mrb[74].mxu1 }
0x129b   :  { %v3571_v33 = vpop.f32.mrb[75].mxu1  ;;  %v7885_v46 = vadd.f32 %v7860_v52, %v5575_v54  ;;  %v4823_v49 = vmul.f32 -1.442695, %v7871_v2 }
0x129c   :  { %v7866_v30 = vadd.f32 %v7860_v52, %v3571_v33  ;;  %3655 = vrot.lane.b32.xlu0 %v7863_v48, %s6098_s14  ;;  %v4821_v38 = vmul.f32 -1.442695, %v7863_v48 }
0x129d   :  { %v4824_v31 = vmul.f32 -1.442695, %v7885_v46 }
0x129e   :  { %3657 = vrot.lane.b32.xlu1 %v7866_v30, %s6098_s14  ;;  %v4822_v63 = vmul.f32 -1.442695, %v7866_v30  ;;  %5971 = vpow2.f32 %v4821_v38 }
0x12a0   :  { %v5578_v61 = vpop.f32.mrb[76].mxu1  ;;  %3659 = vrot.lane.b32.xlu0 %v7871_v2, %s6098_s14  ;;  %5973 = vpow2.f32 %v4822_v63 }
0x12a1   :  { %v3584_v13 = vpop.f32.mrb[77].mxu1  ;;  %v7905_v29 = vadd.f32 %v7860_v52, %v5578_v61  ;;  %5975 = vpow2.f32 %v4823_v49 }
0x12a2   :  { %v7891_v26 = vadd.f32 %v7860_v52, %v3584_v13  ;;  %v5579_v21 = vpop.f32.mrb[78].mxu1  ;;  %3661 = vrot.lane.b32.xlu1 %v7885_v46, %s6098_s14  ;;  %5977 = vpow2.f32 %v4824_v31 }
0x12a3   :  { %v3587_v5 = vpop.f32.mrb[79].mxu1  ;;  %v7914_v39 = vadd.f32 %v7860_v52, %v5579_v21  ;;  %v4827_v28 = vmul.f32 -1.442695, %v7905_v29 }
0x12a4   :  { %v7899_v53 = vadd.f32 %v7860_v52, %v3587_v5  ;;  %3663 = vrot.lane.b32.xlu0 %v7891_v26, %s6098_s14  ;;  %v4825_v35 = vmul.f32 -1.442695, %v7891_v26 }
0x12a5   :  { %v4828_v57 = vmul.f32 -1.442695, %v7914_v39 }
0x12a6   :  { %3665 = vrot.lane.b32.xlu1 %v7899_v53, %s6098_s14  ;;  %v4826_v55 = vmul.f32 -1.442695, %v7899_v53  ;;  %5979 = vpow2.f32 %v4825_v35 }
0x12a8   :  { %3667 = vrot.lane.b32.xlu0 %v7905_v29, %s6098_s14  ;;  %v5972_v40 = vpop.eup %5971  ;;  %5981 = vpow2.f32 %v4826_v55  ;;  %v5598_v55 = vpop.f32.mrb[80].mxu1 }
0x12a9   :  { %5983 = vpow2.f32 %v4827_v28  ;;  %v3623_v51 = vadd.f32 1.0, %v5972_v40  ;;  %v4008_v28 = vpop.f32.mrb[81].mxu1  ;;  %v6096_v40 = vld [vmem:[%s8280_s3] ss:$0 sm:$0xff] }
0x12aa   :  { %3669 = vrot.lane.b32.xlu1 %v7914_v39, %s6098_s14  ;;  %v5974_v32 = vpop.eup %5973  ;;  %5985 = vpow2.f32 %v4828_v57  ;;  %v4017_v57 = vadd.f32 %v6096_v40, %v5598_v55 }
0x12ab   :  { %v5976_v45 = vpop.eup %5975  ;;  %v3624_v16 = vadd.f32 1.0, %v5974_v32  ;;  %5987 = vrcp.f32 %v3623_v51  ;;  %v4009_v32 = vadd.f32 %v6096_v40, %v4008_v28 }
0x12ac   :  { %v5978_v14 = vpop.eup %5977  ;;  %v3625_v44 = vadd.f32 1.0, %v5976_v45 }
0x12ad   :  { %v3626_v11 = vadd.f32 1.0, %v5978_v14  ;;  %5989 = vrcp.f32 %v3624_v16  ;;  %v5599_v16 = vpop.f32.mrb[82].mxu1 }
0x12ae   :  { %5991 = vrcp.f32 %v3625_v44  ;;  %v4041_v44 = vmax.f32 %v4017_v57, 0.0 }
0x12af   :  { %5993 = vrcp.f32 %v3626_v11  ;;  %v4011_v11 = vpop.f32.mrb[83].mxu1 }
0x12b0   :  { %v5980_v8 = vpop.eup %5979 }
0x12b1   :  { %v3627_v37 = vadd.f32 1.0, %v5980_v8  ;;  %v4039_v8 = vmax.f32 %v4009_v32, 0.0 }
0x12b2   :  { %v5982_v12 = vpop.eup %5981 }
0x12b3   :  { %v5984_v7 = vpop.eup %5983  ;;  %v3628_v58 = vadd.f32 1.0, %v5982_v12  ;;  %5995 = vrcp.f32 %v3627_v37  ;;  %v4020_v37 = vadd.f32 %v6096_v40, %v5599_v16 }
0x12b4   :  { %v5986_v3 = vpop.eup %5985  ;;  %v3629_v24 = vadd.f32 1.0, %v5984_v7  ;;  %v4012_v7 = vadd.f32 %v6096_v40, %v4011_v11 }
0x12b5   :  { %v7929_v6 = vpop.eup %5987  ;;  %v3630_v17 = vadd.f32 1.0, %v5986_v3  ;;  %5997 = vrcp.f32 %v3628_v58 }
0x12b6   :  { %5999 = vrcp.f32 %v3629_v24  ;;  %v4042_v24 = vmax.f32 %v4020_v37, 0.0 }
0x12b7   :  { %v7932_v42 = vpop.eup %5989  ;;  %6001 = vrcp.f32 %v3630_v17  ;;  %v4040_v17 = vmax.f32 %v4012_v7, 0.0 }
0x12b8   :  { %v7936_v50 = vpop.eup %5991  ;;  %v3736_v37 = vsub.f32 1.0, %v7932_v42 }
0x12b9   :  { %v7940_v54 = vpop.eup %5993 }
0x12bd   :  { %v7944_v34 = vpop.eup %5995 }
0x12bf   :  { %v7948_v13 = vpop.eup %5997 }
0x12c0   :  { %v7952_v43 = vpop.eup %5999 }
0x12c1   :  { %v7956_v49 = vpop.eup %6001 }
0x130e   :  { %v3656_v60 = vpop.permute.xlu0 %3655 }
0x130f   :  { %v3679_v23 = vmul.f32 %v7929_v6, %v3656_v60 }
0x1310   :  { %v3658_v25 = vpop.permute.xlu1 %3657 }
0x1311   :  { %v3680_v1 = vmul.f32 %v7932_v42, %v3658_v25  ;;  %3695 = vrot.lane.b32.xlu0 %v3679_v23, %s6099_s16  ;;  %v7968_v23 = vpack.c.bf16 %v4042_v24, %v4041_v44  ;;  %v7970_v25 = vpack.c.bf16 %v4040_v17, %v4039_v8  ;;  %v3735_v8 = vsub.f32 1.0, %v7929_v6 }
0x1312   :  { %v3660_v4 = vpop.permute.xlu0 %3659  ;;  %v3737_v17 = vsub.f32 1.0, %v7936_v50 }
0x1313   :  { %v3681_v19 = vmul.f32 %v7936_v50, %v3660_v4  ;;  %3697 = vrot.lane.b32.xlu1 %v3680_v1, %s6099_s16  ;;  %v5602_v1 = vpop.f32.mrb[84].mxu1 }
0x1314   :  { %v3662_v33 = vpop.permute.xlu1 %3661 }
0x1315   :  { %v3682_v9 = vmul.f32 %v7940_v54, %v3662_v33  ;;  %3699 = vrot.lane.b32.xlu0 %v3681_v19, %s6099_s16  ;;  %v4024_v19 = vpop.f32.mrb[85].mxu1 }
0x1316   :  { %v3664_v22 = vpop.permute.xlu0 %3663  ;;  %v5603_v33 = vpop.f32.mrb[86].mxu1 }
0x1317   :  { %v3683_v61 = vmul.f32 %v7944_v34, %v3664_v22  ;;  %3701 = vrot.lane.b32.xlu1 %v3682_v9, %s6099_s16  ;;  %v4027_v22 = vpop.f32.mrb[87].mxu1 }
0x1318   :  { %v3666_v21 = vpop.permute.xlu1 %3665 }
0x1319   :  { %v3684_v5 = vmul.f32 %v7948_v13, %v3666_v21  ;;  %3703 = vrot.lane.b32.xlu0 %v3683_v61, %s6099_s16  ;;  %v4033_v61 = vadd.f32 %v6096_v40, %v5602_v1  ;;  %v4025_v21 = vadd.f32 %v6096_v40, %v4024_v19  ;;  %v3738_v19 = vsub.f32 1.0, %v7940_v54 }
0x131a   :  { %v3668_v38 = vpop.permute.xlu0 %3667 }
0x131b   :  { %v3685_v63 = vmul.f32 %v7952_v43, %v3668_v38  ;;  %3705 = vrot.lane.b32.xlu1 %v3684_v5, %s6099_s16  ;;  %v4028_v38 = vadd.f32 %v6096_v40, %v4027_v22  ;;  %v4043_v55 = vmax.f32 %v4025_v21, 0.0  ;;  %v3740_v22 = vsub.f32 1.0, %v7948_v13 }
0x131c   :  { %v3670_v31 = vpop.permute.xlu1 %3669 }
0x131d   :  { %v3686_v35 = vmul.f32 %v7956_v49, %v3670_v31  ;;  %3707 = vrot.lane.b32.xlu0 %v3685_v63, %s6099_s16  ;;  %v4044_v57 = vmax.f32 %v4028_v38, 0.0 }
0x131f   :  { %3709 = vrot.lane.b32.xlu1 %v3686_v35, %s6099_s16  ;;  %v4045_v35 = vmax.f32 %v4033_v61, 0.0 }
0x1383   :  { %v3696_v51 = vpop.permute.xlu0 %3695 }
0x1384   :  { %v3719_v45 = vadd.f32 %v3696_v51, %v7863_v48 }
0x1385   :  { %v3698_v14 = vpop.permute.xlu1 %3697 }
0x1386   :  { %6003 = vtanh.f32 %v3719_v45  ;;  %v3720_v12 = vadd.f32 %v3698_v14, %v7866_v30 }
0x1387   :  { %v3700_v58 = vpop.permute.xlu0 %3699 }
0x1388   :  { %6005 = vtanh.f32 %v3720_v12  ;;  %v3721_v3 = vadd.f32 %v3700_v58, %v7871_v2  ;;  %v3783_v58 = vmul.f32 %v7929_v6, %v7740_v0 }
0x1389   :  { %v3702_v60 = vpop.permute.xlu1 %3701 }
0x138a   :  { %6007 = vtanh.f32 %v3721_v3  ;;  %v3722_v48 = vadd.f32 %v3702_v60, %v7885_v46  ;;  %v4036_v46 = vadd.f32 %v6096_v40, %v5603_v33  ;;  %v7980_v40 = vpack.c.bf16 %v4044_v57, %v4043_v55 }
0x138b   :  { %v3704_v4 = vpop.permute.xlu0 %3703  ;;  %v3784_v3 = vmul.f32 %v7932_v42, %v7742_v62  ;;  %v3786_v62 = vmul.f32 %v7940_v54, %v7755_v36  ;;  %v3739_v42 = vsub.f32 1.0, %v7944_v34  ;;  %v3787_v54 = vmul.f32 %v7944_v34, %v7768_v15 }
0x138c   :  { %6009 = vtanh.f32 %v3722_v48  ;;  %v3723_v30 = vadd.f32 %v3704_v4, %v7891_v26  ;;  %v4046_v26 = vmax.f32 %v4036_v46, 0.0  ;;  %v3788_v46 = vmul.f32 %v7948_v13, %v7770_v20 }
0x138d   :  { %v3706_v9 = vpop.permute.xlu1 %3705  ;;  %v3789_v20 = vmul.f32 %v7952_v43, %v7781_v59  ;;  %v3790_v34 = vmul.f32 %v7956_v49, %v7783_v18 }
0x138e   :  { %6011 = vtanh.f32 %v3723_v30  ;;  %v3724_v2 = vadd.f32 %v3706_v9, %v7899_v53  ;;  %v7978_v51 = vpack.c.bf16 %v4046_v26, %v4045_v35  ;;  %v3785_v30 = vmul.f32 %v7936_v50, %v7753_v56 }
0x138f   :  { %v3708_v5 = vpop.permute.xlu0 %3707 }
0x1390   :  { %v6004_v63 = vpop.eup %6003  ;;  %6013 = vtanh.f32 %v3724_v2  ;;  %v3725_v31 = vadd.f32 %v3708_v5, %v7905_v29  ;;  %v3741_v5 = vsub.f32 1.0, %v7952_v43 }
0x1391   :  { %v3710_v28 = vpop.permute.xlu1 %3709  ;;  %3751 = vrot.lane.b32.xlu0 %v6004_v63, %s6100_s1 }
0x1392   :  { %v6006_v32 = vpop.eup %6005  ;;  %6015 = vtanh.f32 %v3725_v31  ;;  %v3726_v53 = vadd.f32 %v3710_v28, %v7914_v39  ;;  %v3742_v31 = vsub.f32 1.0, %v7956_v49 }
0x1393   :  { %3753 = vrot.lane.b32.xlu1 %v6006_v32, %s6100_s1 }
0x1394   :  { %v6008_v45 = vpop.eup %6007  ;;  %6017 = vtanh.f32 %v3726_v53 }
0x1395   :  { %3755 = vrot.lane.b32.xlu0 %v6008_v45, %s6100_s1  ;;  %v8066_v45 = vld [vmem:[%s8283_s7] ss:$0 sm:$0xff] }
0x1396   :  { %v6010_v29 = vpop.eup %6009 }
0x1397   :  { %3757 = vrot.lane.b32.xlu1 %v6010_v29, %s6100_s1 }
0x1398   :  { %v6012_v16 = vpop.eup %6011 }
0x1399   :  { %3759 = vrot.lane.b32.xlu0 %v6012_v16, %s6100_s1 }
0x139a   :  { %v6014_v14 = vpop.eup %6013 }
0x139b   :  { %3761 = vrot.lane.b32.xlu1 %v6014_v14, %s6100_s1 }
0x139c   :  { %v6016_v39 = vpop.eup %6015 }
0x139d   :  { %3763 = vrot.lane.b32.xlu0 %v6016_v39, %s6100_s1 }
0x139e   :  { %v6018_v44 = vpop.eup %6017 }
0x139f   :  { %3765 = vrot.lane.b32.xlu1 %v6018_v44, %s6100_s1 }
0x1403   :  { %v3752_v11 = vpop.permute.xlu0 %3751 }
0x1404   :  { %v3775_v12 = vmul.f32 %v3752_v11, %v3735_v8 }
0x1405   :  { %v3754_v7 = vpop.permute.xlu1 %3753 }
0x1406   :  { %v3776_v24 = vmul.f32 %v3754_v7, %v3736_v37  ;;  %v7995_v48 = vadd.f32 %v3783_v58, %v3775_v12 }
0x1407   :  { %v3756_v60 = vpop.permute.xlu0 %3755 }
0x1408   :  { %v7997_v1 = vadd.f32 %v3784_v3, %v3776_v24  ;;  %v3777_v4 = vmul.f32 %v3756_v60, %v3737_v17 }
0x1409   :  { %v3758_v33 = vpop.permute.xlu1 %3757 }
0x140a   :  { %v3799_v0 = vpack.c.bf16 %v7997_v1, %v7995_v48  ;;  %v3778_v6 = vmul.f32 %v3758_v33, %v3738_v19  ;;  %v8008_v2 = vadd.f32 %v3785_v30, %v3777_v4 }
0x140b   :  { %v3760_v9 = vpop.permute.xlu0 %3759 }
0x140c   :  { %v8010_v61 = vadd.f32 %v3786_v62, %v3778_v6  ;;  %v3779_v21 = vmul.f32 %v3760_v9, %v3739_v42  ;;  %3807 = vrot.lane.b32.xlu0 %v3799_v0, %s6100_s1  ;;  %v4053_v56 = vsel %vm211_vm2, %v7970_v25, %v3799_v0 }
0x140d   :  { %v3762_v50 = vpop.permute.xlu1 %3761 }
0x140e   :  { %v3800_v36 = vpack.c.bf16 %v8010_v61, %v8008_v2  ;;  %v3780_v38 = vmul.f32 %v3762_v50, %v3740_v22  ;;  %v8023_v35 = vadd.f32 %v3787_v54, %v3779_v21 }
0x140f   :  { %v3764_v63 = vpop.permute.xlu0 %3763 }
0x1410   :  { %v8025_v55 = vadd.f32 %v3788_v46, %v3780_v38  ;;  %v3781_v25 = vmul.f32 %v3764_v63, %v3741_v5  ;;  %3809 = vrot.lane.b32.xlu1 %v3800_v36, %s6100_s1  ;;  %v4056_v28 = vsel %vm211_vm2, %v7968_v23, %v3800_v36 }
0x1411   :  { %v3766_v26 = vpop.permute.xlu1 %3765 }
0x1412   :  { %v3801_v15 = vpack.c.bf16 %v8025_v55, %v8023_v35  ;;  %v3782_v13 = vmul.f32 %v3766_v26, %v3742_v31  ;;  %v8036_v57 = vadd.f32 %v3789_v20, %v3781_v25 }
0x1414   :  { %v8038_v32 = vadd.f32 %v3790_v34, %v3782_v13  ;;  %3811 = vrot.lane.b32.xlu0 %v3801_v15, %s6100_s1  ;;  %v4059_v23 = vsel %vm211_vm2, %v7980_v40, %v3801_v15 }
0x1416   :  { %v3802_v53 = vpack.c.bf16 %v8038_v32, %v8036_v57 }
0x1418   :  { %3813 = vrot.lane.b32.xlu1 %v3802_v53, %s6100_s1  ;;  %v4062_v59 = vsel %vm211_vm2, %v7978_v51, %v3802_v53 }
0x147e   :  { %v3808_v43 = vpop.permute.xlu0 %3807 }
0x147f   :  { %5584 = vmatprep.mubr.msk.bf16.mxu0 %vm211_vm2, %v3808_v43 }
0x1482   :  { %v3810_v18 = vpop.permute.xlu1 %3809 }
0x1483   :  { %5585 = vmatmul.mubr.msk.bf16.vlgmr.msra.gmra.mrb[80].mxu0 %vm211_vm2, %v3810_v18 }
0x1484   :  { %5605 = vmatpush3.bf16.msra.mxu0 %v7798_v47 }
0x1485   :  { %5606 = vmatprep.subr.bf16.mxu0 %v7804_v41 }
0x1486   :  { %v3812_v49 = vpop.permute.xlu0 %3811 }
0x1487   :  { %5588 = vmatprep.mubr.msk.bf16.mxu0 %vm211_vm2, %v3812_v49 }
0x1488   :  { %5607 = vmatpush3.bf16.msra.mxu0 %v7804_v41 }
0x1489   :  { %5608 = vmatprep.subr.bf16.mxu0 %v7812_v10 }
0x148a   :  { %v3814_v40 = vpop.permute.xlu1 %3813 }
0x148b   :  { %5589 = vmatmul.mubr.msk.bf16.gmra.mrb[84].mxu0 %vm211_vm2, %v3814_v40 }
0x148c   :  { %5609 = vmatpush3.bf16.msra.mxu0 %v7812_v10  ;;  %5612 = vmatprep.mubr.msk.bf16.mxu0 %vm254_vm3, %v4053_v56 }
0x148d   :  { %5610 = vmatprep.subr.bf16.mxu0 %v7821_v27 }
0x1490   :  { %5611 = vmatpush3.bf16.msra.mxu0 %v7821_v27 }
0x1493   :  { %5613 = vmatmul.mubr.msk.bf16.vlgmr.msra.gmra.mrb[88].mxu0 %vm254_vm3, %v4056_v28 }
0x1494   :  { %5616 = vmatprep.mubr.msk.bf16.mxu0 %vm254_vm3, %v4059_v23 }
0x149b   :  { %5617 = vmatmul.mubr.msk.bf16.gmra.mrb[92].mxu0 %vm254_vm3, %v4062_v59 }
0x1556   :  { %v5586_v47 = vpop.f32.mrb[80].mxu0 }
0x1557   :  { %v3861_v41 = vpop.f32.mrb[81].mxu0  ;;  %v3870_v10 = vadd.f32 %v8066_v45, %v5586_v47 }
0x1558   :  { %v5587_v51 = vpop.f32.mrb[82].mxu0  ;;  %v3862_v27 = vadd.f32 %v8066_v45, %v3861_v41 }
0x1559   :  { %v3873_v29 = vadd.f32 %v8066_v45, %v5587_v51  ;;  %v3864_v16 = vpop.f32.mrb[83].mxu0 }
0x155a   :  { %v3865_v14 = vadd.f32 %v8066_v45, %v3864_v16 }
0x155b   :  { %v5089_v39 = vpack.c.bf16 %v3873_v29, %v3870_v10 }
0x155c   :  { %v5084_v44 = vpack.c.bf16 %v3865_v14, %v3862_v27 }
0x155d   :  { %5145 = vst [vmem:[%s8284_s8 + $0xc8] sm:$0xff] %v5089_v39  }
0x155e   :  { %5144 = vst [vmem:[%s8284_s8 + $0xc0] sm:$0xff] %v5084_v44   ;;  %v5590_v8 = vpop.f32.mrb[84].mxu0 }
0x155f   :  { %v3877_v11 = vpop.f32.mrb[85].mxu0  ;;  %v3886_v37 = vadd.f32 %v8066_v45, %v5590_v8 }
0x1560   :  { %v5591_v12 = vpop.f32.mrb[86].mxu0  ;;  %v3878_v3 = vadd.f32 %v8066_v45, %v3877_v11 }
0x1561   :  { %v3889_v7 = vadd.f32 %v8066_v45, %v5591_v12  ;;  %v3880_v58 = vpop.f32.mrb[87].mxu0 }
0x1562   :  { %v3881_v24 = vadd.f32 %v8066_v45, %v3880_v58 }
0x1563   :  { %v5099_v17 = vpack.c.bf16 %v3889_v7, %v3886_v37 }
0x1564   :  { %v5094_v60 = vpack.c.bf16 %v3881_v24, %v3878_v3 }
0x1565   :  { %5147 = vst [vmem:[%s8284_s8 + $0xd8] sm:$0xff] %v5099_v17  }
0x1566   :  { %5146 = vst [vmem:[%s8284_s8 + $0xd0] sm:$0xff] %v5094_v60   ;;  %v5614_v4 = vpop.f32.mrb[88].mxu0 }
0x1567   :  { %v4105_v19 = vpop.f32.mrb[89].mxu0  ;;  %v8097_v6 = vadd.f32 %v7860_v52, %v5614_v4 }
0x1568   :  { %v8089_v30 = vadd.f32 %v7860_v52, %v4105_v19  ;;  %v5615_v33 = vpop.f32.mrb[90].mxu0 }
0x1569   :  { %v4108_v0 = vpop.f32.mrb[91].mxu0  ;;  %v8102_v42 = vadd.f32 %v7860_v52, %v5615_v33  ;;  %v4871_v63 = vmul.f32 -1.442695, %v8097_v6 }
0x156a   :  { %v8092_v62 = vadd.f32 %v7860_v52, %v4108_v0  ;;  %4192 = vrot.lane.b32.xlu0 %v8089_v30, %s6098_s14  ;;  %v4869_v46 = vmul.f32 -1.442695, %v8089_v30 }
0x156b   :  { %v4872_v31 = vmul.f32 -1.442695, %v8102_v42 }
0x156c   :  { %4194 = vrot.lane.b32.xlu1 %v8092_v62, %s6098_s14  ;;  %v4870_v38 = vmul.f32 -1.442695, %v8092_v62  ;;  %6019 = vpow2.f32 %v4869_v46 }
0x156e   :  { %v5618_v9 = vpop.f32.mrb[92].mxu0  ;;  %4196 = vrot.lane.b32.xlu0 %v8097_v6, %s6098_s14  ;;  %6021 = vpow2.f32 %v4870_v38 }
0x156f   :  { %v4121_v22 = vpop.f32.mrb[93].mxu0  ;;  %v8117_v36 = vadd.f32 %v7860_v52, %v5618_v9  ;;  %6023 = vpow2.f32 %v4871_v63 }
0x1570   :  { %v8107_v21 = vadd.f32 %v7860_v52, %v4121_v22  ;;  %v5619_v56 = vpop.f32.mrb[94].mxu0  ;;  %4198 = vrot.lane.b32.xlu1 %v8102_v42, %s6098_s14  ;;  %6025 = vpow2.f32 %v4872_v31 }
0x1571   :  { %v4124_v50 = vpop.f32.mrb[95].mxu0  ;;  %v8122_v54 = vadd.f32 %v7860_v52, %v5619_v56  ;;  %v4875_v28 = vmul.f32 -1.442695, %v8117_v36 }
0x1572   :  { %v8112_v5 = vadd.f32 %v7860_v52, %v4124_v50  ;;  %4200 = vrot.lane.b32.xlu0 %v8107_v21, %s6098_s14  ;;  %v4873_v52 = vmul.f32 -1.442695, %v8107_v21 }
0x1573   :  { %v4876_v15 = vmul.f32 -1.442695, %v8122_v54 }
0x1574   :  { %4202 = vrot.lane.b32.xlu1 %v8112_v5, %s6098_s14  ;;  %v4874_v25 = vmul.f32 -1.442695, %v8112_v5  ;;  %6027 = vpow2.f32 %v4873_v52 }
0x1576   :  { %4204 = vrot.lane.b32.xlu0 %v8117_v36, %s6098_s14  ;;  %v6020_v26 = vpop.eup %6019  ;;  %6029 = vpow2.f32 %v4874_v25 }
0x1577   :  { %6031 = vpow2.f32 %v4875_v28  ;;  %v4160_v34 = vadd.f32 1.0, %v6020_v26 }
0x1578   :  { %4206 = vrot.lane.b32.xlu1 %v8122_v54, %s6098_s14  ;;  %v6022_v20 = vpop.eup %6021  ;;  %6033 = vpow2.f32 %v4876_v15 }
0x1579   :  { %v6024_v13 = vpop.eup %6023  ;;  %v4161_v23 = vadd.f32 1.0, %v6022_v20  ;;  %6035 = vrcp.f32 %v4160_v34 }
0x157a   :  { %v6026_v53 = vpop.eup %6025  ;;  %v4162_v59 = vadd.f32 1.0, %v6024_v13 }
0x157b   :  { %v4163_v18 = vadd.f32 1.0, %v6026_v53  ;;  %6037 = vrcp.f32 %v4161_v23 }
0x157c   :  { %6039 = vrcp.f32 %v4162_v59 }
0x157d   :  { %6041 = vrcp.f32 %v4163_v18 }
0x157e   :  { %v6028_v43 = vpop.eup %6027 }
0x157f   :  { %v4164_v40 = vadd.f32 1.0, %v6028_v43 }
0x1580   :  { %v6030_v49 = vpop.eup %6029 }
0x1581   :  { %v6032_v47 = vpop.eup %6031  ;;  %v4165_v41 = vadd.f32 1.0, %v6030_v49  ;;  %6043 = vrcp.f32 %v4164_v40 }
0x1582   :  { %v6034_v51 = vpop.eup %6033  ;;  %v4166_v10 = vadd.f32 1.0, %v6032_v47 }
0x1583   :  { %v8136_v29 = vpop.eup %6035  ;;  %v4167_v16 = vadd.f32 1.0, %v6034_v51  ;;  %6045 = vrcp.f32 %v4165_v41 }
0x1584   :  { %6047 = vrcp.f32 %v4166_v10  ;;  %v4320_v10 = vmul.f32 %v8136_v29, %v7995_v48 }
0x1585   :  { %v8139_v39 = vpop.eup %6037  ;;  %6049 = vrcp.f32 %v4167_v16 }
0x1586   :  { %v8143_v11 = vpop.eup %6039  ;;  %v4273_v41 = vsub.f32 1.0, %v8139_v39  ;;  %v4321_v16 = vmul.f32 %v8139_v39, %v7997_v1 }
0x1587   :  { %v8147_v7 = vpop.eup %6041 }
0x1588   :  { %v4323_v48 = vmul.f32 %v8147_v7, %v8010_v61 }
0x158b   :  { %v8151_v24 = vpop.eup %6043 }
0x158c   :  { %v4276_v1 = vsub.f32 1.0, %v8151_v24 }
0x158d   :  { %v8155_v4 = vpop.eup %6045 }
0x158e   :  { %v8159_v0 = vpop.eup %6047  ;;  %v4325_v61 = vmul.f32 %v8155_v4, %v8025_v55 }
0x158f   :  { %v8163_v56 = vpop.eup %6049 }
0x15dc   :  { %v4193_v27 = vpop.permute.xlu0 %4192 }
0x15dd   :  { %v4216_v14 = vmul.f32 %v8136_v29, %v4193_v27 }
0x15de   :  { %v4195_v44 = vpop.permute.xlu1 %4194 }
0x15df   :  { %v4217_v8 = vmul.f32 %v8139_v39, %v4195_v44  ;;  %4232 = vrot.lane.b32.xlu0 %v4216_v14, %s6099_s16  ;;  %v4274_v14 = vsub.f32 1.0, %v8143_v11 }
0x15e0   :  { %v4197_v12 = vpop.permute.xlu0 %4196 }
0x15e1   :  { %v4218_v37 = vmul.f32 %v8143_v11, %v4197_v12  ;;  %4234 = vrot.lane.b32.xlu1 %v4217_v8, %s6099_s16 }
0x15e2   :  { %v4199_v58 = vpop.permute.xlu1 %4198 }
0x15e3   :  { %v4219_v3 = vmul.f32 %v8147_v7, %v4199_v58  ;;  %4236 = vrot.lane.b32.xlu0 %v4218_v37, %s6099_s16  ;;  %v4275_v58 = vsub.f32 1.0, %v8147_v7 }
0x15e4   :  { %v4201_v17 = vpop.permute.xlu0 %4200 }
0x15e5   :  { %v4220_v60 = vmul.f32 %v8151_v24, %v4201_v17  ;;  %4238 = vrot.lane.b32.xlu1 %v4219_v3, %s6099_s16  ;;  %v4322_v3 = vmul.f32 %v8143_v11, %v8008_v2  ;;  %v4324_v11 = vmul.f32 %v8151_v24, %v8023_v35  ;;  %v4327_v35 = vmul.f32 %v8163_v56, %v8038_v32 }
0x15e6   :  { %v4203_v19 = vpop.permute.xlu1 %4202 }
0x15e7   :  { %v4221_v33 = vmul.f32 %v8155_v4, %v4203_v19  ;;  %4240 = vrot.lane.b32.xlu0 %v4220_v60, %s6099_s16 }
0x15e8   :  { %v4205_v9 = vpop.permute.xlu0 %4204 }
0x15e9   :  { %v4222_v22 = vmul.f32 %v8159_v0, %v4205_v9  ;;  %4242 = vrot.lane.b32.xlu1 %v4221_v33, %s6099_s16 }
0x15ea   :  { %v4207_v50 = vpop.permute.xlu1 %4206 }
0x15eb   :  { %v4223_v46 = vmul.f32 %v8163_v56, %v4207_v50  ;;  %4244 = vrot.lane.b32.xlu0 %v4222_v22, %s6099_s16  ;;  %v4277_v22 = vsub.f32 1.0, %v8155_v4 }
0x15ed   :  { %4246 = vrot.lane.b32.xlu1 %v4223_v46, %s6099_s16  ;;  %v4278_v46 = vsub.f32 1.0, %v8159_v0 }
0x1651   :  { %v4233_v38 = vpop.permute.xlu0 %4232 }
0x1652   :  { %v4256_v63 = vadd.f32 %v4233_v38, %v8089_v30 }
0x1653   :  { %v4235_v31 = vpop.permute.xlu1 %4234 }
0x1654   :  { %6051 = vtanh.f32 %v4256_v63  ;;  %v4257_v52 = vadd.f32 %v4235_v31, %v8092_v62 }
0x1655   :  { %v4237_v25 = vpop.permute.xlu0 %4236 }
0x1656   :  { %6053 = vtanh.f32 %v4257_v52  ;;  %v4258_v28 = vadd.f32 %v4237_v25, %v8097_v6  ;;  %v4279_v25 = vsub.f32 1.0, %v8163_v56 }
0x1657   :  { %v4239_v26 = vpop.permute.xlu1 %4238 }
0x1658   :  { %6055 = vtanh.f32 %v4258_v28  ;;  %v4259_v15 = vadd.f32 %v4239_v26, %v8102_v42 }
0x1659   :  { %v4241_v20 = vpop.permute.xlu0 %4240 }
0x165a   :  { %6057 = vtanh.f32 %v4259_v15  ;;  %v4260_v34 = vadd.f32 %v4241_v20, %v8107_v21  ;;  %v4326_v15 = vmul.f32 %v8159_v0, %v8036_v57 }
0x165b   :  { %v4243_v13 = vpop.permute.xlu1 %4242 }
0x165c   :  { %6059 = vtanh.f32 %v4260_v34  ;;  %v4261_v30 = vadd.f32 %v4243_v13, %v8112_v5 }
0x165d   :  { %v4245_v23 = vpop.permute.xlu0 %4244 }
0x165e   :  { %v6052_v53 = vpop.eup %6051  ;;  %6061 = vtanh.f32 %v4261_v30  ;;  %v4262_v62 = vadd.f32 %v4245_v23, %v8117_v36 }
0x165f   :  { %v4247_v59 = vpop.permute.xlu1 %4246  ;;  %4288 = vrot.lane.b32.xlu0 %v6052_v53, %s6100_s1 }
0x1660   :  { %v6054_v6 = vpop.eup %6053  ;;  %6063 = vtanh.f32 %v4262_v62  ;;  %v4263_v42 = vadd.f32 %v4247_v59, %v8122_v54  ;;  %v4272_v54 = vsub.f32 1.0, %v8136_v29 }
0x1661   :  { %4290 = vrot.lane.b32.xlu1 %v6054_v6, %s6100_s1 }
0x1662   :  { %v6056_v43 = vpop.eup %6055  ;;  %6065 = vtanh.f32 %v4263_v42 }
0x1663   :  { %4292 = vrot.lane.b32.xlu0 %v6056_v43, %s6100_s1 }
0x1664   :  { %v6058_v21 = vpop.eup %6057 }
0x1665   :  { %4294 = vrot.lane.b32.xlu1 %v6058_v21, %s6100_s1 }
0x1666   :  { %v6060_v5 = vpop.eup %6059 }
0x1667   :  { %4296 = vrot.lane.b32.xlu0 %v6060_v5, %s6100_s1 }
0x1668   :  { %v6062_v36 = vpop.eup %6061 }
0x1669   :  { %4298 = vrot.lane.b32.xlu1 %v6062_v36, %s6100_s1 }
0x166a   :  { %v6064_v18 = vpop.eup %6063 }
0x166b   :  { %4300 = vrot.lane.b32.xlu0 %v6064_v18, %s6100_s1 }
0x166c   :  { %v6066_v49 = vpop.eup %6065 }
0x166d   :  { %4302 = vrot.lane.b32.xlu1 %v6066_v49, %s6100_s1 }
0x16d1   :  { %v4289_v40 = vpop.permute.xlu0 %4288 }
0x16d2   :  { %v4312_v47 = vmul.f32 %v4289_v40, %v4272_v54 }
0x16d3   :  { %v4291_v51 = vpop.permute.xlu1 %4290 }
0x16d4   :  { %v4313_v27 = vmul.f32 %v4291_v51, %v4273_v41  ;;  %v4328_v8 = vadd.f32 %v4320_v10, %v4312_v47 }
0x16d5   :  { %v4293_v44 = vpop.permute.xlu0 %4292 }
0x16d6   :  { %v4329_v12 = vadd.f32 %v4321_v16, %v4313_v27  ;;  %v4314_v37 = vmul.f32 %v4293_v44, %v4274_v14 }
0x16d7   :  { %v4295_v17 = vpop.permute.xlu1 %4294 }
0x16d8   :  { %v4336_v60 = vpack.c.bf16 %v4329_v12, %v4328_v8  ;;  %v4315_v29 = vmul.f32 %v4295_v17, %v4275_v58  ;;  %v4330_v19 = vadd.f32 %v4322_v3, %v4314_v37 }
0x16d9   :  { %v4297_v39 = vpop.permute.xlu0 %4296 }
0x16da   :  { %v4331_v33 = vadd.f32 %v4323_v48, %v4315_v29  ;;  %v4316_v9 = vmul.f32 %v4297_v39, %v4276_v1  ;;  %4344 = vrot.lane.b32.xlu0 %v4336_v60, %s6100_s1 }
0x16db   :  { %v4299_v50 = vpop.permute.xlu1 %4298 }
0x16dc   :  { %v4337_v2 = vpack.c.bf16 %v4331_v33, %v4330_v19  ;;  %v4317_v7 = vmul.f32 %v4299_v50, %v4277_v22  ;;  %v4332_v63 = vadd.f32 %v4324_v11, %v4316_v9 }
0x16dd   :  { %v4301_v38 = vpop.permute.xlu0 %4300 }
0x16de   :  { %v4333_v31 = vadd.f32 %v4325_v61, %v4317_v7  ;;  %v4318_v52 = vmul.f32 %v4301_v38, %v4278_v46  ;;  %4346 = vrot.lane.b32.xlu1 %v4337_v2, %s6100_s1 }
0x16df   :  { %v4303_v28 = vpop.permute.xlu1 %4302 }
0x16e0   :  { %v4338_v26 = vpack.c.bf16 %v4333_v31, %v4332_v63  ;;  %v4319_v24 = vmul.f32 %v4303_v28, %v4279_v25  ;;  %v4334_v20 = vadd.f32 %v4326_v15, %v4318_v52 }
0x16e2   :  { %v4335_v55 = vadd.f32 %v4327_v35, %v4319_v24  ;;  %4348 = vrot.lane.b32.xlu0 %v4338_v26, %s6100_s1 }
0x16e4   :  { %v4339_v4 = vpack.c.bf16 %v4335_v55, %v4334_v20 }
0x16e6   :  { %4478 = vrot.lane.b32.xlu0 %v4328_v8, %s6100_s1  ;;  %4350 = vrot.lane.b32.xlu1 %v4339_v4, %s6100_s1 }
0x16ea   :  { %4482 = vrot.lane.b32.xlu0 %v4330_v19, %s6100_s1  ;;  %4480 = vrot.lane.b32.xlu1 %v4329_v12, %s6100_s1 }
0x16ee   :  { %4486 = vrot.lane.b32.xlu0 %v4332_v63, %s6100_s1  ;;  %4484 = vrot.lane.b32.xlu1 %v4331_v33, %s6100_s1 }
0x16f2   :  { %4490 = vrot.lane.b32.xlu0 %v4334_v20, %s6100_s1  ;;  %4488 = vrot.lane.b32.xlu1 %v4333_v31, %s6100_s1 }
0x16f6   :  { %4492 = vrot.lane.b32.xlu1 %v4335_v55, %s6100_s1 }
0x174c   :  { %v4345_v57 = vpop.permute.xlu0 %4344 }
0x174d   :  { %5624 = vmatprep.mubr.msk.bf16.mxu1 %vm211_vm2, %v4345_v57 }
0x1750   :  { %v4347_v32 = vpop.permute.xlu1 %4346 }
0x1751   :  { %5625 = vmatmul.mubr.msk.bf16.vlgmr.msra.gmra.mrb[88].mxu1 %vm211_vm2, %v4347_v32 }
0x1754   :  { %v4349_v0 = vpop.permute.xlu0 %4348 }
0x1755   :  { %5628 = vmatprep.mubr.msk.bf16.mxu1 %vm211_vm2, %v4349_v0 }
0x1758   :  { %v4351_v56 = vpop.permute.xlu1 %4350  ;;  %v4479_v34 = vpop.permute.xlu0 %4478 }
0x1759   :  { %4502 = vst.msk [vmem:[%s8285_s9] sm:$0xff] %vm211_vm2, %v4479_v34  ;;  %5629 = vmatmul.mubr.msk.bf16.gmra.mrb[92].mxu1 %vm211_vm2, %v4351_v56 }
0x175c   :  { %v4481_v13 = vpop.permute.xlu1 %4480  ;;  %v4483_v30 = vpop.permute.xlu0 %4482 }
0x175d   :  { %4503 = vst.msk [vmem:[%s8285_s9 + $0x8] sm:$0xff] %vm211_vm2, %v4481_v13  ;;  %4504 = vst.msk [vmem:[%s8285_s9 + $0x10] sm:$0xff] %vm211_vm2, %v4483_v30 }
0x1760   :  { %v4485_v23 = vpop.permute.xlu1 %4484  ;;  %v4487_v53 = vpop.permute.xlu0 %4486 }
0x1761   :  { %4505 = vst.msk [vmem:[%s8285_s9 + $0x18] sm:$0xff] %vm211_vm2, %v4485_v23  ;;  %4506 = vst.msk [vmem:[%s8285_s9 + $0x20] sm:$0xff] %vm211_vm2, %v4487_v53 }
0x1764   :  { %v4489_v62 = vpop.permute.xlu1 %4488  ;;  %v4491_v59 = vpop.permute.xlu0 %4490 }
0x1765   :  { %4507 = vst.msk [vmem:[%s8285_s9 + $0x28] sm:$0xff] %vm211_vm2, %v4489_v62  ;;  %4508 = vst.msk [vmem:[%s8285_s9 + $0x30] sm:$0xff] %vm211_vm2, %v4491_v59 }
0x1768   :  { %v4493_v6 = vpop.permute.xlu1 %4492 }
0x1769   :  { %4509 = vst.msk [vmem:[%s8285_s9 + $0x38] sm:$0xff] %vm211_vm2, %v4493_v6 }
0x1824   :  { %v5626_v42 = vpop.f32.mrb[88].mxu1 }
0x1825   :  { %v4398_v43 = vpop.f32.mrb[89].mxu1  ;;  %v4407_v5 = vadd.f32 %v8066_v45, %v5626_v42 }
0x1826   :  { %v5627_v21 = vpop.f32.mrb[90].mxu1  ;;  %v4399_v49 = vadd.f32 %v8066_v45, %v4398_v43 }
0x1827   :  { %v4410_v36 = vadd.f32 %v8066_v45, %v5627_v21  ;;  %v4401_v18 = vpop.f32.mrb[91].mxu1 }
0x1828   :  { %v4402_v54 = vadd.f32 %v8066_v45, %v4401_v18 }
0x1829   :  { %v5109_v40 = vpack.c.bf16 %v4410_v36, %v4407_v5 }
0x182a   :  { %v5104_v47 = vpack.c.bf16 %v4402_v54, %v4399_v49 }
0x182b   :  { %5149 = vst [vmem:[%s8284_s8 + $0xe8] sm:$0xff] %v5109_v40  }
0x182c   :  { %5148 = vst [vmem:[%s8284_s8 + $0xe0] sm:$0xff] %v5104_v47   ;;  %v5630_v41 = vpop.f32.mrb[92].mxu1 }
0x182d   :  { %v4414_v51 = vpop.f32.mrb[93].mxu1  ;;  %v4423_v16 = vadd.f32 %v8066_v45, %v5630_v41 }
0x182e   :  { %v5631_v10 = vpop.f32.mrb[94].mxu1  ;;  %v4415_v44 = vadd.f32 %v8066_v45, %v4414_v51 }
0x182f   :  { %v4426_v27 = vadd.f32 %v8066_v45, %v5631_v10  ;;  %v4417_v14 = vpop.f32.mrb[95].mxu1 }
0x1830   :  { %v4418_v8 = vadd.f32 %v8066_v45, %v4417_v14 }
0x1831   :  { %v5119_v12 = vpack.c.bf16 %v4426_v27, %v4423_v16 }
0x1832   :  { %v5114_v37 = vpack.c.bf16 %v4418_v8, %v4415_v44 }
0x1833   :  { %5151 = vst [vmem:[%s8284_s8 + $0xf8] sm:$0xff] %v5119_v12  }
0x1834   :  { %5150 = vst [vmem:[%s8284_s8 + $0xf0] sm:$0xff] %v5114_v37  }

</bundles_post_ra>
